<compile_context>
chip_gen: v7x
topology: tpu7x:2x2x1
jax: 0.10.0
libtpu: 0.0.40
codegen_flags: <defaults>
</compile_context>

<pallas_src>
import functools
import math

import jax
import jax.numpy as jnp
from jax.experimental import pallas as pl
from jax.experimental.pallas import tpu as pltpu


# -----------------------------------------------------------------------------
# Fused forward kernel.
# -----------------------------------------------------------------------------
def seq2seq_fused_kernel(
    x_ref,        # (S*B, E)  bf16  encoder token embeddings, row = t*B + b
    y_ref,        # (T*B, E)  bf16  decoder input embeddings, row = t*B + b
    enc_wih_ref,  # (E, 8H)   bf16  gate cols [i_f i_b f_f f_b g_f g_b o_f o_b]
    enc_whh_ref,  # (2H, 8H)  bf16  block-diagonal over directions, same col order
    enc_b_ref,    # (1, 8H)   f32   b_ih + b_hh, packed like enc_wih
    d0_wih_ref,   # (E, 4H)   bf16  decoder layer 0, gate cols [i f g o]
    d0_whh_ref,   # (H, 4H)   bf16
    d0_b_ref,     # (1, 4H)   f32
    d1_w_ref,     # (2H, 4H)  bf16  rows :H -> W_ih (input = h0), rows H: -> W_hh (h1)
    d1_b_ref,     # (1, 4H)   f32
    cls_w_ref,    # (H, V)    bf16
    cls_b_ref,    # (1, V)    f32
    tgt_ref,      # (B, T)    int32 decoder targets
    loss_ref,     # (1, 1)    f32   mean cross-entropy
    *, S, T, B, H, V,
):
    f32 = jnp.float32
    bf16 = jnp.bfloat16
    G2 = 2 * H  # per-gate width with both encoder directions packed on lanes

    # ------------------ Encoder: bidirectional LSTM, directions packed -------
    # Hoisted input projection for all timesteps / both directions: one MXU matmul.
    enc_xp = jnp.dot(x_ref[...], enc_wih_ref[...],
                     preferred_element_type=f32) + enc_b_ref[...]       # (S*B, 8H)

    # Per gate block of width 2H, the first H columns belong to the fwd direction.
    dir_is_fwd = (jax.lax.broadcasted_iota(jnp.int32, (B, 8 * H), 1) % G2) < H

    h_e = jnp.zeros((B, G2), f32)   # [h_fwd | h_bwd]
    c_e = jnp.zeros((B, G2), f32)
    for t in range(S):                               # fully unrolled (static S)
        xf = enc_xp[t * B:(t + 1) * B, :]            # proj of x[:, t]        (B, 8H)
        xb = enc_xp[(S - 1 - t) * B:(S - t) * B, :]  # proj of x[:, S-1-t]    (B, 8H)
        gin = jnp.where(dir_is_fwd, xf, xb)
        gates = gin + jnp.dot(h_e.astype(bf16), enc_whh_ref[...],
                              preferred_element_type=f32)                # (B, 8H)
        sg = jax.nn.sigmoid(gates)                   # whole-vreg activations (EUP)
        tg = jnp.tanh(gates)
        i_g = sg[:, 0 * G2:1 * G2]
        f_g = sg[:, 1 * G2:2 * G2]
        g_g = tg[:, 2 * G2:3 * G2]
        o_g = sg[:, 3 * G2:4 * G2]
        c_e = f_g * c_e + i_g * g_g
        h_e = o_g * jnp.tanh(c_e)

    # encoder (h_n, c_n): [fwd, bwd] reused as decoder [layer0, layer1] init state.
    h0, c0 = h_e[:, :H], c_e[:, :H]
    h1, c1 = h_e[:, H:], c_e[:, H:]

    # ------------------ Decoder (2 layers) + classifier + CE, fused ----------
    dec_xp = jnp.dot(y_ref[...], d0_wih_ref[...],
                     preferred_element_type=f32) + d0_b_ref[...]         # (T*B, 4H)
    d1_b = jnp.broadcast_to(d1_b_ref[...], (B, 4 * H))                   # hoisted
    cls_b = jnp.broadcast_to(cls_b_ref[...], (B, V))                     # hoisted
    col_ids = jax.lax.broadcasted_iota(jnp.int32, (B, V), 1)             # hoisted
    tgt = tgt_ref[...]                                                   # (B, T)

    nll_acc = jnp.zeros((B, 1), f32)
    for t in range(T):                               # fully unrolled (static T)
        # ---- layer 0 (input projection already hoisted) ----
        g0 = dec_xp[t * B:(t + 1) * B, :] + jnp.dot(
            h0.astype(bf16), d0_whh_ref[...], preferred_element_type=f32)
        s0 = jax.nn.sigmoid(g0)
        t0 = jnp.tanh(g0)
        c0 = s0[:, H:2 * H] * c0 + s0[:, :H] * t0[:, 2 * H:3 * H]
        h0 = s0[:, 3 * H:] * jnp.tanh(c0)
        # ---- layer 1: input- and hidden-projection fused into one matmul ----
        hin = jnp.concatenate([h0, h1], axis=-1).astype(bf16)            # (B, 2H)
        g1 = jnp.dot(hin, d1_w_ref[...], preferred_element_type=f32) + d1_b
        s1 = jax.nn.sigmoid(g1)
        t1 = jnp.tanh(g1)
        c1 = s1[:, H:2 * H] * c1 + s1[:, :H] * t1[:, 2 * H:3 * H]
        h1 = s1[:, 3 * H:] * jnp.tanh(c1)
        # ---- classifier + cross-entropy for this step (off the serial path) --
        logits = jnp.dot(h1.astype(bf16), cls_w_ref[...],
                         preferred_element_type=f32) + cls_b             # (B, V)
        m = jnp.max(logits, axis=-1, keepdims=True)
        z = logits - m
        lse = jnp.log(jnp.sum(jnp.exp(z), axis=-1, keepdims=True))
        z_tgt = jnp.sum(jnp.where(col_ids == tgt[:, t:t + 1], z, 0.0),
                        axis=-1, keepdims=True)                          # (B, 1)
        nll_acc = nll_acc + (lse - z_tgt)

    loss_ref[...] = jnp.sum(nll_acc, axis=0, keepdims=True) * (1.0 / (T * B))


# -----------------------------------------------------------------------------
# Parameter init / packing (PyTorch-like shapes; gate order i, f, g, o).
# -----------------------------------------------------------------------------
def _lstm_params(key, in_dim, hidden):
    k = 1.0 / math.sqrt(hidden)
    k1, k2, k3, k4 = jax.random.split(key, 4)
    w_ih = jax.random.uniform(k1, (in_dim, 4 * hidden), jnp.float32, -k, k)
    w_hh = jax.random.uniform(k2, (hidden, 4 * hidden), jnp.float32, -k, k)
    b_ih = jax.random.uniform(k3, (1, 4 * hidden), jnp.float32, -k, k)
    b_hh = jax.random.uniform(k4, (1, 4 * hidden), jnp.float32, -k, k)
    return w_ih, w_hh, b_ih + b_hh


def init_params(key, vocab, emb, hidden):
    keys = jax.random.split(key, 8)
    p = {}
    p["enc_emb"] = jax.random.normal(keys[0], (vocab, emb), jnp.float32)
    p["dec_emb"] = jax.random.normal(keys[1], (vocab, emb), jnp.float32)
    p["enc_f"] = _lstm_params(keys[2], emb, hidden)      # encoder forward dir
    p["enc_b"] = _lstm_params(keys[3], emb, hidden)      # encoder backward dir
    p["dec_0"] = _lstm_params(keys[4], emb, hidden)      # decoder layer 0
    p["dec_1"] = _lstm_params(keys[5], hidden, hidden)   # decoder layer 1
    kc = 1.0 / math.sqrt(hidden)
    p["cls_w"] = jax.random.uniform(keys[6], (hidden, vocab), jnp.float32, -kc, kc)
    p["cls_b"] = jax.random.uniform(keys[7], (1, vocab), jnp.float32, -kc, kc)
    return p


def _pack_bidir(wf, wb):
    """Interleave fwd/bwd gate blocks along columns: [i_f i_b f_f f_b g_f g_b o_f o_b]."""
    hh = wf.shape[1] // 4
    blocks = []
    for k in range(4):
        blocks.append(wf[:, k * hh:(k + 1) * hh])
        blocks.append(wb[:, k * hh:(k + 1) * hh])
    return jnp.concatenate(blocks, axis=1)


# -----------------------------------------------------------------------------
# Seq2Seq.forward
# -----------------------------------------------------------------------------
def seq2seq_forward(params, x, y, *, hidden, vocab):
    B, S = x.shape
    dec_in = y[:, :-1]
    dec_tgt = y[:, 1:]
    T = dec_in.shape[1]
    H = hidden
    bf16 = jnp.bfloat16

    # Embedding gather directly in time-major flattened order (row = t*B + b):
    # no separate (B,S,E)->(S,B,E) transpose of the float activations.
    x2d = jnp.take(params["enc_emb"], x.T.reshape(-1), axis=0).astype(bf16)       # (S*B, E)
    y2d = jnp.take(params["dec_emb"], dec_in.T.reshape(-1), axis=0).astype(bf16)  # (T*B, E)

    # Weight packing (pure parameter preprocessing; constant-folded under jit).
    wf_ih, wf_hh, b_f = params["enc_f"]
    wb_ih, wb_hh, b_b = params["enc_b"]
    zero_h = jnp.zeros_like(wf_hh)
    enc_wih = _pack_bidir(wf_ih, wb_ih).astype(bf16)                     # (E, 8H)
    enc_whh = _pack_bidir(jnp.concatenate([wf_hh, zero_h], axis=0),
                          jnp.concatenate([zero_h, wb_hh], axis=0)).astype(bf16)  # (2H, 8H)
    enc_b = _pack_bidir(b_f, b_b)                                        # (1, 8H)

    w0_ih, w0_hh, b0 = params["dec_0"]
    w1_ih, w1_hh, b1 = params["dec_1"]
    d1_w = jnp.concatenate([w1_ih, w1_hh], axis=0).astype(bf16)          # (2H, 4H)

    kernel = functools.partial(seq2seq_fused_kernel, S=S, T=T, B=B, H=H, V=vocab)
    vmem = pl.BlockSpec(memory_space=pltpu.MemorySpace.VMEM)
    loss = pl.pallas_call(
        kernel,
        out_shape=jax.ShapeDtypeStruct((1, 1), jnp.float32),
        in_specs=[vmem] * 13,
        out_specs=vmem,
    )(x2d, y2d,
      enc_wih, enc_whh, enc_b,
      w0_ih.astype(bf16), w0_hh.astype(bf16), b0,
      d1_w, b1,
      params["cls_w"].astype(bf16), params["cls_b"],
      dec_tgt.astype(jnp.int32))
    return loss[0, 0]


if __name__ == "__main__":
    # args = {embed_size: 16, hidden_size: 32, vocab_size: 128, num_layers: 2}
    B, Sx, Sy = 2, 8, 8
    E, H, V = 16, 32, 128

    key = jax.random.PRNGKey(0)
    kp, kx, ky = jax.random.split(key, 3)
    params = init_params(kp, V, E, H)
    x = jax.random.randint(kx, (B, Sx), 0, V, dtype=jnp.int32)
    y = jax.random.randint(ky, (B, Sy), 0, V, dtype=jnp.int32)

    loss_fn = jax.jit(functools.partial(seq2seq_forward, hidden=H, vocab=V))
    loss = loss_fn(params, x, y)
    loss = jax.block_until_ready(loss)
    assert jnp.isfinite(loss), f"loss not finite: {loss}"
    print("KERNEL_OK")
</pallas_src>

<mosaic_0001>
module attributes {stable_mosaic.version = 11 : i64} {
  func.func @seq2seq_fused_kernel(%arg0: memref<16x16xbf16, #tpu.memory_space<vmem>>, %arg1: memref<14x16xbf16, #tpu.memory_space<vmem>>, %arg2: memref<16x256xbf16, #tpu.memory_space<vmem>>, %arg3: memref<64x256xbf16, #tpu.memory_space<vmem>>, %arg4: memref<1x256xf32, #tpu.memory_space<vmem>>, %arg5: memref<16x128xbf16, #tpu.memory_space<vmem>>, %arg6: memref<32x128xbf16, #tpu.memory_space<vmem>>, %arg7: memref<1x128xf32, #tpu.memory_space<vmem>>, %arg8: memref<64x128xbf16, #tpu.memory_space<vmem>>, %arg9: memref<1x128xf32, #tpu.memory_space<vmem>>, %arg10: memref<32x128xbf16, #tpu.memory_space<vmem>>, %arg11: memref<1x128xf32, #tpu.memory_space<vmem>>, %arg12: memref<2x7xi32, #tpu.memory_space<vmem>>, %arg13: memref<1x1xf32, #tpu.memory_space<vmem>>) attributes {dimension_semantics = [], scalar_prefetch = 0 : i64, scratch_operands = 0 : i64, tpu.core_type = #tpu.core_type<tc>} {
    %c0 = arith.constant 0 : index
    %c0_0 = arith.constant 0 : index
    %0 = vector.load %arg0[%c0, %c0_0] : memref<16x16xbf16, #tpu.memory_space<vmem>>, vector<16x16xbf16>
    %c0_1 = arith.constant 0 : index
    %c0_2 = arith.constant 0 : index
    %1 = vector.load %arg2[%c0_1, %c0_2] : memref<16x256xbf16, #tpu.memory_space<vmem>>, vector<16x256xbf16>
    %cst = arith.constant dense<0.000000e+00> : vector<16x256xf32>
    %2 = tpu.matmul %0, %1, %cst {dimension_numbers = #tpu.dot_dimension_numbers<[1], [0], [0], [1], [0, 0, 1, 1], [], []>} : vector<16x16xbf16>, vector<16x256xbf16>, vector<16x256xf32> -> vector<16x256xf32>
    %c0_3 = arith.constant 0 : index
    %c0_4 = arith.constant 0 : index
    %3 = vector.load %arg4[%c0_3, %c0_4] : memref<1x256xf32, #tpu.memory_space<vmem>>, vector<1x256xf32>
    %4 = vector.broadcast %3 : vector<1x256xf32> to vector<16x256xf32>
    %5 = arith.addf %2, %4 : vector<16x256xf32>
    %6 = tpu.iota {dimensions = array<i32: 1>} : vector<2x256xi32>
    %c64_i32 = arith.constant 64 : i32
    %c0_i32 = arith.constant 0 : i32
    %7 = arith.cmpi eq, %c64_i32, %c0_i32 : i32
    %c1_i32 = arith.constant 1 : i32
    %8 = arith.select %7, %c1_i32, %c64_i32 : i32
    %9 = vector.broadcast %8 : i32 to vector<2x256xi32>
    %10 = arith.remsi %6, %9 : vector<2x256xi32>
    %c0_i32_5 = arith.constant 0 : i32
    %11 = vector.broadcast %c0_i32_5 : i32 to vector<2x256xi32>
    %12 = arith.cmpi ne, %10, %11 : vector<2x256xi32>
    %c0_i32_6 = arith.constant 0 : i32
    %13 = vector.broadcast %c0_i32_6 : i32 to vector<2x256xi32>
    %14 = arith.cmpi slt, %10, %13 : vector<2x256xi32>
    %c0_i32_7 = arith.constant 0 : i32
    %15 = arith.cmpi slt, %8, %c0_i32_7 : i32
    %16 = vector.broadcast %15 : i1 to vector<2x256xi1>
    %17 = vector.broadcast %16 : vector<2x256xi1> to vector<2x256xi1>
    %18 = arith.xori %14, %17 : vector<2x256xi1>
    %19 = arith.andi %18, %12 : vector<2x256xi1>
    %20 = vector.broadcast %8 : i32 to vector<2x256xi32>
    %21 = arith.addi %10, %20 : vector<2x256xi32>
    %22 = arith.select %19, %21, %10 : vector<2x256xi1>, vector<2x256xi32>
    %c32_i32 = arith.constant 32 : i32
    %23 = vector.broadcast %c32_i32 : i32 to vector<2x256xi32>
    %24 = arith.cmpi slt, %22, %23 : vector<2x256xi32>
    %cst_8 = arith.constant 0.000000e+00 : f32
    %25 = vector.broadcast %cst_8 : f32 to vector<2x64xf32>
    %cst_9 = arith.constant 0.000000e+00 : f32
    %26 = vector.broadcast %cst_9 : f32 to vector<2x64xf32>
    %27 = vector.extract_strided_slice %5 {offsets = [0, 0], sizes = [2, 256], strides = [1, 1]} : vector<16x256xf32> to vector<2x256xf32>
    %28 = vector.extract_strided_slice %5 {offsets = [14, 0], sizes = [2, 256], strides = [1, 1]} : vector<16x256xf32> to vector<2x256xf32>
    %29 = arith.select %24, %27, %28 : vector<2x256xi1>, vector<2x256xf32>
    %30 = arith.truncf %25 : vector<2x64xf32> to vector<2x64xbf16>
    %c0_10 = arith.constant 0 : index
    %c0_11 = arith.constant 0 : index
    %31 = vector.load %arg3[%c0_10, %c0_11] : memref<64x256xbf16, #tpu.memory_space<vmem>>, vector<64x256xbf16>
    %cst_12 = arith.constant dense<0.000000e+00> : vector<2x256xf32>
    %32 = tpu.matmul %30, %31, %cst_12 {dimension_numbers = #tpu.dot_dimension_numbers<[1], [0], [0], [1], [0, 0, 1, 1], [], []>} : vector<2x64xbf16>, vector<64x256xbf16>, vector<2x256xf32> -> vector<2x256xf32>
    %33 = arith.addf %29, %32 : vector<2x256xf32>
    %34 = arith.negf %33 : vector<2x256xf32>
    %35 = math.exp %34 : vector<2x256xf32>
    %cst_13 = arith.constant 1.000000e+00 : f32
    %36 = vector.broadcast %cst_13 : f32 to vector<2x256xf32>
    %37 = arith.addf %36, %35 : vector<2x256xf32>
    %38 = arith.divf %36, %37 : vector<2x256xf32>
    %39 = math.tanh %33 : vector<2x256xf32>
    %40 = vector.extract_strided_slice %38 {offsets = [0, 0], sizes = [2, 64], strides = [1, 1]} : vector<2x256xf32> to vector<2x64xf32>
    %41 = vector.extract_strided_slice %38 {offsets = [0, 64], sizes = [2, 64], strides = [1, 1]} : vector<2x256xf32> to vector<2x64xf32>
    %42 = vector.extract_strided_slice %39 {offsets = [0, 128], sizes = [2, 64], strides = [1, 1]} : vector<2x256xf32> to vector<2x64xf32>
    %43 = vector.extract_strided_slice %38 {offsets = [0, 192], sizes = [2, 64], strides = [1, 1]} : vector<2x256xf32> to vector<2x64xf32>
    %44 = arith.mulf %41, %26 : vector<2x64xf32>
    %45 = arith.mulf %40, %42 : vector<2x64xf32>
    %46 = arith.addf %44, %45 : vector<2x64xf32>
    %47 = math.tanh %46 : vector<2x64xf32>
    %48 = arith.mulf %43, %47 : vector<2x64xf32>
    %49 = vector.extract_strided_slice %5 {offsets = [2, 0], sizes = [2, 256], strides = [1, 1]} : vector<16x256xf32> to vector<2x256xf32>
    %50 = vector.extract_strided_slice %5 {offsets = [12, 0], sizes = [2, 256], strides = [1, 1]} : vector<16x256xf32> to vector<2x256xf32>
    %51 = arith.select %24, %49, %50 : vector<2x256xi1>, vector<2x256xf32>
    %52 = arith.truncf %48 : vector<2x64xf32> to vector<2x64xbf16>
    %c0_14 = arith.constant 0 : index
    %c0_15 = arith.constant 0 : index
    %53 = vector.load %arg3[%c0_14, %c0_15] : memref<64x256xbf16, #tpu.memory_space<vmem>>, vector<64x256xbf16>
    %cst_16 = arith.constant dense<0.000000e+00> : vector<2x256xf32>
    %54 = tpu.matmul %52, %53, %cst_16 {dimension_numbers = #tpu.dot_dimension_numbers<[1], [0], [0], [1], [0, 0, 1, 1], [], []>} : vector<2x64xbf16>, vector<64x256xbf16>, vector<2x256xf32> -> vector<2x256xf32>
    %55 = arith.addf %51, %54 : vector<2x256xf32>
    %56 = arith.negf %55 : vector<2x256xf32>
    %57 = math.exp %56 : vector<2x256xf32>
    %cst_17 = arith.constant 1.000000e+00 : f32
    %58 = vector.broadcast %cst_17 : f32 to vector<2x256xf32>
    %59 = arith.addf %58, %57 : vector<2x256xf32>
    %60 = arith.divf %58, %59 : vector<2x256xf32>
    %61 = math.tanh %55 : vector<2x256xf32>
    %62 = vector.extract_strided_slice %60 {offsets = [0, 0], sizes = [2, 64], strides = [1, 1]} : vector<2x256xf32> to vector<2x64xf32>
    %63 = vector.extract_strided_slice %60 {offsets = [0, 64], sizes = [2, 64], strides = [1, 1]} : vector<2x256xf32> to vector<2x64xf32>
    %64 = vector.extract_strided_slice %61 {offsets = [0, 128], sizes = [2, 64], strides = [1, 1]} : vector<2x256xf32> to vector<2x64xf32>
    %65 = vector.extract_strided_slice %60 {offsets = [0, 192], sizes = [2, 64], strides = [1, 1]} : vector<2x256xf32> to vector<2x64xf32>
    %66 = arith.mulf %63, %46 : vector<2x64xf32>
    %67 = arith.mulf %62, %64 : vector<2x64xf32>
    %68 = arith.addf %66, %67 : vector<2x64xf32>
    %69 = math.tanh %68 : vector<2x64xf32>
    %70 = arith.mulf %65, %69 : vector<2x64xf32>
    %71 = vector.extract_strided_slice %5 {offsets = [4, 0], sizes = [2, 256], strides = [1, 1]} : vector<16x256xf32> to vector<2x256xf32>
    %72 = vector.extract_strided_slice %5 {offsets = [10, 0], sizes = [2, 256], strides = [1, 1]} : vector<16x256xf32> to vector<2x256xf32>
    %73 = arith.select %24, %71, %72 : vector<2x256xi1>, vector<2x256xf32>
    %74 = arith.truncf %70 : vector<2x64xf32> to vector<2x64xbf16>
    %c0_18 = arith.constant 0 : index
    %c0_19 = arith.constant 0 : index
    %75 = vector.load %arg3[%c0_18, %c0_19] : memref<64x256xbf16, #tpu.memory_space<vmem>>, vector<64x256xbf16>
    %cst_20 = arith.constant dense<0.000000e+00> : vector<2x256xf32>
    %76 = tpu.matmul %74, %75, %cst_20 {dimension_numbers = #tpu.dot_dimension_numbers<[1], [0], [0], [1], [0, 0, 1, 1], [], []>} : vector<2x64xbf16>, vector<64x256xbf16>, vector<2x256xf32> -> vector<2x256xf32>
    %77 = arith.addf %73, %76 : vector<2x256xf32>
    %78 = arith.negf %77 : vector<2x256xf32>
    %79 = math.exp %78 : vector<2x256xf32>
    %cst_21 = arith.constant 1.000000e+00 : f32
    %80 = vector.broadcast %cst_21 : f32 to vector<2x256xf32>
    %81 = arith.addf %80, %79 : vector<2x256xf32>
    %82 = arith.divf %80, %81 : vector<2x256xf32>
    %83 = math.tanh %77 : vector<2x256xf32>
    %84 = vector.extract_strided_slice %82 {offsets = [0, 0], sizes = [2, 64], strides = [1, 1]} : vector<2x256xf32> to vector<2x64xf32>
    %85 = vector.extract_strided_slice %82 {offsets = [0, 64], sizes = [2, 64], strides = [1, 1]} : vector<2x256xf32> to vector<2x64xf32>
    %86 = vector.extract_strided_slice %83 {offsets = [0, 128], sizes = [2, 64], strides = [1, 1]} : vector<2x256xf32> to vector<2x64xf32>
    %87 = vector.extract_strided_slice %82 {offsets = [0, 192], sizes = [2, 64], strides = [1, 1]} : vector<2x256xf32> to vector<2x64xf32>
    %88 = arith.mulf %85, %68 : vector<2x64xf32>
    %89 = arith.mulf %84, %86 : vector<2x64xf32>
    %90 = arith.addf %88, %89 : vector<2x64xf32>
    %91 = math.tanh %90 : vector<2x64xf32>
    %92 = arith.mulf %87, %91 : vector<2x64xf32>
    %93 = vector.extract_strided_slice %5 {offsets = [6, 0], sizes = [2, 256], strides = [1, 1]} : vector<16x256xf32> to vector<2x256xf32>
    %94 = vector.extract_strided_slice %5 {offsets = [8, 0], sizes = [2, 256], strides = [1, 1]} : vector<16x256xf32> to vector<2x256xf32>
    %95 = arith.select %24, %93, %94 : vector<2x256xi1>, vector<2x256xf32>
    %96 = arith.truncf %92 : vector<2x64xf32> to vector<2x64xbf16>
    %c0_22 = arith.constant 0 : index
    %c0_23 = arith.constant 0 : index
    %97 = vector.load %arg3[%c0_22, %c0_23] : memref<64x256xbf16, #tpu.memory_space<vmem>>, vector<64x256xbf16>
    %cst_24 = arith.constant dense<0.000000e+00> : vector<2x256xf32>
    %98 = tpu.matmul %96, %97, %cst_24 {dimension_numbers = #tpu.dot_dimension_numbers<[1], [0], [0], [1], [0, 0, 1, 1], [], []>} : vector<2x64xbf16>, vector<64x256xbf16>, vector<2x256xf32> -> vector<2x256xf32>
    %99 = arith.addf %95, %98 : vector<2x256xf32>
    %100 = arith.negf %99 : vector<2x256xf32>
    %101 = math.exp %100 : vector<2x256xf32>
    %cst_25 = arith.constant 1.000000e+00 : f32
    %102 = vector.broadcast %cst_25 : f32 to vector<2x256xf32>
    %103 = arith.addf %102, %101 : vector<2x256xf32>
    %104 = arith.divf %102, %103 : vector<2x256xf32>
    %105 = math.tanh %99 : vector<2x256xf32>
    %106 = vector.extract_strided_slice %104 {offsets = [0, 0], sizes = [2, 64], strides = [1, 1]} : vector<2x256xf32> to vector<2x64xf32>
    %107 = vector.extract_strided_slice %104 {offsets = [0, 64], sizes = [2, 64], strides = [1, 1]} : vector<2x256xf32> to vector<2x64xf32>
    %108 = vector.extract_strided_slice %105 {offsets = [0, 128], sizes = [2, 64], strides = [1, 1]} : vector<2x256xf32> to vector<2x64xf32>
    %109 = vector.extract_strided_slice %104 {offsets = [0, 192], sizes = [2, 64], strides = [1, 1]} : vector<2x256xf32> to vector<2x64xf32>
    %110 = arith.mulf %107, %90 : vector<2x64xf32>
    %111 = arith.mulf %106, %108 : vector<2x64xf32>
    %112 = arith.addf %110, %111 : vector<2x64xf32>
    %113 = math.tanh %112 : vector<2x64xf32>
    %114 = arith.mulf %109, %113 : vector<2x64xf32>
    %115 = vector.extract_strided_slice %5 {offsets = [8, 0], sizes = [2, 256], strides = [1, 1]} : vector<16x256xf32> to vector<2x256xf32>
    %116 = vector.extract_strided_slice %5 {offsets = [6, 0], sizes = [2, 256], strides = [1, 1]} : vector<16x256xf32> to vector<2x256xf32>
    %117 = arith.select %24, %115, %116 : vector<2x256xi1>, vector<2x256xf32>
    %118 = arith.truncf %114 : vector<2x64xf32> to vector<2x64xbf16>
    %c0_26 = arith.constant 0 : index
    %c0_27 = arith.constant 0 : index
    %119 = vector.load %arg3[%c0_26, %c0_27] : memref<64x256xbf16, #tpu.memory_space<vmem>>, vector<64x256xbf16>
    %cst_28 = arith.constant dense<0.000000e+00> : vector<2x256xf32>
    %120 = tpu.matmul %118, %119, %cst_28 {dimension_numbers = #tpu.dot_dimension_numbers<[1], [0], [0], [1], [0, 0, 1, 1], [], []>} : vector<2x64xbf16>, vector<64x256xbf16>, vector<2x256xf32> -> vector<2x256xf32>
    %121 = arith.addf %117, %120 : vector<2x256xf32>
    %122 = arith.negf %121 : vector<2x256xf32>
    %123 = math.exp %122 : vector<2x256xf32>
    %cst_29 = arith.constant 1.000000e+00 : f32
    %124 = vector.broadcast %cst_29 : f32 to vector<2x256xf32>
    %125 = arith.addf %124, %123 : vector<2x256xf32>
    %126 = arith.divf %124, %125 : vector<2x256xf32>
    %127 = math.tanh %121 : vector<2x256xf32>
    %128 = vector.extract_strided_slice %126 {offsets = [0, 0], sizes = [2, 64], strides = [1, 1]} : vector<2x256xf32> to vector<2x64xf32>
    %129 = vector.extract_strided_slice %126 {offsets = [0, 64], sizes = [2, 64], strides = [1, 1]} : vector<2x256xf32> to vector<2x64xf32>
    %130 = vector.extract_strided_slice %127 {offsets = [0, 128], sizes = [2, 64], strides = [1, 1]} : vector<2x256xf32> to vector<2x64xf32>
    %131 = vector.extract_strided_slice %126 {offsets = [0, 192], sizes = [2, 64], strides = [1, 1]} : vector<2x256xf32> to vector<2x64xf32>
    %132 = arith.mulf %129, %112 : vector<2x64xf32>
    %133 = arith.mulf %128, %130 : vector<2x64xf32>
    %134 = arith.addf %132, %133 : vector<2x64xf32>
    %135 = math.tanh %134 : vector<2x64xf32>
    %136 = arith.mulf %131, %135 : vector<2x64xf32>
    %137 = vector.extract_strided_slice %5 {offsets = [10, 0], sizes = [2, 256], strides = [1, 1]} : vector<16x256xf32> to vector<2x256xf32>
    %138 = vector.extract_strided_slice %5 {offsets = [4, 0], sizes = [2, 256], strides = [1, 1]} : vector<16x256xf32> to vector<2x256xf32>
    %139 = arith.select %24, %137, %138 : vector<2x256xi1>, vector<2x256xf32>
    %140 = arith.truncf %136 : vector<2x64xf32> to vector<2x64xbf16>
    %c0_30 = arith.constant 0 : index
    %c0_31 = arith.constant 0 : index
    %141 = vector.load %arg3[%c0_30, %c0_31] : memref<64x256xbf16, #tpu.memory_space<vmem>>, vector<64x256xbf16>
    %cst_32 = arith.constant dense<0.000000e+00> : vector<2x256xf32>
    %142 = tpu.matmul %140, %141, %cst_32 {dimension_numbers = #tpu.dot_dimension_numbers<[1], [0], [0], [1], [0, 0, 1, 1], [], []>} : vector<2x64xbf16>, vector<64x256xbf16>, vector<2x256xf32> -> vector<2x256xf32>
    %143 = arith.addf %139, %142 : vector<2x256xf32>
    %144 = arith.negf %143 : vector<2x256xf32>
    %145 = math.exp %144 : vector<2x256xf32>
    %cst_33 = arith.constant 1.000000e+00 : f32
    %146 = vector.broadcast %cst_33 : f32 to vector<2x256xf32>
    %147 = arith.addf %146, %145 : vector<2x256xf32>
    %148 = arith.divf %146, %147 : vector<2x256xf32>
    %149 = math.tanh %143 : vector<2x256xf32>
    %150 = vector.extract_strided_slice %148 {offsets = [0, 0], sizes = [2, 64], strides = [1, 1]} : vector<2x256xf32> to vector<2x64xf32>
    %151 = vector.extract_strided_slice %148 {offsets = [0, 64], sizes = [2, 64], strides = [1, 1]} : vector<2x256xf32> to vector<2x64xf32>
    %152 = vector.extract_strided_slice %149 {offsets = [0, 128], sizes = [2, 64], strides = [1, 1]} : vector<2x256xf32> to vector<2x64xf32>
    %153 = vector.extract_strided_slice %148 {offsets = [0, 192], sizes = [2, 64], strides = [1, 1]} : vector<2x256xf32> to vector<2x64xf32>
    %154 = arith.mulf %151, %134 : vector<2x64xf32>
    %155 = arith.mulf %150, %152 : vector<2x64xf32>
    %156 = arith.addf %154, %155 : vector<2x64xf32>
    %157 = math.tanh %156 : vector<2x64xf32>
    %158 = arith.mulf %153, %157 : vector<2x64xf32>
    %159 = vector.extract_strided_slice %5 {offsets = [12, 0], sizes = [2, 256], strides = [1, 1]} : vector<16x256xf32> to vector<2x256xf32>
    %160 = vector.extract_strided_slice %5 {offsets = [2, 0], sizes = [2, 256], strides = [1, 1]} : vector<16x256xf32> to vector<2x256xf32>
    %161 = arith.select %24, %159, %160 : vector<2x256xi1>, vector<2x256xf32>
    %162 = arith.truncf %158 : vector<2x64xf32> to vector<2x64xbf16>
    %c0_34 = arith.constant 0 : index
    %c0_35 = arith.constant 0 : index
    %163 = vector.load %arg3[%c0_34, %c0_35] : memref<64x256xbf16, #tpu.memory_space<vmem>>, vector<64x256xbf16>
    %cst_36 = arith.constant dense<0.000000e+00> : vector<2x256xf32>
    %164 = tpu.matmul %162, %163, %cst_36 {dimension_numbers = #tpu.dot_dimension_numbers<[1], [0], [0], [1], [0, 0, 1, 1], [], []>} : vector<2x64xbf16>, vector<64x256xbf16>, vector<2x256xf32> -> vector<2x256xf32>
    %165 = arith.addf %161, %164 : vector<2x256xf32>
    %166 = arith.negf %165 : vector<2x256xf32>
    %167 = math.exp %166 : vector<2x256xf32>
    %cst_37 = arith.constant 1.000000e+00 : f32
    %168 = vector.broadcast %cst_37 : f32 to vector<2x256xf32>
    %169 = arith.addf %168, %167 : vector<2x256xf32>
    %170 = arith.divf %168, %169 : vector<2x256xf32>
    %171 = math.tanh %165 : vector<2x256xf32>
    %172 = vector.extract_strided_slice %170 {offsets = [0, 0], sizes = [2, 64], strides = [1, 1]} : vector<2x256xf32> to vector<2x64xf32>
    %173 = vector.extract_strided_slice %170 {offsets = [0, 64], sizes = [2, 64], strides = [1, 1]} : vector<2x256xf32> to vector<2x64xf32>
    %174 = vector.extract_strided_slice %171 {offsets = [0, 128], sizes = [2, 64], strides = [1, 1]} : vector<2x256xf32> to vector<2x64xf32>
    %175 = vector.extract_strided_slice %170 {offsets = [0, 192], sizes = [2, 64], strides = [1, 1]} : vector<2x256xf32> to vector<2x64xf32>
    %176 = arith.mulf %173, %156 : vector<2x64xf32>
    %177 = arith.mulf %172, %174 : vector<2x64xf32>
    %178 = arith.addf %176, %177 : vector<2x64xf32>
    %179 = math.tanh %178 : vector<2x64xf32>
    %180 = arith.mulf %175, %179 : vector<2x64xf32>
    %181 = vector.extract_strided_slice %5 {offsets = [14, 0], sizes = [2, 256], strides = [1, 1]} : vector<16x256xf32> to vector<2x256xf32>
    %182 = vector.extract_strided_slice %5 {offsets = [0, 0], sizes = [2, 256], strides = [1, 1]} : vector<16x256xf32> to vector<2x256xf32>
    %183 = arith.select %24, %181, %182 : vector<2x256xi1>, vector<2x256xf32>
    %184 = arith.truncf %180 : vector<2x64xf32> to vector<2x64xbf16>
    %c0_38 = arith.constant 0 : index
    %c0_39 = arith.constant 0 : index
    %185 = vector.load %arg3[%c0_38, %c0_39] : memref<64x256xbf16, #tpu.memory_space<vmem>>, vector<64x256xbf16>
    %cst_40 = arith.constant dense<0.000000e+00> : vector<2x256xf32>
    %186 = tpu.matmul %184, %185, %cst_40 {dimension_numbers = #tpu.dot_dimension_numbers<[1], [0], [0], [1], [0, 0, 1, 1], [], []>} : vector<2x64xbf16>, vector<64x256xbf16>, vector<2x256xf32> -> vector<2x256xf32>
    %187 = arith.addf %183, %186 : vector<2x256xf32>
    %188 = arith.negf %187 : vector<2x256xf32>
    %189 = math.exp %188 : vector<2x256xf32>
    %cst_41 = arith.constant 1.000000e+00 : f32
    %190 = vector.broadcast %cst_41 : f32 to vector<2x256xf32>
    %191 = arith.addf %190, %189 : vector<2x256xf32>
    %192 = arith.divf %190, %191 : vector<2x256xf32>
    %193 = math.tanh %187 : vector<2x256xf32>
    %194 = vector.extract_strided_slice %192 {offsets = [0, 0], sizes = [2, 64], strides = [1, 1]} : vector<2x256xf32> to vector<2x64xf32>
    %195 = vector.extract_strided_slice %192 {offsets = [0, 64], sizes = [2, 64], strides = [1, 1]} : vector<2x256xf32> to vector<2x64xf32>
    %196 = vector.extract_strided_slice %193 {offsets = [0, 128], sizes = [2, 64], strides = [1, 1]} : vector<2x256xf32> to vector<2x64xf32>
    %197 = vector.extract_strided_slice %192 {offsets = [0, 192], sizes = [2, 64], strides = [1, 1]} : vector<2x256xf32> to vector<2x64xf32>
    %198 = arith.mulf %195, %178 : vector<2x64xf32>
    %199 = arith.mulf %194, %196 : vector<2x64xf32>
    %200 = arith.addf %198, %199 : vector<2x64xf32>
    %201 = math.tanh %200 : vector<2x64xf32>
    %202 = arith.mulf %197, %201 : vector<2x64xf32>
    %203 = vector.extract_strided_slice %202 {offsets = [0, 0], sizes = [2, 32], strides = [1, 1]} : vector<2x64xf32> to vector<2x32xf32>
    %204 = vector.extract_strided_slice %200 {offsets = [0, 0], sizes = [2, 32], strides = [1, 1]} : vector<2x64xf32> to vector<2x32xf32>
    %205 = vector.extract_strided_slice %202 {offsets = [0, 32], sizes = [2, 32], strides = [1, 1]} : vector<2x64xf32> to vector<2x32xf32>
    %206 = vector.extract_strided_slice %200 {offsets = [0, 32], sizes = [2, 32], strides = [1, 1]} : vector<2x64xf32> to vector<2x32xf32>
    %c0_42 = arith.constant 0 : index
    %c0_43 = arith.constant 0 : index
    %207 = vector.load %arg1[%c0_42, %c0_43] : memref<14x16xbf16, #tpu.memory_space<vmem>>, vector<14x16xbf16>
    %c0_44 = arith.constant 0 : index
    %c0_45 = arith.constant 0 : index
    %208 = vector.load %arg5[%c0_44, %c0_45] : memref<16x128xbf16, #tpu.memory_space<vmem>>, vector<16x128xbf16>
    %cst_46 = arith.constant dense<0.000000e+00> : vector<14x128xf32>
    %209 = tpu.matmul %207, %208, %cst_46 {dimension_numbers = #tpu.dot_dimension_numbers<[1], [0], [0], [1], [0, 0, 1, 1], [], []>} : vector<14x16xbf16>, vector<16x128xbf16>, vector<14x128xf32> -> vector<14x128xf32>
    %c0_47 = arith.constant 0 : index
    %c0_48 = arith.constant 0 : index
    %210 = vector.load %arg7[%c0_47, %c0_48] : memref<1x128xf32, #tpu.memory_space<vmem>>, vector<1x128xf32>
    %211 = vector.broadcast %210 : vector<1x128xf32> to vector<14x128xf32>
    %212 = arith.addf %209, %211 : vector<14x128xf32>
    %c0_49 = arith.constant 0 : index
    %c0_50 = arith.constant 0 : index
    %213 = vector.load %arg9[%c0_49, %c0_50] : memref<1x128xf32, #tpu.memory_space<vmem>>, vector<1x128xf32>
    %214 = vector.shape_cast %213 : vector<1x128xf32> to vector<1x128xf32>
    %215 = vector.broadcast %214 : vector<1x128xf32> to vector<2x128xf32>
    %c0_51 = arith.constant 0 : index
    %c0_52 = arith.constant 0 : index
    %216 = vector.load %arg11[%c0_51, %c0_52] : memref<1x128xf32, #tpu.memory_space<vmem>>, vector<1x128xf32>
    %217 = vector.shape_cast %216 : vector<1x128xf32> to vector<1x128xf32>
    %218 = vector.broadcast %217 : vector<1x128xf32> to vector<2x128xf32>
    %219 = tpu.iota {dimensions = array<i32: 1>} : vector<2x128xi32>
    %c0_53 = arith.constant 0 : index
    %c0_54 = arith.constant 0 : index
    %220 = vector.load %arg12[%c0_53, %c0_54] : memref<2x7xi32, #tpu.memory_space<vmem>>, vector<2x7xi32>
    %cst_55 = arith.constant 0.000000e+00 : f32
    %221 = vector.broadcast %cst_55 : f32 to vector<2x1xf32>
    %222 = vector.extract_strided_slice %212 {offsets = [0, 0], sizes = [2, 128], strides = [1, 1]} : vector<14x128xf32> to vector<2x128xf32>
    %223 = arith.truncf %203 : vector<2x32xf32> to vector<2x32xbf16>
    %c0_56 = arith.constant 0 : index
    %c0_57 = arith.constant 0 : index
    %224 = vector.load %arg6[%c0_56, %c0_57] : memref<32x128xbf16, #tpu.memory_space<vmem>>, vector<32x128xbf16>
    %cst_58 = arith.constant dense<0.000000e+00> : vector<2x128xf32>
    %225 = tpu.matmul %223, %224, %cst_58 {dimension_numbers = #tpu.dot_dimension_numbers<[1], [0], [0], [1], [0, 0, 1, 1], [], []>} : vector<2x32xbf16>, vector<32x128xbf16>, vector<2x128xf32> -> vector<2x128xf32>
    %226 = arith.addf %222, %225 : vector<2x128xf32>
    %227 = arith.negf %226 : vector<2x128xf32>
    %228 = math.exp %227 : vector<2x128xf32>
    %cst_59 = arith.constant 1.000000e+00 : f32
    %229 = vector.broadcast %cst_59 : f32 to vector<2x128xf32>
    %230 = arith.addf %229, %228 : vector<2x128xf32>
    %231 = arith.divf %229, %230 : vector<2x128xf32>
    %232 = math.tanh %226 : vector<2x128xf32>
    %233 = vector.extract_strided_slice %231 {offsets = [0, 32], sizes = [2, 32], strides = [1, 1]} : vector<2x128xf32> to vector<2x32xf32>
    %234 = arith.mulf %233, %204 : vector<2x32xf32>
    %235 = vector.extract_strided_slice %231 {offsets = [0, 0], sizes = [2, 32], strides = [1, 1]} : vector<2x128xf32> to vector<2x32xf32>
    %236 = vector.extract_strided_slice %232 {offsets = [0, 64], sizes = [2, 32], strides = [1, 1]} : vector<2x128xf32> to vector<2x32xf32>
    %237 = arith.mulf %235, %236 : vector<2x32xf32>
    %238 = arith.addf %234, %237 : vector<2x32xf32>
    %239 = vector.extract_strided_slice %231 {offsets = [0, 96], sizes = [2, 32], strides = [1, 1]} : vector<2x128xf32> to vector<2x32xf32>
    %240 = math.tanh %238 : vector<2x32xf32>
    %241 = arith.mulf %239, %240 : vector<2x32xf32>
    %242 = tpu.concatenate %241, %205 in 1 : vector<2x32xf32>, vector<2x32xf32> -> vector<2x64xf32>
    %243 = arith.truncf %242 : vector<2x64xf32> to vector<2x64xbf16>
    %c0_60 = arith.constant 0 : index
    %c0_61 = arith.constant 0 : index
    %244 = vector.load %arg8[%c0_60, %c0_61] : memref<64x128xbf16, #tpu.memory_space<vmem>>, vector<64x128xbf16>
    %cst_62 = arith.constant dense<0.000000e+00> : vector<2x128xf32>
    %245 = tpu.matmul %243, %244, %cst_62 {dimension_numbers = #tpu.dot_dimension_numbers<[1], [0], [0], [1], [0, 0, 1, 1], [], []>} : vector<2x64xbf16>, vector<64x128xbf16>, vector<2x128xf32> -> vector<2x128xf32>
    %246 = arith.addf %245, %215 : vector<2x128xf32>
    %247 = arith.negf %246 : vector<2x128xf32>
    %248 = math.exp %247 : vector<2x128xf32>
    %cst_63 = arith.constant 1.000000e+00 : f32
    %249 = vector.broadcast %cst_63 : f32 to vector<2x128xf32>
    %250 = arith.addf %249, %248 : vector<2x128xf32>
    %251 = arith.divf %249, %250 : vector<2x128xf32>
    %252 = math.tanh %246 : vector<2x128xf32>
    %253 = vector.extract_strided_slice %251 {offsets = [0, 32], sizes = [2, 32], strides = [1, 1]} : vector<2x128xf32> to vector<2x32xf32>
    %254 = arith.mulf %253, %206 : vector<2x32xf32>
    %255 = vector.extract_strided_slice %251 {offsets = [0, 0], sizes = [2, 32], strides = [1, 1]} : vector<2x128xf32> to vector<2x32xf32>
    %256 = vector.extract_strided_slice %252 {offsets = [0, 64], sizes = [2, 32], strides = [1, 1]} : vector<2x128xf32> to vector<2x32xf32>
    %257 = arith.mulf %255, %256 : vector<2x32xf32>
    %258 = arith.addf %254, %257 : vector<2x32xf32>
    %259 = vector.extract_strided_slice %251 {offsets = [0, 96], sizes = [2, 32], strides = [1, 1]} : vector<2x128xf32> to vector<2x32xf32>
    %260 = math.tanh %258 : vector<2x32xf32>
    %261 = arith.mulf %259, %260 : vector<2x32xf32>
    %262 = arith.truncf %261 : vector<2x32xf32> to vector<2x32xbf16>
    %c0_64 = arith.constant 0 : index
    %c0_65 = arith.constant 0 : index
    %263 = vector.load %arg10[%c0_64, %c0_65] : memref<32x128xbf16, #tpu.memory_space<vmem>>, vector<32x128xbf16>
    %cst_66 = arith.constant dense<0.000000e+00> : vector<2x128xf32>
    %264 = tpu.matmul %262, %263, %cst_66 {dimension_numbers = #tpu.dot_dimension_numbers<[1], [0], [0], [1], [0, 0, 1, 1], [], []>} : vector<2x32xbf16>, vector<32x128xbf16>, vector<2x128xf32> -> vector<2x128xf32>
    %265 = arith.addf %264, %218 : vector<2x128xf32>
    %cst_67 = arith.constant dense<0xFF800000> : vector<2xf32>
    %266 = vector.multi_reduction <maximumf>, %265, %cst_67 [1] : vector<2x128xf32> to vector<2xf32>
    %267 = vector.shape_cast %266 : vector<2xf32> to vector<2x1xf32>
    %268 = vector.broadcast %267 : vector<2x1xf32> to vector<2x128xf32>
    %269 = arith.subf %265, %268 : vector<2x128xf32>
    %270 = math.exp %269 : vector<2x128xf32>
    %cst_68 = arith.constant dense<0.000000e+00> : vector<2xf32>
    %271 = vector.multi_reduction <add>, %270, %cst_68 [1] : vector<2x128xf32> to vector<2xf32>
    %272 = vector.shape_cast %271 : vector<2xf32> to vector<2x1xf32>
    %273 = math.log %272 : vector<2x1xf32>
    %274 = vector.extract_strided_slice %220 {offsets = [0, 0], sizes = [2, 1], strides = [1, 1]} : vector<2x7xi32> to vector<2x1xi32>
    %275 = vector.broadcast %274 : vector<2x1xi32> to vector<2x128xi32>
    %276 = arith.cmpi eq, %219, %275 : vector<2x128xi32>
    %cst_69 = arith.constant 0.000000e+00 : f32
    %277 = vector.broadcast %cst_69 : f32 to vector<2x128xf32>
    %278 = arith.select %276, %269, %277 : vector<2x128xi1>, vector<2x128xf32>
    %cst_70 = arith.constant dense<0.000000e+00> : vector<2xf32>
    %279 = vector.multi_reduction <add>, %278, %cst_70 [1] : vector<2x128xf32> to vector<2xf32>
    %280 = vector.shape_cast %279 : vector<2xf32> to vector<2x1xf32>
    %281 = arith.subf %273, %280 : vector<2x1xf32>
    %282 = arith.addf %221, %281 : vector<2x1xf32>
    %283 = vector.extract_strided_slice %212 {offsets = [2, 0], sizes = [2, 128], strides = [1, 1]} : vector<14x128xf32> to vector<2x128xf32>
    %284 = arith.truncf %241 : vector<2x32xf32> to vector<2x32xbf16>
    %c0_71 = arith.constant 0 : index
    %c0_72 = arith.constant 0 : index
    %285 = vector.load %arg6[%c0_71, %c0_72] : memref<32x128xbf16, #tpu.memory_space<vmem>>, vector<32x128xbf16>
    %cst_73 = arith.constant dense<0.000000e+00> : vector<2x128xf32>
    %286 = tpu.matmul %284, %285, %cst_73 {dimension_numbers = #tpu.dot_dimension_numbers<[1], [0], [0], [1], [0, 0, 1, 1], [], []>} : vector<2x32xbf16>, vector<32x128xbf16>, vector<2x128xf32> -> vector<2x128xf32>
    %287 = arith.addf %283, %286 : vector<2x128xf32>
    %288 = arith.negf %287 : vector<2x128xf32>
    %289 = math.exp %288 : vector<2x128xf32>
    %cst_74 = arith.constant 1.000000e+00 : f32
    %290 = vector.broadcast %cst_74 : f32 to vector<2x128xf32>
    %291 = arith.addf %290, %289 : vector<2x128xf32>
    %292 = arith.divf %290, %291 : vector<2x128xf32>
    %293 = math.tanh %287 : vector<2x128xf32>
    %294 = vector.extract_strided_slice %292 {offsets = [0, 32], sizes = [2, 32], strides = [1, 1]} : vector<2x128xf32> to vector<2x32xf32>
    %295 = arith.mulf %294, %238 : vector<2x32xf32>
    %296 = vector.extract_strided_slice %292 {offsets = [0, 0], sizes = [2, 32], strides = [1, 1]} : vector<2x128xf32> to vector<2x32xf32>
    %297 = vector.extract_strided_slice %293 {offsets = [0, 64], sizes = [2, 32], strides = [1, 1]} : vector<2x128xf32> to vector<2x32xf32>
    %298 = arith.mulf %296, %297 : vector<2x32xf32>
    %299 = arith.addf %295, %298 : vector<2x32xf32>
    %300 = vector.extract_strided_slice %292 {offsets = [0, 96], sizes = [2, 32], strides = [1, 1]} : vector<2x128xf32> to vector<2x32xf32>
    %301 = math.tanh %299 : vector<2x32xf32>
    %302 = arith.mulf %300, %301 : vector<2x32xf32>
    %303 = tpu.concatenate %302, %261 in 1 : vector<2x32xf32>, vector<2x32xf32> -> vector<2x64xf32>
    %304 = arith.truncf %303 : vector<2x64xf32> to vector<2x64xbf16>
    %c0_75 = arith.constant 0 : index
    %c0_76 = arith.constant 0 : index
    %305 = vector.load %arg8[%c0_75, %c0_76] : memref<64x128xbf16, #tpu.memory_space<vmem>>, vector<64x128xbf16>
    %cst_77 = arith.constant dense<0.000000e+00> : vector<2x128xf32>
    %306 = tpu.matmul %304, %305, %cst_77 {dimension_numbers = #tpu.dot_dimension_numbers<[1], [0], [0], [1], [0, 0, 1, 1], [], []>} : vector<2x64xbf16>, vector<64x128xbf16>, vector<2x128xf32> -> vector<2x128xf32>
    %307 = arith.addf %306, %215 : vector<2x128xf32>
    %308 = arith.negf %307 : vector<2x128xf32>
    %309 = math.exp %308 : vector<2x128xf32>
    %cst_78 = arith.constant 1.000000e+00 : f32
    %310 = vector.broadcast %cst_78 : f32 to vector<2x128xf32>
    %311 = arith.addf %310, %309 : vector<2x128xf32>
    %312 = arith.divf %310, %311 : vector<2x128xf32>
    %313 = math.tanh %307 : vector<2x128xf32>
    %314 = vector.extract_strided_slice %312 {offsets = [0, 32], sizes = [2, 32], strides = [1, 1]} : vector<2x128xf32> to vector<2x32xf32>
    %315 = arith.mulf %314, %258 : vector<2x32xf32>
    %316 = vector.extract_strided_slice %312 {offsets = [0, 0], sizes = [2, 32], strides = [1, 1]} : vector<2x128xf32> to vector<2x32xf32>
    %317 = vector.extract_strided_slice %313 {offsets = [0, 64], sizes = [2, 32], strides = [1, 1]} : vector<2x128xf32> to vector<2x32xf32>
    %318 = arith.mulf %316, %317 : vector<2x32xf32>
    %319 = arith.addf %315, %318 : vector<2x32xf32>
    %320 = vector.extract_strided_slice %312 {offsets = [0, 96], sizes = [2, 32], strides = [1, 1]} : vector<2x128xf32> to vector<2x32xf32>
    %321 = math.tanh %319 : vector<2x32xf32>
    %322 = arith.mulf %320, %321 : vector<2x32xf32>
    %323 = arith.truncf %322 : vector<2x32xf32> to vector<2x32xbf16>
    %c0_79 = arith.constant 0 : index
    %c0_80 = arith.constant 0 : index
    %324 = vector.load %arg10[%c0_79, %c0_80] : memref<32x128xbf16, #tpu.memory_space<vmem>>, vector<32x128xbf16>
    %cst_81 = arith.constant dense<0.000000e+00> : vector<2x128xf32>
    %325 = tpu.matmul %323, %324, %cst_81 {dimension_numbers = #tpu.dot_dimension_numbers<[1], [0], [0], [1], [0, 0, 1, 1], [], []>} : vector<2x32xbf16>, vector<32x128xbf16>, vector<2x128xf32> -> vector<2x128xf32>
    %326 = arith.addf %325, %218 : vector<2x128xf32>
    %cst_82 = arith.constant dense<0xFF800000> : vector<2xf32>
    %327 = vector.multi_reduction <maximumf>, %326, %cst_82 [1] : vector<2x128xf32> to vector<2xf32>
    %328 = vector.shape_cast %327 : vector<2xf32> to vector<2x1xf32>
    %329 = vector.broadcast %328 : vector<2x1xf32> to vector<2x128xf32>
    %330 = arith.subf %326, %329 : vector<2x128xf32>
    %331 = math.exp %330 : vector<2x128xf32>
    %cst_83 = arith.constant dense<0.000000e+00> : vector<2xf32>
    %332 = vector.multi_reduction <add>, %331, %cst_83 [1] : vector<2x128xf32> to vector<2xf32>
    %333 = vector.shape_cast %332 : vector<2xf32> to vector<2x1xf32>
    %334 = math.log %333 : vector<2x1xf32>
    %335 = vector.extract_strided_slice %220 {offsets = [0, 1], sizes = [2, 1], strides = [1, 1]} : vector<2x7xi32> to vector<2x1xi32>
    %336 = vector.broadcast %335 : vector<2x1xi32> to vector<2x128xi32>
    %337 = arith.cmpi eq, %219, %336 : vector<2x128xi32>
    %cst_84 = arith.constant 0.000000e+00 : f32
    %338 = vector.broadcast %cst_84 : f32 to vector<2x128xf32>
    %339 = arith.select %337, %330, %338 : vector<2x128xi1>, vector<2x128xf32>
    %cst_85 = arith.constant dense<0.000000e+00> : vector<2xf32>
    %340 = vector.multi_reduction <add>, %339, %cst_85 [1] : vector<2x128xf32> to vector<2xf32>
    %341 = vector.shape_cast %340 : vector<2xf32> to vector<2x1xf32>
    %342 = arith.subf %334, %341 : vector<2x1xf32>
    %343 = arith.addf %282, %342 : vector<2x1xf32>
    %344 = vector.extract_strided_slice %212 {offsets = [4, 0], sizes = [2, 128], strides = [1, 1]} : vector<14x128xf32> to vector<2x128xf32>
    %345 = arith.truncf %302 : vector<2x32xf32> to vector<2x32xbf16>
    %c0_86 = arith.constant 0 : index
    %c0_87 = arith.constant 0 : index
    %346 = vector.load %arg6[%c0_86, %c0_87] : memref<32x128xbf16, #tpu.memory_space<vmem>>, vector<32x128xbf16>
    %cst_88 = arith.constant dense<0.000000e+00> : vector<2x128xf32>
    %347 = tpu.matmul %345, %346, %cst_88 {dimension_numbers = #tpu.dot_dimension_numbers<[1], [0], [0], [1], [0, 0, 1, 1], [], []>} : vector<2x32xbf16>, vector<32x128xbf16>, vector<2x128xf32> -> vector<2x128xf32>
    %348 = arith.addf %344, %347 : vector<2x128xf32>
    %349 = arith.negf %348 : vector<2x128xf32>
    %350 = math.exp %349 : vector<2x128xf32>
    %cst_89 = arith.constant 1.000000e+00 : f32
    %351 = vector.broadcast %cst_89 : f32 to vector<2x128xf32>
    %352 = arith.addf %351, %350 : vector<2x128xf32>
    %353 = arith.divf %351, %352 : vector<2x128xf32>
    %354 = math.tanh %348 : vector<2x128xf32>
    %355 = vector.extract_strided_slice %353 {offsets = [0, 32], sizes = [2, 32], strides = [1, 1]} : vector<2x128xf32> to vector<2x32xf32>
    %356 = arith.mulf %355, %299 : vector<2x32xf32>
    %357 = vector.extract_strided_slice %353 {offsets = [0, 0], sizes = [2, 32], strides = [1, 1]} : vector<2x128xf32> to vector<2x32xf32>
    %358 = vector.extract_strided_slice %354 {offsets = [0, 64], sizes = [2, 32], strides = [1, 1]} : vector<2x128xf32> to vector<2x32xf32>
    %359 = arith.mulf %357, %358 : vector<2x32xf32>
    %360 = arith.addf %356, %359 : vector<2x32xf32>
    %361 = vector.extract_strided_slice %353 {offsets = [0, 96], sizes = [2, 32], strides = [1, 1]} : vector<2x128xf32> to vector<2x32xf32>
    %362 = math.tanh %360 : vector<2x32xf32>
    %363 = arith.mulf %361, %362 : vector<2x32xf32>
    %364 = tpu.concatenate %363, %322 in 1 : vector<2x32xf32>, vector<2x32xf32> -> vector<2x64xf32>
    %365 = arith.truncf %364 : vector<2x64xf32> to vector<2x64xbf16>
    %c0_90 = arith.constant 0 : index
    %c0_91 = arith.constant 0 : index
    %366 = vector.load %arg8[%c0_90, %c0_91] : memref<64x128xbf16, #tpu.memory_space<vmem>>, vector<64x128xbf16>
    %cst_92 = arith.constant dense<0.000000e+00> : vector<2x128xf32>
    %367 = tpu.matmul %365, %366, %cst_92 {dimension_numbers = #tpu.dot_dimension_numbers<[1], [0], [0], [1], [0, 0, 1, 1], [], []>} : vector<2x64xbf16>, vector<64x128xbf16>, vector<2x128xf32> -> vector<2x128xf32>
    %368 = arith.addf %367, %215 : vector<2x128xf32>
    %369 = arith.negf %368 : vector<2x128xf32>
    %370 = math.exp %369 : vector<2x128xf32>
    %cst_93 = arith.constant 1.000000e+00 : f32
    %371 = vector.broadcast %cst_93 : f32 to vector<2x128xf32>
    %372 = arith.addf %371, %370 : vector<2x128xf32>
    %373 = arith.divf %371, %372 : vector<2x128xf32>
    %374 = math.tanh %368 : vector<2x128xf32>
    %375 = vector.extract_strided_slice %373 {offsets = [0, 32], sizes = [2, 32], strides = [1, 1]} : vector<2x128xf32> to vector<2x32xf32>
    %376 = arith.mulf %375, %319 : vector<2x32xf32>
    %377 = vector.extract_strided_slice %373 {offsets = [0, 0], sizes = [2, 32], strides = [1, 1]} : vector<2x128xf32> to vector<2x32xf32>
    %378 = vector.extract_strided_slice %374 {offsets = [0, 64], sizes = [2, 32], strides = [1, 1]} : vector<2x128xf32> to vector<2x32xf32>
    %379 = arith.mulf %377, %378 : vector<2x32xf32>
    %380 = arith.addf %376, %379 : vector<2x32xf32>
    %381 = vector.extract_strided_slice %373 {offsets = [0, 96], sizes = [2, 32], strides = [1, 1]} : vector<2x128xf32> to vector<2x32xf32>
    %382 = math.tanh %380 : vector<2x32xf32>
    %383 = arith.mulf %381, %382 : vector<2x32xf32>
    %384 = arith.truncf %383 : vector<2x32xf32> to vector<2x32xbf16>
    %c0_94 = arith.constant 0 : index
    %c0_95 = arith.constant 0 : index
    %385 = vector.load %arg10[%c0_94, %c0_95] : memref<32x128xbf16, #tpu.memory_space<vmem>>, vector<32x128xbf16>
    %cst_96 = arith.constant dense<0.000000e+00> : vector<2x128xf32>
    %386 = tpu.matmul %384, %385, %cst_96 {dimension_numbers = #tpu.dot_dimension_numbers<[1], [0], [0], [1], [0, 0, 1, 1], [], []>} : vector<2x32xbf16>, vector<32x128xbf16>, vector<2x128xf32> -> vector<2x128xf32>
    %387 = arith.addf %386, %218 : vector<2x128xf32>
    %cst_97 = arith.constant dense<0xFF800000> : vector<2xf32>
    %388 = vector.multi_reduction <maximumf>, %387, %cst_97 [1] : vector<2x128xf32> to vector<2xf32>
    %389 = vector.shape_cast %388 : vector<2xf32> to vector<2x1xf32>
    %390 = vector.broadcast %389 : vector<2x1xf32> to vector<2x128xf32>
    %391 = arith.subf %387, %390 : vector<2x128xf32>
    %392 = math.exp %391 : vector<2x128xf32>
    %cst_98 = arith.constant dense<0.000000e+00> : vector<2xf32>
    %393 = vector.multi_reduction <add>, %392, %cst_98 [1] : vector<2x128xf32> to vector<2xf32>
    %394 = vector.shape_cast %393 : vector<2xf32> to vector<2x1xf32>
    %395 = math.log %394 : vector<2x1xf32>
    %396 = vector.extract_strided_slice %220 {offsets = [0, 2], sizes = [2, 1], strides = [1, 1]} : vector<2x7xi32> to vector<2x1xi32>
    %397 = vector.broadcast %396 : vector<2x1xi32> to vector<2x128xi32>
    %398 = arith.cmpi eq, %219, %397 : vector<2x128xi32>
    %cst_99 = arith.constant 0.000000e+00 : f32
    %399 = vector.broadcast %cst_99 : f32 to vector<2x128xf32>
    %400 = arith.select %398, %391, %399 : vector<2x128xi1>, vector<2x128xf32>
    %cst_100 = arith.constant dense<0.000000e+00> : vector<2xf32>
    %401 = vector.multi_reduction <add>, %400, %cst_100 [1] : vector<2x128xf32> to vector<2xf32>
    %402 = vector.shape_cast %401 : vector<2xf32> to vector<2x1xf32>
    %403 = arith.subf %395, %402 : vector<2x1xf32>
    %404 = arith.addf %343, %403 : vector<2x1xf32>
    %405 = vector.extract_strided_slice %212 {offsets = [6, 0], sizes = [2, 128], strides = [1, 1]} : vector<14x128xf32> to vector<2x128xf32>
    %406 = arith.truncf %363 : vector<2x32xf32> to vector<2x32xbf16>
    %c0_101 = arith.constant 0 : index
    %c0_102 = arith.constant 0 : index
    %407 = vector.load %arg6[%c0_101, %c0_102] : memref<32x128xbf16, #tpu.memory_space<vmem>>, vector<32x128xbf16>
    %cst_103 = arith.constant dense<0.000000e+00> : vector<2x128xf32>
    %408 = tpu.matmul %406, %407, %cst_103 {dimension_numbers = #tpu.dot_dimension_numbers<[1], [0], [0], [1], [0, 0, 1, 1], [], []>} : vector<2x32xbf16>, vector<32x128xbf16>, vector<2x128xf32> -> vector<2x128xf32>
    %409 = arith.addf %405, %408 : vector<2x128xf32>
    %410 = arith.negf %409 : vector<2x128xf32>
    %411 = math.exp %410 : vector<2x128xf32>
    %cst_104 = arith.constant 1.000000e+00 : f32
    %412 = vector.broadcast %cst_104 : f32 to vector<2x128xf32>
    %413 = arith.addf %412, %411 : vector<2x128xf32>
    %414 = arith.divf %412, %413 : vector<2x128xf32>
    %415 = math.tanh %409 : vector<2x128xf32>
    %416 = vector.extract_strided_slice %414 {offsets = [0, 32], sizes = [2, 32], strides = [1, 1]} : vector<2x128xf32> to vector<2x32xf32>
    %417 = arith.mulf %416, %360 : vector<2x32xf32>
    %418 = vector.extract_strided_slice %414 {offsets = [0, 0], sizes = [2, 32], strides = [1, 1]} : vector<2x128xf32> to vector<2x32xf32>
    %419 = vector.extract_strided_slice %415 {offsets = [0, 64], sizes = [2, 32], strides = [1, 1]} : vector<2x128xf32> to vector<2x32xf32>
    %420 = arith.mulf %418, %419 : vector<2x32xf32>
    %421 = arith.addf %417, %420 : vector<2x32xf32>
    %422 = vector.extract_strided_slice %414 {offsets = [0, 96], sizes = [2, 32], strides = [1, 1]} : vector<2x128xf32> to vector<2x32xf32>
    %423 = math.tanh %421 : vector<2x32xf32>
    %424 = arith.mulf %422, %423 : vector<2x32xf32>
    %425 = tpu.concatenate %424, %383 in 1 : vector<2x32xf32>, vector<2x32xf32> -> vector<2x64xf32>
    %426 = arith.truncf %425 : vector<2x64xf32> to vector<2x64xbf16>
    %c0_105 = arith.constant 0 : index
    %c0_106 = arith.constant 0 : index
    %427 = vector.load %arg8[%c0_105, %c0_106] : memref<64x128xbf16, #tpu.memory_space<vmem>>, vector<64x128xbf16>
    %cst_107 = arith.constant dense<0.000000e+00> : vector<2x128xf32>
    %428 = tpu.matmul %426, %427, %cst_107 {dimension_numbers = #tpu.dot_dimension_numbers<[1], [0], [0], [1], [0, 0, 1, 1], [], []>} : vector<2x64xbf16>, vector<64x128xbf16>, vector<2x128xf32> -> vector<2x128xf32>
    %429 = arith.addf %428, %215 : vector<2x128xf32>
    %430 = arith.negf %429 : vector<2x128xf32>
    %431 = math.exp %430 : vector<2x128xf32>
    %cst_108 = arith.constant 1.000000e+00 : f32
    %432 = vector.broadcast %cst_108 : f32 to vector<2x128xf32>
    %433 = arith.addf %432, %431 : vector<2x128xf32>
    %434 = arith.divf %432, %433 : vector<2x128xf32>
    %435 = math.tanh %429 : vector<2x128xf32>
    %436 = vector.extract_strided_slice %434 {offsets = [0, 32], sizes = [2, 32], strides = [1, 1]} : vector<2x128xf32> to vector<2x32xf32>
    %437 = arith.mulf %436, %380 : vector<2x32xf32>
    %438 = vector.extract_strided_slice %434 {offsets = [0, 0], sizes = [2, 32], strides = [1, 1]} : vector<2x128xf32> to vector<2x32xf32>
    %439 = vector.extract_strided_slice %435 {offsets = [0, 64], sizes = [2, 32], strides = [1, 1]} : vector<2x128xf32> to vector<2x32xf32>
    %440 = arith.mulf %438, %439 : vector<2x32xf32>
    %441 = arith.addf %437, %440 : vector<2x32xf32>
    %442 = vector.extract_strided_slice %434 {offsets = [0, 96], sizes = [2, 32], strides = [1, 1]} : vector<2x128xf32> to vector<2x32xf32>
    %443 = math.tanh %441 : vector<2x32xf32>
    %444 = arith.mulf %442, %443 : vector<2x32xf32>
    %445 = arith.truncf %444 : vector<2x32xf32> to vector<2x32xbf16>
    %c0_109 = arith.constant 0 : index
    %c0_110 = arith.constant 0 : index
    %446 = vector.load %arg10[%c0_109, %c0_110] : memref<32x128xbf16, #tpu.memory_space<vmem>>, vector<32x128xbf16>
    %cst_111 = arith.constant dense<0.000000e+00> : vector<2x128xf32>
    %447 = tpu.matmul %445, %446, %cst_111 {dimension_numbers = #tpu.dot_dimension_numbers<[1], [0], [0], [1], [0, 0, 1, 1], [], []>} : vector<2x32xbf16>, vector<32x128xbf16>, vector<2x128xf32> -> vector<2x128xf32>
    %448 = arith.addf %447, %218 : vector<2x128xf32>
    %cst_112 = arith.constant dense<0xFF800000> : vector<2xf32>
    %449 = vector.multi_reduction <maximumf>, %448, %cst_112 [1] : vector<2x128xf32> to vector<2xf32>
    %450 = vector.shape_cast %449 : vector<2xf32> to vector<2x1xf32>
    %451 = vector.broadcast %450 : vector<2x1xf32> to vector<2x128xf32>
    %452 = arith.subf %448, %451 : vector<2x128xf32>
    %453 = math.exp %452 : vector<2x128xf32>
    %cst_113 = arith.constant dense<0.000000e+00> : vector<2xf32>
    %454 = vector.multi_reduction <add>, %453, %cst_113 [1] : vector<2x128xf32> to vector<2xf32>
    %455 = vector.shape_cast %454 : vector<2xf32> to vector<2x1xf32>
    %456 = math.log %455 : vector<2x1xf32>
    %457 = vector.extract_strided_slice %220 {offsets = [0, 3], sizes = [2, 1], strides = [1, 1]} : vector<2x7xi32> to vector<2x1xi32>
    %458 = vector.broadcast %457 : vector<2x1xi32> to vector<2x128xi32>
    %459 = arith.cmpi eq, %219, %458 : vector<2x128xi32>
    %cst_114 = arith.constant 0.000000e+00 : f32
    %460 = vector.broadcast %cst_114 : f32 to vector<2x128xf32>
    %461 = arith.select %459, %452, %460 : vector<2x128xi1>, vector<2x128xf32>
    %cst_115 = arith.constant dense<0.000000e+00> : vector<2xf32>
    %462 = vector.multi_reduction <add>, %461, %cst_115 [1] : vector<2x128xf32> to vector<2xf32>
    %463 = vector.shape_cast %462 : vector<2xf32> to vector<2x1xf32>
    %464 = arith.subf %456, %463 : vector<2x1xf32>
    %465 = arith.addf %404, %464 : vector<2x1xf32>
    %466 = vector.extract_strided_slice %212 {offsets = [8, 0], sizes = [2, 128], strides = [1, 1]} : vector<14x128xf32> to vector<2x128xf32>
    %467 = arith.truncf %424 : vector<2x32xf32> to vector<2x32xbf16>
    %c0_116 = arith.constant 0 : index
    %c0_117 = arith.constant 0 : index
    %468 = vector.load %arg6[%c0_116, %c0_117] : memref<32x128xbf16, #tpu.memory_space<vmem>>, vector<32x128xbf16>
    %cst_118 = arith.constant dense<0.000000e+00> : vector<2x128xf32>
    %469 = tpu.matmul %467, %468, %cst_118 {dimension_numbers = #tpu.dot_dimension_numbers<[1], [0], [0], [1], [0, 0, 1, 1], [], []>} : vector<2x32xbf16>, vector<32x128xbf16>, vector<2x128xf32> -> vector<2x128xf32>
    %470 = arith.addf %466, %469 : vector<2x128xf32>
    %471 = arith.negf %470 : vector<2x128xf32>
    %472 = math.exp %471 : vector<2x128xf32>
    %cst_119 = arith.constant 1.000000e+00 : f32
    %473 = vector.broadcast %cst_119 : f32 to vector<2x128xf32>
    %474 = arith.addf %473, %472 : vector<2x128xf32>
    %475 = arith.divf %473, %474 : vector<2x128xf32>
    %476 = math.tanh %470 : vector<2x128xf32>
    %477 = vector.extract_strided_slice %475 {offsets = [0, 32], sizes = [2, 32], strides = [1, 1]} : vector<2x128xf32> to vector<2x32xf32>
    %478 = arith.mulf %477, %421 : vector<2x32xf32>
    %479 = vector.extract_strided_slice %475 {offsets = [0, 0], sizes = [2, 32], strides = [1, 1]} : vector<2x128xf32> to vector<2x32xf32>
    %480 = vector.extract_strided_slice %476 {offsets = [0, 64], sizes = [2, 32], strides = [1, 1]} : vector<2x128xf32> to vector<2x32xf32>
    %481 = arith.mulf %479, %480 : vector<2x32xf32>
    %482 = arith.addf %478, %481 : vector<2x32xf32>
    %483 = vector.extract_strided_slice %475 {offsets = [0, 96], sizes = [2, 32], strides = [1, 1]} : vector<2x128xf32> to vector<2x32xf32>
    %484 = math.tanh %482 : vector<2x32xf32>
    %485 = arith.mulf %483, %484 : vector<2x32xf32>
    %486 = tpu.concatenate %485, %444 in 1 : vector<2x32xf32>, vector<2x32xf32> -> vector<2x64xf32>
    %487 = arith.truncf %486 : vector<2x64xf32> to vector<2x64xbf16>
    %c0_120 = arith.constant 0 : index
    %c0_121 = arith.constant 0 : index
    %488 = vector.load %arg8[%c0_120, %c0_121] : memref<64x128xbf16, #tpu.memory_space<vmem>>, vector<64x128xbf16>
    %cst_122 = arith.constant dense<0.000000e+00> : vector<2x128xf32>
    %489 = tpu.matmul %487, %488, %cst_122 {dimension_numbers = #tpu.dot_dimension_numbers<[1], [0], [0], [1], [0, 0, 1, 1], [], []>} : vector<2x64xbf16>, vector<64x128xbf16>, vector<2x128xf32> -> vector<2x128xf32>
    %490 = arith.addf %489, %215 : vector<2x128xf32>
    %491 = arith.negf %490 : vector<2x128xf32>
    %492 = math.exp %491 : vector<2x128xf32>
    %cst_123 = arith.constant 1.000000e+00 : f32
    %493 = vector.broadcast %cst_123 : f32 to vector<2x128xf32>
    %494 = arith.addf %493, %492 : vector<2x128xf32>
    %495 = arith.divf %493, %494 : vector<2x128xf32>
    %496 = math.tanh %490 : vector<2x128xf32>
    %497 = vector.extract_strided_slice %495 {offsets = [0, 32], sizes = [2, 32], strides = [1, 1]} : vector<2x128xf32> to vector<2x32xf32>
    %498 = arith.mulf %497, %441 : vector<2x32xf32>
    %499 = vector.extract_strided_slice %495 {offsets = [0, 0], sizes = [2, 32], strides = [1, 1]} : vector<2x128xf32> to vector<2x32xf32>
    %500 = vector.extract_strided_slice %496 {offsets = [0, 64], sizes = [2, 32], strides = [1, 1]} : vector<2x128xf32> to vector<2x32xf32>
    %501 = arith.mulf %499, %500 : vector<2x32xf32>
    %502 = arith.addf %498, %501 : vector<2x32xf32>
    %503 = vector.extract_strided_slice %495 {offsets = [0, 96], sizes = [2, 32], strides = [1, 1]} : vector<2x128xf32> to vector<2x32xf32>
    %504 = math.tanh %502 : vector<2x32xf32>
    %505 = arith.mulf %503, %504 : vector<2x32xf32>
    %506 = arith.truncf %505 : vector<2x32xf32> to vector<2x32xbf16>
    %c0_124 = arith.constant 0 : index
    %c0_125 = arith.constant 0 : index
    %507 = vector.load %arg10[%c0_124, %c0_125] : memref<32x128xbf16, #tpu.memory_space<vmem>>, vector<32x128xbf16>
    %cst_126 = arith.constant dense<0.000000e+00> : vector<2x128xf32>
    %508 = tpu.matmul %506, %507, %cst_126 {dimension_numbers = #tpu.dot_dimension_numbers<[1], [0], [0], [1], [0, 0, 1, 1], [], []>} : vector<2x32xbf16>, vector<32x128xbf16>, vector<2x128xf32> -> vector<2x128xf32>
    %509 = arith.addf %508, %218 : vector<2x128xf32>
    %cst_127 = arith.constant dense<0xFF800000> : vector<2xf32>
    %510 = vector.multi_reduction <maximumf>, %509, %cst_127 [1] : vector<2x128xf32> to vector<2xf32>
    %511 = vector.shape_cast %510 : vector<2xf32> to vector<2x1xf32>
    %512 = vector.broadcast %511 : vector<2x1xf32> to vector<2x128xf32>
    %513 = arith.subf %509, %512 : vector<2x128xf32>
    %514 = math.exp %513 : vector<2x128xf32>
    %cst_128 = arith.constant dense<0.000000e+00> : vector<2xf32>
    %515 = vector.multi_reduction <add>, %514, %cst_128 [1] : vector<2x128xf32> to vector<2xf32>
    %516 = vector.shape_cast %515 : vector<2xf32> to vector<2x1xf32>
    %517 = math.log %516 : vector<2x1xf32>
    %518 = vector.extract_strided_slice %220 {offsets = [0, 4], sizes = [2, 1], strides = [1, 1]} : vector<2x7xi32> to vector<2x1xi32>
    %519 = vector.broadcast %518 : vector<2x1xi32> to vector<2x128xi32>
    %520 = arith.cmpi eq, %219, %519 : vector<2x128xi32>
    %cst_129 = arith.constant 0.000000e+00 : f32
    %521 = vector.broadcast %cst_129 : f32 to vector<2x128xf32>
    %522 = arith.select %520, %513, %521 : vector<2x128xi1>, vector<2x128xf32>
    %cst_130 = arith.constant dense<0.000000e+00> : vector<2xf32>
    %523 = vector.multi_reduction <add>, %522, %cst_130 [1] : vector<2x128xf32> to vector<2xf32>
    %524 = vector.shape_cast %523 : vector<2xf32> to vector<2x1xf32>
    %525 = arith.subf %517, %524 : vector<2x1xf32>
    %526 = arith.addf %465, %525 : vector<2x1xf32>
    %527 = vector.extract_strided_slice %212 {offsets = [10, 0], sizes = [2, 128], strides = [1, 1]} : vector<14x128xf32> to vector<2x128xf32>
    %528 = arith.truncf %485 : vector<2x32xf32> to vector<2x32xbf16>
    %c0_131 = arith.constant 0 : index
    %c0_132 = arith.constant 0 : index
    %529 = vector.load %arg6[%c0_131, %c0_132] : memref<32x128xbf16, #tpu.memory_space<vmem>>, vector<32x128xbf16>
    %cst_133 = arith.constant dense<0.000000e+00> : vector<2x128xf32>
    %530 = tpu.matmul %528, %529, %cst_133 {dimension_numbers = #tpu.dot_dimension_numbers<[1], [0], [0], [1], [0, 0, 1, 1], [], []>} : vector<2x32xbf16>, vector<32x128xbf16>, vector<2x128xf32> -> vector<2x128xf32>
    %531 = arith.addf %527, %530 : vector<2x128xf32>
    %532 = arith.negf %531 : vector<2x128xf32>
    %533 = math.exp %532 : vector<2x128xf32>
    %cst_134 = arith.constant 1.000000e+00 : f32
    %534 = vector.broadcast %cst_134 : f32 to vector<2x128xf32>
    %535 = arith.addf %534, %533 : vector<2x128xf32>
    %536 = arith.divf %534, %535 : vector<2x128xf32>
    %537 = math.tanh %531 : vector<2x128xf32>
    %538 = vector.extract_strided_slice %536 {offsets = [0, 32], sizes = [2, 32], strides = [1, 1]} : vector<2x128xf32> to vector<2x32xf32>
    %539 = arith.mulf %538, %482 : vector<2x32xf32>
    %540 = vector.extract_strided_slice %536 {offsets = [0, 0], sizes = [2, 32], strides = [1, 1]} : vector<2x128xf32> to vector<2x32xf32>
    %541 = vector.extract_strided_slice %537 {offsets = [0, 64], sizes = [2, 32], strides = [1, 1]} : vector<2x128xf32> to vector<2x32xf32>
    %542 = arith.mulf %540, %541 : vector<2x32xf32>
    %543 = arith.addf %539, %542 : vector<2x32xf32>
    %544 = vector.extract_strided_slice %536 {offsets = [0, 96], sizes = [2, 32], strides = [1, 1]} : vector<2x128xf32> to vector<2x32xf32>
    %545 = math.tanh %543 : vector<2x32xf32>
    %546 = arith.mulf %544, %545 : vector<2x32xf32>
    %547 = tpu.concatenate %546, %505 in 1 : vector<2x32xf32>, vector<2x32xf32> -> vector<2x64xf32>
    %548 = arith.truncf %547 : vector<2x64xf32> to vector<2x64xbf16>
    %c0_135 = arith.constant 0 : index
    %c0_136 = arith.constant 0 : index
    %549 = vector.load %arg8[%c0_135, %c0_136] : memref<64x128xbf16, #tpu.memory_space<vmem>>, vector<64x128xbf16>
    %cst_137 = arith.constant dense<0.000000e+00> : vector<2x128xf32>
    %550 = tpu.matmul %548, %549, %cst_137 {dimension_numbers = #tpu.dot_dimension_numbers<[1], [0], [0], [1], [0, 0, 1, 1], [], []>} : vector<2x64xbf16>, vector<64x128xbf16>, vector<2x128xf32> -> vector<2x128xf32>
    %551 = arith.addf %550, %215 : vector<2x128xf32>
    %552 = arith.negf %551 : vector<2x128xf32>
    %553 = math.exp %552 : vector<2x128xf32>
    %cst_138 = arith.constant 1.000000e+00 : f32
    %554 = vector.broadcast %cst_138 : f32 to vector<2x128xf32>
    %555 = arith.addf %554, %553 : vector<2x128xf32>
    %556 = arith.divf %554, %555 : vector<2x128xf32>
    %557 = math.tanh %551 : vector<2x128xf32>
    %558 = vector.extract_strided_slice %556 {offsets = [0, 32], sizes = [2, 32], strides = [1, 1]} : vector<2x128xf32> to vector<2x32xf32>
    %559 = arith.mulf %558, %502 : vector<2x32xf32>
    %560 = vector.extract_strided_slice %556 {offsets = [0, 0], sizes = [2, 32], strides = [1, 1]} : vector<2x128xf32> to vector<2x32xf32>
    %561 = vector.extract_strided_slice %557 {offsets = [0, 64], sizes = [2, 32], strides = [1, 1]} : vector<2x128xf32> to vector<2x32xf32>
    %562 = arith.mulf %560, %561 : vector<2x32xf32>
    %563 = arith.addf %559, %562 : vector<2x32xf32>
    %564 = vector.extract_strided_slice %556 {offsets = [0, 96], sizes = [2, 32], strides = [1, 1]} : vector<2x128xf32> to vector<2x32xf32>
    %565 = math.tanh %563 : vector<2x32xf32>
    %566 = arith.mulf %564, %565 : vector<2x32xf32>
    %567 = arith.truncf %566 : vector<2x32xf32> to vector<2x32xbf16>
    %c0_139 = arith.constant 0 : index
    %c0_140 = arith.constant 0 : index
    %568 = vector.load %arg10[%c0_139, %c0_140] : memref<32x128xbf16, #tpu.memory_space<vmem>>, vector<32x128xbf16>
    %cst_141 = arith.constant dense<0.000000e+00> : vector<2x128xf32>
    %569 = tpu.matmul %567, %568, %cst_141 {dimension_numbers = #tpu.dot_dimension_numbers<[1], [0], [0], [1], [0, 0, 1, 1], [], []>} : vector<2x32xbf16>, vector<32x128xbf16>, vector<2x128xf32> -> vector<2x128xf32>
    %570 = arith.addf %569, %218 : vector<2x128xf32>
    %cst_142 = arith.constant dense<0xFF800000> : vector<2xf32>
    %571 = vector.multi_reduction <maximumf>, %570, %cst_142 [1] : vector<2x128xf32> to vector<2xf32>
    %572 = vector.shape_cast %571 : vector<2xf32> to vector<2x1xf32>
    %573 = vector.broadcast %572 : vector<2x1xf32> to vector<2x128xf32>
    %574 = arith.subf %570, %573 : vector<2x128xf32>
    %575 = math.exp %574 : vector<2x128xf32>
    %cst_143 = arith.constant dense<0.000000e+00> : vector<2xf32>
    %576 = vector.multi_reduction <add>, %575, %cst_143 [1] : vector<2x128xf32> to vector<2xf32>
    %577 = vector.shape_cast %576 : vector<2xf32> to vector<2x1xf32>
    %578 = math.log %577 : vector<2x1xf32>
    %579 = vector.extract_strided_slice %220 {offsets = [0, 5], sizes = [2, 1], strides = [1, 1]} : vector<2x7xi32> to vector<2x1xi32>
    %580 = vector.broadcast %579 : vector<2x1xi32> to vector<2x128xi32>
    %581 = arith.cmpi eq, %219, %580 : vector<2x128xi32>
    %cst_144 = arith.constant 0.000000e+00 : f32
    %582 = vector.broadcast %cst_144 : f32 to vector<2x128xf32>
    %583 = arith.select %581, %574, %582 : vector<2x128xi1>, vector<2x128xf32>
    %cst_145 = arith.constant dense<0.000000e+00> : vector<2xf32>
    %584 = vector.multi_reduction <add>, %583, %cst_145 [1] : vector<2x128xf32> to vector<2xf32>
    %585 = vector.shape_cast %584 : vector<2xf32> to vector<2x1xf32>
    %586 = arith.subf %578, %585 : vector<2x1xf32>
    %587 = arith.addf %526, %586 : vector<2x1xf32>
    %588 = vector.extract_strided_slice %212 {offsets = [12, 0], sizes = [2, 128], strides = [1, 1]} : vector<14x128xf32> to vector<2x128xf32>
    %589 = arith.truncf %546 : vector<2x32xf32> to vector<2x32xbf16>
    %c0_146 = arith.constant 0 : index
    %c0_147 = arith.constant 0 : index
    %590 = vector.load %arg6[%c0_146, %c0_147] : memref<32x128xbf16, #tpu.memory_space<vmem>>, vector<32x128xbf16>
    %cst_148 = arith.constant dense<0.000000e+00> : vector<2x128xf32>
    %591 = tpu.matmul %589, %590, %cst_148 {dimension_numbers = #tpu.dot_dimension_numbers<[1], [0], [0], [1], [0, 0, 1, 1], [], []>} : vector<2x32xbf16>, vector<32x128xbf16>, vector<2x128xf32> -> vector<2x128xf32>
    %592 = arith.addf %588, %591 : vector<2x128xf32>
    %593 = arith.negf %592 : vector<2x128xf32>
    %594 = math.exp %593 : vector<2x128xf32>
    %cst_149 = arith.constant 1.000000e+00 : f32
    %595 = vector.broadcast %cst_149 : f32 to vector<2x128xf32>
    %596 = arith.addf %595, %594 : vector<2x128xf32>
    %597 = arith.divf %595, %596 : vector<2x128xf32>
    %598 = math.tanh %592 : vector<2x128xf32>
    %599 = vector.extract_strided_slice %597 {offsets = [0, 32], sizes = [2, 32], strides = [1, 1]} : vector<2x128xf32> to vector<2x32xf32>
    %600 = arith.mulf %599, %543 : vector<2x32xf32>
    %601 = vector.extract_strided_slice %597 {offsets = [0, 0], sizes = [2, 32], strides = [1, 1]} : vector<2x128xf32> to vector<2x32xf32>
    %602 = vector.extract_strided_slice %598 {offsets = [0, 64], sizes = [2, 32], strides = [1, 1]} : vector<2x128xf32> to vector<2x32xf32>
    %603 = arith.mulf %601, %602 : vector<2x32xf32>
    %604 = arith.addf %600, %603 : vector<2x32xf32>
    %605 = vector.extract_strided_slice %597 {offsets = [0, 96], sizes = [2, 32], strides = [1, 1]} : vector<2x128xf32> to vector<2x32xf32>
    %606 = math.tanh %604 : vector<2x32xf32>
    %607 = arith.mulf %605, %606 : vector<2x32xf32>
    %608 = tpu.concatenate %607, %566 in 1 : vector<2x32xf32>, vector<2x32xf32> -> vector<2x64xf32>
    %609 = arith.truncf %608 : vector<2x64xf32> to vector<2x64xbf16>
    %c0_150 = arith.constant 0 : index
    %c0_151 = arith.constant 0 : index
    %610 = vector.load %arg8[%c0_150, %c0_151] : memref<64x128xbf16, #tpu.memory_space<vmem>>, vector<64x128xbf16>
    %cst_152 = arith.constant dense<0.000000e+00> : vector<2x128xf32>
    %611 = tpu.matmul %609, %610, %cst_152 {dimension_numbers = #tpu.dot_dimension_numbers<[1], [0], [0], [1], [0, 0, 1, 1], [], []>} : vector<2x64xbf16>, vector<64x128xbf16>, vector<2x128xf32> -> vector<2x128xf32>
    %612 = arith.addf %611, %215 : vector<2x128xf32>
    %613 = arith.negf %612 : vector<2x128xf32>
    %614 = math.exp %613 : vector<2x128xf32>
    %cst_153 = arith.constant 1.000000e+00 : f32
    %615 = vector.broadcast %cst_153 : f32 to vector<2x128xf32>
    %616 = arith.addf %615, %614 : vector<2x128xf32>
    %617 = arith.divf %615, %616 : vector<2x128xf32>
    %618 = math.tanh %612 : vector<2x128xf32>
    %619 = vector.extract_strided_slice %617 {offsets = [0, 32], sizes = [2, 32], strides = [1, 1]} : vector<2x128xf32> to vector<2x32xf32>
    %620 = arith.mulf %619, %563 : vector<2x32xf32>
    %621 = vector.extract_strided_slice %617 {offsets = [0, 0], sizes = [2, 32], strides = [1, 1]} : vector<2x128xf32> to vector<2x32xf32>
    %622 = vector.extract_strided_slice %618 {offsets = [0, 64], sizes = [2, 32], strides = [1, 1]} : vector<2x128xf32> to vector<2x32xf32>
    %623 = arith.mulf %621, %622 : vector<2x32xf32>
    %624 = arith.addf %620, %623 : vector<2x32xf32>
    %625 = vector.extract_strided_slice %617 {offsets = [0, 96], sizes = [2, 32], strides = [1, 1]} : vector<2x128xf32> to vector<2x32xf32>
    %626 = math.tanh %624 : vector<2x32xf32>
    %627 = arith.mulf %625, %626 : vector<2x32xf32>
    %628 = arith.truncf %627 : vector<2x32xf32> to vector<2x32xbf16>
    %c0_154 = arith.constant 0 : index
    %c0_155 = arith.constant 0 : index
    %629 = vector.load %arg10[%c0_154, %c0_155] : memref<32x128xbf16, #tpu.memory_space<vmem>>, vector<32x128xbf16>
    %cst_156 = arith.constant dense<0.000000e+00> : vector<2x128xf32>
    %630 = tpu.matmul %628, %629, %cst_156 {dimension_numbers = #tpu.dot_dimension_numbers<[1], [0], [0], [1], [0, 0, 1, 1], [], []>} : vector<2x32xbf16>, vector<32x128xbf16>, vector<2x128xf32> -> vector<2x128xf32>
    %631 = arith.addf %630, %218 : vector<2x128xf32>
    %cst_157 = arith.constant dense<0xFF800000> : vector<2xf32>
    %632 = vector.multi_reduction <maximumf>, %631, %cst_157 [1] : vector<2x128xf32> to vector<2xf32>
    %633 = vector.shape_cast %632 : vector<2xf32> to vector<2x1xf32>
    %634 = vector.broadcast %633 : vector<2x1xf32> to vector<2x128xf32>
    %635 = arith.subf %631, %634 : vector<2x128xf32>
    %636 = math.exp %635 : vector<2x128xf32>
    %cst_158 = arith.constant dense<0.000000e+00> : vector<2xf32>
    %637 = vector.multi_reduction <add>, %636, %cst_158 [1] : vector<2x128xf32> to vector<2xf32>
    %638 = vector.shape_cast %637 : vector<2xf32> to vector<2x1xf32>
    %639 = math.log %638 : vector<2x1xf32>
    %640 = vector.extract_strided_slice %220 {offsets = [0, 6], sizes = [2, 1], strides = [1, 1]} : vector<2x7xi32> to vector<2x1xi32>
    %641 = vector.broadcast %640 : vector<2x1xi32> to vector<2x128xi32>
    %642 = arith.cmpi eq, %219, %641 : vector<2x128xi32>
    %cst_159 = arith.constant 0.000000e+00 : f32
    %643 = vector.broadcast %cst_159 : f32 to vector<2x128xf32>
    %644 = arith.select %642, %635, %643 : vector<2x128xi1>, vector<2x128xf32>
    %cst_160 = arith.constant dense<0.000000e+00> : vector<2xf32>
    %645 = vector.multi_reduction <add>, %644, %cst_160 [1] : vector<2x128xf32> to vector<2xf32>
    %646 = vector.shape_cast %645 : vector<2xf32> to vector<2x1xf32>
    %647 = arith.subf %639, %646 : vector<2x1xf32>
    %648 = arith.addf %587, %647 : vector<2x1xf32>
    %cst_161 = arith.constant dense<0.000000e+00> : vector<1xf32>
    %649 = vector.multi_reduction <add>, %648, %cst_161 [0] : vector<2x1xf32> to vector<1xf32>
    %650 = vector.shape_cast %649 : vector<1xf32> to vector<1x1xf32>
    %cst_162 = arith.constant 0.0714285746 : f32
    %651 = vector.broadcast %cst_162 : f32 to vector<1x1xf32>
    %652 = arith.mulf %650, %651 : vector<1x1xf32>
    %c0_163 = arith.constant 0 : index
    %c0_164 = arith.constant 0 : index
    %653 = vector.load %arg13[%c0_163, %c0_164] : memref<1x1xf32, #tpu.memory_space<vmem>>, vector<1x1xf32>
    tpu.vector_store %arg13[%c0_163, %c0_164], %652 {strides = array<i32>} : memref<1x1xf32, #tpu.memory_space<vmem>>, vector<1x1xf32>,
    return
  }
}

</mosaic_0001>

<bundles_post_ra>
// kernel: seq2seq_forward.1
= control target key start
LH: loop header
LB: loop body
LE: loop exit
PB: predicated region body
PF: predicated region fallthrough
CT: control target
= control target key end

     0   :  { %v3290_v2 = vmov 0   ;;  %vm77_vm0 = vcmask 130048   ;;  %s4052_s0 = inlined_call_operand.vmem [shape: bf16[16,16], index: 0, kind: input, shape index: {}]   ;;  %s4053_s1 = inlined_call_operand.vmem [shape: bf16[14,16], index: 1, kind: input, shape index: {}]   ;;  %s4054_s2 = inlined_call_operand.vmem [shape: bf16[16,256], index: 2, kind: input, shape index: {}]   ;;  %s4055_s3 = inlined_call_operand.vmem [shape: bf16[64,256], index: 3, kind: input, shape index: {}]   ;;  %s4056_s4 = inlined_call_operand.vmem [shape: f32[1,256], index: 4, kind: input, shape index: {}]   ;;  %s4057_s5 = inlined_call_operand.vmem [shape: bf16[16,128], index: 5, kind: input, shape index: {}]   ;;  %s4058_s6 = inlined_call_operand.vmem [shape: bf16[32,128], index: 6, kind: input, shape index: {}]   ;;  %s4059_s7 = inlined_call_operand.vmem [shape: f32[1,128], index: 7, kind: input, shape index: {}]   ;;  %s4060_s8 = inlined_call_operand.vmem [shape: bf16[64,128], index: 8, kind: input, shape index: {}]   ;;  %s4061_s9 = inlined_call_operand.vmem [shape: f32[1,128], index: 9, kind: input, shape index: {}]   ;;  %s4062_s10 = inlined_call_operand.vmem [shape: bf16[32,128], index: 10, kind: input, shape index: {}]   ;;  %s4063_s11 = inlined_call_operand.vmem [shape: f32[1,128], index: 11, kind: input, shape index: {}]   ;;  %s4064_s12 = inlined_call_operand.vmem [shape: s32[2,7], index: 12, kind: input, shape index: {}]   ;;  %s4065_s13 = inlined_call_operand.hbm [shape: f32[1,1], index: 13, kind: output, shape index: {}]  }
   0x1   :  { %v3001_v0 = vld [vmem:[%s4054_s2 + $0x4] ss:$8 sps:$4 sm:$0xff]   ;;  %113 = vmatprep.mubr.bf16.mxu0 %v3290_v2  ;;  %245 = vmatprep.mubr.bf16.mxu1 %v3290_v2  ;;  %v3005_v3 = vld [vmem:[%s4054_s2] ss:$8 sps:$4 sm:$0xff]   ;;  %v3400_v6 = vld [vmem:[%s4055_s3 + $0x14] ss:$8 sps:$4 sm:$0xff]  }
   0x2   :  { %v3379_v1 = vld [vmem:[%s4055_s3 + $0x4] ss:$8 sps:$4 sm:$0xff]   ;;  %81 = vmatprep.subr.bf16.mxu0 %v3001_v0  ;;  %v3389_v4 = vld [vmem:[%s4055_s3] ss:$8 sps:$4 sm:$0xff]   ;;  %2994 = vset.pattern.permute.xlu0 %v3290_v2  ;;  %v3405_v7 = vld [vmem:[%s4055_s3 + $0x10] ss:$8 sps:$4 sm:$0xff]  }
   0x3   :  { %213 = vmatprep.subr.bf16.mxu1 %v3379_v1  ;;  %v3007_v5 = vld [vmem:[%s4052_s0] sm:$0xff]   ;;  %82 = vmatpush1.bf16.msra.mxu0 %v3005_v3  ;;  %v3423_v10 = vld [vmem:[%s4055_s3 + $0x34] ss:$8 sps:$4 sm:$0xff]   ;;  %v3432_v11 = vld [vmem:[%s4055_s3 + $0x30] ss:$8 sps:$4 sm:$0xff]  }
   0x4   :  { %214 = vmatpush1.bf16.msra.mxu1 %v3389_v4  ;;  %v3410_v8 = vld [vmem:[%s4055_s3 + $0x24] ss:$8 sps:$4 sm:$0xff]   ;;  %291 = vmatprep.subr.bf16.mxu0 %v3379_v1  ;;  %v3418_v9 = vld [vmem:[%s4055_s3 + $0x20] ss:$8 sps:$4 sm:$0xff]  }
   0x5   :  { %215 = vmatprep.subr.bf16.mxu1 %v3400_v6 }
   0x6   :  { %2619 = vmatmul.mubr.msk.bf16.vlgmr.msra.gmra.mrb[0].mxu0 %vm77_vm0, %v3007_v5 }
   0x7   :  { %292 = vmatpush1.bf16.msra.mxu0 %v3389_v4  ;;  %323 = vmatprep.mubr.bf16.mxu0 %v3290_v2 }
   0x8   :  { %216 = vmatpush1.bf16.msra.mxu1 %v3405_v7  ;;  %293 = vmatprep.subr.bf16.mxu0 %v3400_v6 }
   0x9   :  { %217 = vmatprep.subr.bf16.mxu1 %v3410_v8 }
   0xb   :  { %294 = vmatpush1.bf16.msra.mxu0 %v3405_v7 }
   0xc   :  { %218 = vmatpush1.bf16.msra.mxu1 %v3418_v9  ;;  %295 = vmatprep.subr.bf16.mxu0 %v3410_v8 }
   0xd   :  { %219 = vmatprep.subr.bf16.mxu1 %v3423_v10 }
   0xe   :  { %18 = vsyncpa [#allocation3], 0  ;;  %v52_v12 = vlaneseq  ;;  %v50_v16 = vld [vmem:[%s4056_s4] sm:$0x3]  ;;  %s3291_s4 = smov 64   ;;  %vm209_vm3 = vcmask 523264  }
   0xf   :  { %296 = vmatpush1.bf16.msra.mxu0 %v3418_v9  ;;  %vm3293_vm4 = vmmov 0   ;;  %vm966_vm5 = vcmask 261120   ;;  %vm1216_vm6 = vcmask 1041408   ;;  %vm2600_vm14 = vcmask 0  }
  0x10   :  { %220 = vmatpush1.bf16.msra.mxu1 %v3432_v11  ;;  %297 = vmatprep.subr.bf16.mxu0 %v3423_v10  ;;  %v53_v13 = vshrl.u32 %v52_v12, 7  ;;  %v3455_v14 = vand.u32 127, %v52_v12 }
  0x11   :  { %373 = vmatprep.subr.bf16.mxu1 %v3379_v1 }
  0x12   :  { %v54_v15 = vsub.s32 0, %v53_v13  ;;  %v58_v17 = vsub.s32 1, %v53_v13  ;;  %v126_v18 = vadd.s32 128, %v3455_v14  ;;  %v131_v21 = vand.u32 63, %v3455_v14 }
  0x13   :  { %246 = vmatmul.mubr.bf16.vlgmr.msra.gmra.mrb[0].mxu1 %v3290_v2  ;;  %298 = vmatpush1.bf16.msra.mxu0 %v3432_v11 }
  0x14   :  { %374 = vmatpush1.bf16.msra.mxu1 %v3389_v4  ;;  %405 = vmatprep.mubr.bf16.mxu1 %v3290_v2  ;;  %v55_v19 = vrot.slane %v50_v16, %v54_v15  ;;  %v59_v20 = vrot.slane %v50_v16, %v58_v17  ;;  %v138_v22 = vand.u32 63, %v126_v18  ;;  %vm3462_vm1 = vcmp.lt.s32.totalorder %v131_v21, 32 }
  0x15   :  { %375 = vmatprep.subr.bf16.mxu1 %v3400_v6  ;;  %455 = vmatprep.subr.bf16.mxu0 %v3379_v1 }
  0x16   :  { %vm3466_vm2 = vcmp.lt.s32.totalorder %v138_v22, 32 }
  0x18   :  { %376 = vmatpush1.bf16.msra.mxu1 %v3405_v7 }
  0x19   :  { %377 = vmatprep.subr.bf16.mxu1 %v3410_v8 }
  0x1c   :  { %378 = vmatpush1.bf16.msra.mxu1 %v3418_v9 }
  0x1d   :  { %379 = vmatprep.subr.bf16.mxu1 %v3423_v10 }
  0x20   :  { %380 = vmatpush1.bf16.msra.mxu1 %v3432_v11 }
  0x21   :  { %545 = vmatprep.subr.bf16.mxu1 %v3379_v1 }
  0xd9   :  { %v115_v23 = vpop.f32.mrb[0].mxu0 }
  0xda   :  { %v116_v24 = vadd.f32 %v115_v23, %v55_v19  ;;  %v117_v25 = vpop.f32.mrb[1].mxu0 }
  0xdb   :  { %v118_v26 = vadd.f32 %v117_v25, %v59_v20  ;;  %v119_v27 = vpop.f32.mrb[2].mxu0 }
  0xdc   :  { %v120_v29 = vadd.f32 %v119_v27, %v55_v19  ;;  %v121_v30 = vpop.f32.mrb[3].mxu0  ;;  %v531_v32 = vrot.slane %v116_v24, 6  ;;  %v613_v33 = vrot.slane %v116_v24, 2 }
  0xdd   :  { %v122_v34 = vadd.f32 %v121_v30, %v59_v20  ;;  %v532_v35 = vrot.slane %v118_v26, 6  ;;  %v614_v36 = vrot.slane %v118_v26, 2 }
  0xde   :  { %v155_v37 = vrot.slane %v120_v29, 6  ;;  %v278_v38 = vrot.slane %v120_v29, 2  ;;  %v3472_v39 = vsel %vm3462_vm1, %v120_v29, %v531_v32  ;;  %v3476_v40 = vsel %vm3462_vm1, %v120_v29, %v613_v33 }
  0xdf   :  { %v156_v41 = vrot.slane %v122_v34, 6  ;;  %v279_v42 = vrot.slane %v122_v34, 2  ;;  %v3480_v43 = vsel %vm3466_vm2, %v122_v34, %v532_v35  ;;  %v3484_v44 = vsel %vm3466_vm2, %v122_v34, %v614_v36 }
  0xe0   :  { %v3488_v45 = vsel %vm3462_vm1, %v116_v24, %v155_v37  ;;  %v3492_v46 = vsel %vm3462_vm1, %v116_v24, %v278_v38 }
  0xe1   :  { %v3496_v47 = vsel %vm3466_vm2, %v118_v26, %v156_v41  ;;  %v3500_v48 = vsel %vm3466_vm2, %v118_v26, %v279_v42 }
  0xe6   :  { %v247_v49 = vpop.f32.mrb[0].mxu1 }
  0xe7   :  { %v254_v50 = vadd.f32 %v247_v49, %v3488_v45  ;;  %v249_v51 = vpop.f32.mrb[1].mxu1 }
  0xe8   :  { %v251_v52 = vpop.f32.mrb[2].mxu1  ;;  %v255_v55 = vadd.f32 %v249_v51, %v3496_v47 }
  0xe9   :  { %v2628_v53 = vmul.f32 -1.442695, %v254_v50  ;;  %v252_v54 = vpop.f32.mrb[3].mxu1 }
  0xea   :  { %v2629_v61 = vmul.f32 -1.442695, %v255_v55 }
  0xeb   :  { %3027 = vpow2.f32 %v2628_v53 }
  0xec   :  { %3029 = vtanh.f32 %v255_v55 }
  0xf5   :  { %v3028_v56 = vpop.eup %3027 }
  0xf6   :  { %v262_v57 = vadd.f32 1.0, %v3028_v56  ;;  %v3030_v58 = vpop.eup %3029 }
  0xf8   :  { %3031 = vrcp.f32 %v262_v57 }
  0xf9   :  { %3033 = vpow2.f32 %v2629_v61 }
 0x102   :  { %v3032_v59 = vpop.eup %3031 }
 0x103   :  { %v270_v60 = vmul.f32 %v3032_v59, %v3030_v58  ;;  %v3034_v62 = vpop.eup %3033  ;;  %v269_v0 = vmul.f32 0.0, %v3032_v59 }
 0x104   :  { %v263_v63 = vadd.f32 1.0, %v3034_v62 }
 0x105   :  { %272 = vrot.lane.b32.xlu0 %v270_v60, %s3291_s4 }
 0x106   :  { %3035 = vrcp.f32 %v263_v63 }
 0x110   :  { %v3036_v12 = vpop.eup %3035 }
 0x177   :  { %v273_v3 = vpop.permute.xlu0 %272 }
 0x178   :  { %v275_v5 = vadd.f32 %v273_v3, %v269_v0 }
 0x17a   :  { %3037 = vtanh.f32 %v275_v5  ;;  %v354_v30 = vrot.slane %v275_v5, 6 }
 0x184   :  { %v3038_v13 = vpop.eup %3037 }
 0x185   :  { %v277_v15 = vmul.f32 %v3038_v13, %v3036_v12 }
 0x187   :  { %v284_v16 = vpack.c.bf16 %v277_v15, %v277_v15 }
 0x189   :  { %286 = vrot.lane.b32.xlu0 %v284_v16, %s3291_s4 }
 0x1fb   :  { %v287_v17 = vpop.permute.xlu0 %286 }
 0x1fc   :  { %2630 = vmatmul.mubr.msk.bf16.vlgmr.msra.gmra.mrb[4].mxu0 %vm209_vm3, %v287_v17 }
 0x1fd   :  { %456 = vmatpush1.bf16.msra.mxu0 %v3389_v4  ;;  %487 = vmatprep.mubr.bf16.mxu0 %v3290_v2 }
 0x1fe   :  { %457 = vmatprep.subr.bf16.mxu0 %v3400_v6 }
 0x201   :  { %458 = vmatpush1.bf16.msra.mxu0 %v3405_v7 }
 0x202   :  { %459 = vmatprep.subr.bf16.mxu0 %v3410_v8 }
 0x205   :  { %460 = vmatpush1.bf16.msra.mxu0 %v3418_v9 }
 0x206   :  { %461 = vmatprep.subr.bf16.mxu0 %v3423_v10 }
 0x209   :  { %462 = vmatpush1.bf16.msra.mxu0 %v3432_v11 }
 0x20a   :  { %626 = vmatprep.subr.bf16.mxu0 %v3379_v1 }
 0x2cf   :  { %v325_v18 = vpop.f32.mrb[4].mxu0 }
 0x2d0   :  { %v334_v19 = vrot.slane %v325_v18, 6  ;;  %v327_v20 = vpop.f32.mrb[5].mxu0 }
 0x2d1   :  { %v329_v21 = vpop.f32.mrb[6].mxu0  ;;  %v335_v25 = vrot.slane %v327_v20, 6 }
 0x2d2   :  { %v338_v22 = vadd.f32 %v334_v19, %v3492_v46  ;;  %v330_v23 = vpop.f32.mrb[7].mxu0 }
 0x2d3   :  { %v339_v26 = vadd.f32 %v335_v25, %v3500_v48 }
 0x2d4   :  { %v2631_v24 = vmul.f32 -1.442695, %v338_v22 }
 0x2d5   :  { %v2632_v34 = vmul.f32 -1.442695, %v339_v26 }
 0x2d6   :  { %3039 = vpow2.f32 %v2631_v24 }
 0x2d7   :  { %3041 = vtanh.f32 %v339_v26 }
 0x2e0   :  { %v3040_v27 = vpop.eup %3039 }
 0x2e1   :  { %v346_v28 = vadd.f32 1.0, %v3040_v27  ;;  %v3042_v29 = vpop.eup %3041 }
 0x2e3   :  { %3043 = vrcp.f32 %v346_v28 }
 0x2e4   :  { %3045 = vpow2.f32 %v2632_v34 }
 0x2ed   :  { %v3044_v31 = vpop.eup %3043 }
 0x2ee   :  { %v357_v32 = vmul.f32 %v3044_v31, %v3042_v29  ;;  %v356_v33 = vmul.f32 %v3044_v31, %v354_v30  ;;  %v3046_v35 = vpop.eup %3045 }
 0x2ef   :  { %v347_v36 = vadd.f32 1.0, %v3046_v35 }
 0x2f0   :  { %359 = vrot.lane.b32.xlu1 %v357_v32, %s3291_s4 }
 0x2f1   :  { %3047 = vrcp.f32 %v347_v36 }
 0x2fb   :  { %v3048_v41 = vpop.eup %3047 }
 0x362   :  { %v360_v37 = vpop.permute.xlu1 %359 }
 0x363   :  { %v362_v38 = vadd.f32 %v360_v37, %v356_v33 }
 0x365   :  { %3049 = vtanh.f32 %v362_v38  ;;  %v436_v3 = vrot.slane %v362_v38, 6 }
 0x36f   :  { %v3050_v42 = vpop.eup %3049 }
 0x370   :  { %v364_v49 = vmul.f32 %v3050_v42, %v3048_v41 }
 0x372   :  { %v365_v50 = vpack.c.bf16 %v364_v49, %v364_v49 }
 0x374   :  { %v367_v51 = vrot.slane %v365_v50, 1 }
 0x376   :  { %368 = vrot.lane.b32.xlu1 %v367_v51, %s3291_s4 }
 0x3e8   :  { %v369_v52 = vpop.permute.xlu1 %368 }
 0x3e9   :  { %2633 = vmatmul.mubr.msk.bf16.vlgmr.msra.gmra.mrb[4].mxu1 %vm209_vm3, %v369_v52 }
 0x3ea   :  { %546 = vmatpush1.bf16.msra.mxu1 %v3389_v4  ;;  %577 = vmatprep.mubr.bf16.mxu1 %v3290_v2 }
 0x3eb   :  { %547 = vmatprep.subr.bf16.mxu1 %v3400_v6 }
 0x3ee   :  { %548 = vmatpush1.bf16.msra.mxu1 %v3405_v7 }
 0x3ef   :  { %549 = vmatprep.subr.bf16.mxu1 %v3410_v8 }
 0x3f2   :  { %550 = vmatpush1.bf16.msra.mxu1 %v3418_v9 }
 0x3f3   :  { %551 = vmatprep.subr.bf16.mxu1 %v3423_v10 }
 0x3f6   :  { %552 = vmatpush1.bf16.msra.mxu1 %v3432_v11 }
 0x3f7   :  { %708 = vmatprep.subr.bf16.mxu1 %v3379_v1 }
 0x4bc   :  { %v407_v53 = vpop.f32.mrb[4].mxu1 }
 0x4bd   :  { %v416_v54 = vrot.slane %v407_v53, 4  ;;  %v409_v55 = vpop.f32.mrb[5].mxu1 }
 0x4be   :  { %v411_v56 = vpop.f32.mrb[6].mxu1  ;;  %v417_v60 = vrot.slane %v409_v55, 4 }
 0x4bf   :  { %v420_v57 = vadd.f32 %v416_v54, %v3488_v45  ;;  %v412_v58 = vpop.f32.mrb[7].mxu1 }
 0x4c0   :  { %v421_v61 = vadd.f32 %v417_v60, %v3496_v47 }
 0x4c1   :  { %v2634_v59 = vmul.f32 -1.442695, %v420_v57 }
 0x4c2   :  { %v2635_v15 = vmul.f32 -1.442695, %v421_v61 }
 0x4c3   :  { %3051 = vpow2.f32 %v2634_v59 }
 0x4c4   :  { %3053 = vtanh.f32 %v421_v61 }
 0x4cd   :  { %v3052_v62 = vpop.eup %3051 }
 0x4ce   :  { %v428_v63 = vadd.f32 1.0, %v3052_v62  ;;  %v3054_v0 = vpop.eup %3053 }
 0x4d0   :  { %3055 = vrcp.f32 %v428_v63 }
 0x4d1   :  { %3057 = vpow2.f32 %v2635_v15 }
 0x4da   :  { %v3056_v5 = vpop.eup %3055 }
 0x4db   :  { %v439_v12 = vmul.f32 %v3056_v5, %v3054_v0  ;;  %v438_v13 = vmul.f32 %v3056_v5, %v436_v3  ;;  %v3058_v45 = vpop.eup %3057 }
 0x4dc   :  { %v429_v16 = vadd.f32 1.0, %v3058_v45 }
 0x4dd   :  { %441 = vrot.lane.b32.xlu0 %v439_v12, %s3291_s4 }
 0x4de   :  { %3059 = vrcp.f32 %v429_v16 }
 0x4e8   :  { %v3060_v47 = vpop.eup %3059 }
 0x54f   :  { %v442_v17 = vpop.permute.xlu0 %441 }
 0x550   :  { %v444_v18 = vadd.f32 %v442_v17, %v438_v13 }
 0x552   :  { %3061 = vtanh.f32 %v444_v18  ;;  %v518_v36 = vrot.slane %v444_v18, 6 }
 0x55c   :  { %v3062_v19 = vpop.eup %3061 }
 0x55d   :  { %v446_v20 = vmul.f32 %v3062_v19, %v3060_v47 }
 0x55f   :  { %v447_v21 = vpack.c.bf16 %v446_v20, %v446_v20 }
 0x561   :  { %v449_v22 = vrot.slane %v447_v21, 2 }
 0x563   :  { %450 = vrot.lane.b32.xlu1 %v449_v22, %s3291_s4 }
 0x5d5   :  { %v451_v23 = vpop.permute.xlu1 %450 }
 0x5d6   :  { %2636 = vmatmul.mubr.msk.bf16.vlgmr.msra.gmra.mrb[8].mxu0 %vm209_vm3, %v451_v23 }
 0x5d7   :  { %627 = vmatpush1.bf16.msra.mxu0 %v3389_v4  ;;  %658 = vmatprep.mubr.bf16.mxu0 %v3290_v2 }
 0x5d8   :  { %628 = vmatprep.subr.bf16.mxu0 %v3400_v6 }
 0x5db   :  { %629 = vmatpush1.bf16.msra.mxu0 %v3405_v7 }
 0x5dc   :  { %630 = vmatprep.subr.bf16.mxu0 %v3410_v8 }
 0x5df   :  { %631 = vmatpush1.bf16.msra.mxu0 %v3418_v9 }
 0x5e0   :  { %632 = vmatprep.subr.bf16.mxu0 %v3423_v10 }
 0x5e3   :  { %633 = vmatpush1.bf16.msra.mxu0 %v3432_v11 }
 0x5e4   :  { %790 = vmatprep.subr.bf16.mxu0 %v3379_v1 }
 0x6a9   :  { %v489_v24 = vpop.f32.mrb[8].mxu0 }
 0x6aa   :  { %v498_v25 = vrot.slane %v489_v24, 2  ;;  %v491_v26 = vpop.f32.mrb[9].mxu0 }
 0x6ab   :  { %v493_v27 = vpop.f32.mrb[10].mxu0  ;;  %v499_v31 = vrot.slane %v491_v26, 2 }
 0x6ac   :  { %v502_v28 = vadd.f32 %v498_v25, %v3492_v46  ;;  %v494_v29 = vpop.f32.mrb[11].mxu0 }
 0x6ad   :  { %v503_v32 = vadd.f32 %v499_v31, %v3500_v48 }
 0x6ae   :  { %v2637_v30 = vmul.f32 -1.442695, %v502_v28 }
 0x6af   :  { %v2638_v41 = vmul.f32 -1.442695, %v503_v32 }
 0x6b0   :  { %3063 = vpow2.f32 %v2637_v30 }
 0x6b1   :  { %3065 = vtanh.f32 %v503_v32 }
 0x6ba   :  { %v3064_v33 = vpop.eup %3063 }
 0x6bb   :  { %v510_v34 = vadd.f32 1.0, %v3064_v33  ;;  %v3066_v35 = vpop.eup %3065 }
 0x6bd   :  { %3067 = vrcp.f32 %v510_v34 }
 0x6be   :  { %3069 = vpow2.f32 %v2638_v41 }
 0x6c7   :  { %v3068_v37 = vpop.eup %3067 }
 0x6c8   :  { %v521_v1 = vmul.f32 %v3068_v37, %v3066_v35  ;;  %v520_v38 = vmul.f32 %v3068_v37, %v518_v36  ;;  %v3070_v46 = vpop.eup %3069 }
 0x6c9   :  { %v511_v42 = vadd.f32 1.0, %v3070_v46 }
 0x6ca   :  { %523 = vrot.lane.b32.xlu0 %v521_v1, %s3291_s4 }
 0x6cb   :  { %3071 = vrcp.f32 %v511_v42 }
 0x6d5   :  { %v3072_v48 = vpop.eup %3071 }
 0x73c   :  { %v524_v49 = vpop.permute.xlu0 %523 }
 0x73d   :  { %v526_v50 = vadd.f32 %v524_v49, %v520_v38 }
 0x73f   :  { %3073 = vtanh.f32 %v526_v50  ;;  %v602_v5 = vrot.slane %v526_v50, 6 }
 0x749   :  { %v3074_v51 = vpop.eup %3073 }
 0x74a   :  { %v528_v52 = vmul.f32 %v3074_v51, %v3072_v48 }
 0x74c   :  { %v537_v53 = vpack.c.bf16 %v528_v52, %v528_v52 }
 0x74e   :  { %v539_v54 = vrot.slane %v537_v53, 3 }
 0x750   :  { %540 = vrot.lane.b32.xlu1 %v539_v54, %s3291_s4 }
 0x7c2   :  { %v541_v55 = vpop.permute.xlu1 %540 }
 0x7c3   :  { %2639 = vmatmul.mubr.msk.bf16.vlgmr.msra.gmra.mrb[8].mxu1 %vm209_vm3, %v541_v55 }
 0x7c4   :  { %709 = vmatpush1.bf16.msra.mxu1 %v3389_v4  ;;  %740 = vmatprep.mubr.bf16.mxu1 %v3290_v2 }
 0x7c5   :  { %710 = vmatprep.subr.bf16.mxu1 %v3400_v6 }
 0x7c8   :  { %711 = vmatpush1.bf16.msra.mxu1 %v3405_v7 }
 0x7c9   :  { %712 = vmatprep.subr.bf16.mxu1 %v3410_v8 }
 0x7cc   :  { %713 = vmatpush1.bf16.msra.mxu1 %v3418_v9 }
 0x7cd   :  { %714 = vmatprep.subr.bf16.mxu1 %v3423_v10 }
 0x7d0   :  { %715 = vmatpush1.bf16.msra.mxu1 %v3432_v11 }
 0x896   :  { %v579_v56 = vpop.f32.mrb[8].mxu1 }
 0x897   :  { %v586_v57 = vadd.f32 %v579_v56, %v3472_v39  ;;  %v581_v58 = vpop.f32.mrb[9].mxu1 }
 0x898   :  { %v583_v59 = vpop.f32.mrb[10].mxu1  ;;  %v587_v62 = vadd.f32 %v581_v58, %v3480_v43 }
 0x899   :  { %v2640_v60 = vmul.f32 -1.442695, %v586_v57  ;;  %v584_v61 = vpop.f32.mrb[11].mxu1 }
 0x89a   :  { %v2641_v45 = vmul.f32 -1.442695, %v587_v62 }
 0x89b   :  { %3075 = vpow2.f32 %v2640_v60 }
 0x89c   :  { %3077 = vtanh.f32 %v587_v62 }
 0x8a5   :  { %v3076_v63 = vpop.eup %3075 }
 0x8a6   :  { %v594_v0 = vadd.f32 1.0, %v3076_v63  ;;  %v3078_v3 = vpop.eup %3077 }
 0x8a8   :  { %3079 = vrcp.f32 %v594_v0 }
 0x8a9   :  { %3081 = vpow2.f32 %v2641_v45 }
 0x8b2   :  { %v3080_v12 = vpop.eup %3079 }
 0x8b3   :  { %v605_v13 = vmul.f32 %v3080_v12, %v3078_v3  ;;  %v604_v15 = vmul.f32 %v3080_v12, %v602_v5  ;;  %v3082_v16 = vpop.eup %3081 }
 0x8b4   :  { %v595_v17 = vadd.f32 1.0, %v3082_v16 }
 0x8b5   :  { %607 = vrot.lane.b32.xlu0 %v605_v13, %s3291_s4 }
 0x8b6   :  { %3083 = vrcp.f32 %v595_v17 }
 0x8c0   :  { %v3084_v19 = vpop.eup %3083 }
 0x927   :  { %v608_v18 = vpop.permute.xlu0 %607 }
 0x928   :  { %v610_v47 = vadd.f32 %v608_v18, %v604_v15 }
 0x92a   :  { %3085 = vtanh.f32 %v610_v47 }
 0x934   :  { %v3086_v20 = vpop.eup %3085 }
 0x935   :  { %v612_v21 = vmul.f32 %v3086_v20, %v3084_v19 }
 0x937   :  { %v619_v22 = vpack.c.bf16 %v612_v21, %v612_v21 }
 0x939   :  { %621 = vrot.lane.b32.xlu1 %v619_v22, %s3291_s4 }
 0x9ab   :  { %v622_v23 = vpop.permute.xlu1 %621 }
 0x9ac   :  { %2642 = vmatmul.mubr.msk.bf16.vlgmr.msra.gmra.mrb[12].mxu0 %vm209_vm3, %v622_v23 }
 0x9ad   :  { %791 = vmatpush1.bf16.msra.mxu0 %v3389_v4  ;;  %822 = vmatprep.mubr.bf16.mxu0 %v3290_v2 }
 0x9ae   :  { %792 = vmatprep.subr.bf16.mxu0 %v3400_v6 }
 0x9b1   :  { %793 = vmatpush1.bf16.msra.mxu0 %v3405_v7 }
 0x9b2   :  { %794 = vmatprep.subr.bf16.mxu0 %v3410_v8 }
 0x9b5   :  { %795 = vmatpush1.bf16.msra.mxu0 %v3418_v9 }
 0x9b6   :  { %796 = vmatprep.subr.bf16.mxu0 %v3423_v10  ;;  %v689_v10 = vrot.slane %v610_v47, 6 }
 0x9b9   :  { %797 = vmatpush1.bf16.msra.mxu0 %v3432_v11 }
 0xa7f   :  { %v660_v24 = vpop.f32.mrb[12].mxu0 }
 0xa80   :  { %v669_v25 = vrot.slane %v660_v24, 6  ;;  %v662_v26 = vpop.f32.mrb[13].mxu0 }
 0xa81   :  { %v664_v27 = vpop.f32.mrb[14].mxu0  ;;  %v670_v6 = vrot.slane %v662_v26, 6 }
 0xa82   :  { %v673_v4 = vadd.f32 %v669_v25, %v3476_v40  ;;  %v665_v28 = vpop.f32.mrb[15].mxu0 }
 0xa83   :  { %v674_v7 = vadd.f32 %v670_v6, %v3484_v44 }
 0xa84   :  { %v2643_v2 = vmul.f32 -1.442695, %v673_v4 }
 0xa85   :  { %v2644_v32 = vmul.f32 -1.442695, %v674_v7 }
 0xa86   :  { %3087 = vpow2.f32 %v2643_v2 }
 0xa87   :  { %3089 = vtanh.f32 %v674_v7 }
 0xa90   :  { %v3088_v29 = vpop.eup %3087 }
 0xa91   :  { %v681_v8 = vadd.f32 1.0, %v3088_v29  ;;  %v3090_v9 = vpop.eup %3089  ;;  %v3589_v29 = vld [vmem:[%s4058_s6] sm:$0xff]  }
 0xa93   :  { %3091 = vrcp.f32 %v681_v8  ;;  %v3019_v8 = vld [vmem:[%s4053_s1] sm:$0x7f]   ;;  %s3294_s1 = smov 96  }
 0xa94   :  { %3093 = vpow2.f32 %v2644_v32 }
 0xa9d   :  { %v3092_v30 = vpop.eup %3091 }
 0xa9e   :  { %v692_v11 = vmul.f32 %v3092_v30, %v3090_v9  ;;  %v691_v31 = vmul.f32 %v3092_v30, %v689_v10  ;;  %v3094_v33 = vpop.eup %3093  ;;  %v3600_v9 = vld [vmem:[%s4058_s6 + $0x8] sm:$0xff]  }
 0xa9f   :  { %v682_v34 = vadd.f32 1.0, %v3094_v33 }
 0xaa0   :  { %694 = vrot.lane.b32.xlu0 %v692_v11, %s3291_s4 }
 0xaa1   :  { %3095 = vrcp.f32 %v682_v34 }
 0xaab   :  { %v3096_v37 = vpop.eup %3095 }
 0xb12   :  { %v695_v35 = vpop.permute.xlu0 %694 }
 0xb13   :  { %v697_v36 = vadd.f32 %v695_v35, %v691_v31 }
 0xb15   :  { %3097 = vtanh.f32 %v697_v36  ;;  %v771_v60 = vrot.slane %v697_v36, 6 }
 0xb1f   :  { %v3098_v1 = vpop.eup %3097 }
 0xb20   :  { %v699_v38 = vmul.f32 %v3098_v1, %v3096_v37 }
 0xb22   :  { %v700_v41 = vpack.c.bf16 %v699_v38, %v699_v38  ;;  %v2651_v38 = vld [vmem:[%s4059_s7] ss:$0 sm:$0xff]  ;;  %s3295_s7 = smov 32  }
 0xb24   :  { %v702_v46 = vrot.slane %v700_v41, 1 }
 0xb26   :  { %703 = vrot.lane.b32.xlu1 %v702_v46, %s3291_s4 }
 0xb98   :  { %v704_v42 = vpop.permute.xlu1 %703 }
 0xb99   :  { %2645 = vmatmul.mubr.msk.bf16.vlgmr.msra.gmra.mrb[12].mxu1 %vm209_vm3, %v704_v42 }
 0xc6c   :  { %v742_v49 = vpop.f32.mrb[12].mxu1 }
 0xc6d   :  { %v751_v50 = vrot.slane %v742_v49, 4  ;;  %v744_v48 = vpop.f32.mrb[13].mxu1 }
 0xc6e   :  { %v746_v51 = vpop.f32.mrb[14].mxu1  ;;  %v752_v55 = vrot.slane %v744_v48, 4 }
 0xc6f   :  { %v755_v52 = vadd.f32 %v751_v50, %v3472_v39  ;;  %v747_v53 = vpop.f32.mrb[15].mxu1 }
 0xc70   :  { %v756_v56 = vadd.f32 %v752_v55, %v3480_v43 }
 0xc71   :  { %v2646_v54 = vmul.f32 -1.442695, %v755_v52 }
 0xc72   :  { %v2647_v0 = vmul.f32 -1.442695, %v756_v56 }
 0xc73   :  { %3099 = vpow2.f32 %v2646_v54 }
 0xc74   :  { %3101 = vtanh.f32 %v756_v56 }
 0xc7d   :  { %v3100_v57 = vpop.eup %3099 }
 0xc7e   :  { %v763_v58 = vadd.f32 1.0, %v3100_v57  ;;  %v3102_v59 = vpop.eup %3101 }
 0xc80   :  { %3103 = vrcp.f32 %v763_v58 }
 0xc81   :  { %3105 = vpow2.f32 %v2647_v0 }
 0xc8a   :  { %v3104_v61 = vpop.eup %3103 }
 0xc8b   :  { %v774_v62 = vmul.f32 %v3104_v61, %v3102_v59  ;;  %v773_v63 = vmul.f32 %v3104_v61, %v771_v60  ;;  %v3106_v39 = vpop.eup %3105 }
 0xc8c   :  { %v764_v3 = vadd.f32 1.0, %v3106_v39 }
 0xc8d   :  { %776 = vrot.lane.b32.xlu0 %v774_v62, %s3291_s4 }
 0xc8e   :  { %3107 = vrcp.f32 %v764_v3 }
 0xc98   :  { %v3108_v43 = vpop.eup %3107 }
 0xcff   :  { %v777_v5 = vpop.permute.xlu0 %776 }
 0xd00   :  { %v779_v12 = vadd.f32 %v777_v5, %v773_v63 }
 0xd02   :  { %3109 = vtanh.f32 %v779_v12  ;;  %v853_v28 = vrot.slane %v779_v12, 6  ;;  %v3633_v12 = vld [vmem:[%s4060_s8] sm:$0xff]  }
 0xd0c   :  { %v3110_v13 = vpop.eup %3109 }
 0xd0d   :  { %v781_v15 = vmul.f32 %v3110_v13, %v3108_v43  ;;  %v3639_v43 = vld [vmem:[%s4060_s8 + $0x8] sm:$0xff]  }
 0xd0f   :  { %v782_v45 = vpack.c.bf16 %v781_v15, %v781_v15  ;;  %v3647_v15 = vld [vmem:[%s4060_s8 + $0x10] sm:$0xff]  }
 0xd11   :  { %v784_v16 = vrot.slane %v782_v45, 2 }
 0xd13   :  { %785 = vrot.lane.b32.xlu1 %v784_v16, %s3291_s4  ;;  %v3657_v16 = vld [vmem:[%s4060_s8 + $0x18] sm:$0xff]  }
 0xd85   :  { %v786_v17 = vpop.permute.xlu1 %785 }
 0xd86   :  { %2648 = vmatmul.mubr.msk.bf16.vlgmr.msra.gmra.mrb[16].mxu0 %vm209_vm3, %v786_v17 }
 0xe59   :  { %v824_v18 = vpop.f32.mrb[16].mxu0 }
 0xe5a   :  { %v833_v47 = vrot.slane %v824_v18, 2  ;;  %v826_v19 = vpop.f32.mrb[17].mxu0 }
 0xe5b   :  { %v828_v20 = vpop.f32.mrb[18].mxu0  ;;  %v834_v24 = vrot.slane %v826_v19, 2 }
 0xe5c   :  { %v837_v21 = vadd.f32 %v833_v47, %v3476_v40  ;;  %v829_v22 = vpop.f32.mrb[19].mxu0  ;;  %v3017_v40 = vld [vmem:[%s4057_s5] sm:$0xff]  }
 0xe5d   :  { %v838_v25 = vadd.f32 %v834_v24, %v3484_v44  ;;  %v3292_v44 = vmov 0.0   ;;  %v3677_v22 = vld [vmem:[%s4061_s9] ss:$0 sm:$0xff] }
 0xe5e   :  { %v2649_v23 = vmul.f32 -1.442695, %v837_v21  ;;  %2779 = vmatprep.subr.bf16.mxu1 %v3292_v44  ;;  %2785 = vmatprep.subr.bf16.mxu0 %v3292_v44 }
 0xe5f   :  { %2780 = vmatpush3.bf16.msra.mxu1 %v3017_v40  ;;  %2786 = vmatpush3.bf16.msra.mxu0 %v3589_v29  ;;  %v2650_v10 = vmul.f32 -1.442695, %v838_v25 }
 0xe60   :  { %3111 = vpow2.f32 %v2649_v23  ;;  %2781 = vmatprep.mubr.msk.bf16.mxu1 %vm3293_vm4, %v3292_v44  ;;  %2787 = vmatprep.subr.bf16.mxu0 %v3292_v44 }
 0xe61   :  { %3113 = vtanh.f32 %v838_v25  ;;  %2789 = vmatprep.mubr.msk.bf16.mxu0 %vm3293_vm4, %v3292_v44  ;;  %2793 = vmatprep.subr.bf16.mxu1 %v3292_v44 }
 0xe62   :  { %2782 = vmatmul.mubr.msk.bf16.vlgmr.msra.gmra.mrb[16].mxu1 %vm77_vm0, %v3019_v8 }
 0xe63   :  { %2788 = vmatpush3.bf16.msra.mxu0 %v3600_v9  ;;  %2801 = vmatprep.mubr.msk.bf16.mxu1 %vm3293_vm4, %v3292_v44 }
 0xe64   :  { %2805 = vmatprep.subr.bf16.mxu0 %v3292_v44  ;;  %2794 = vmatpush3.bf16.msra.mxu1 %v3633_v12 }
 0xe65   :  { %2795 = vmatprep.subr.bf16.mxu1 %v3292_v44 }
 0xe68   :  { %2796 = vmatpush3.bf16.msra.mxu1 %v3639_v43 }
 0xe69   :  { %2797 = vmatprep.subr.bf16.mxu1 %v3292_v44 }
 0xe6a   :  { %v3112_v26 = vpop.eup %3111 }
 0xe6b   :  { %v845_v27 = vadd.f32 1.0, %v3112_v26  ;;  %v3114_v4 = vpop.eup %3113 }
 0xe6c   :  { %2798 = vmatpush3.bf16.msra.mxu1 %v3647_v15 }
 0xe6d   :  { %3115 = vrcp.f32 %v845_v27  ;;  %2799 = vmatprep.subr.bf16.mxu1 %v3292_v44 }
 0xe6e   :  { %3117 = vpow2.f32 %v2650_v10 }
 0xe70   :  { %2800 = vmatpush3.bf16.msra.mxu1 %v3657_v16 }
 0xe71   :  { %2821 = vmatprep.subr.bf16.mxu1 %v3292_v44 }
 0xe77   :  { %v3116_v2 = vpop.eup %3115 }
 0xe78   :  { %v856_v6 = vmul.f32 %v3116_v2, %v3114_v4  ;;  %v855_v7 = vmul.f32 %v3116_v2, %v853_v28  ;;  %v3118_v30 = vpop.eup %3117 }
 0xe79   :  { %v846_v11 = vadd.f32 1.0, %v3118_v30 }
 0xe7a   :  { %858 = vrot.lane.b32.xlu0 %v856_v6, %s3291_s4 }
 0xe7b   :  { %3119 = vrcp.f32 %v846_v11 }
 0xe85   :  { %v3120_v33 = vpop.eup %3119 }
 0xeec   :  { %v859_v31 = vpop.permute.xlu0 %858 }
 0xeed   :  { %v861_v32 = vadd.f32 %v859_v31, %v855_v7 }
 0xeef   :  { %3121 = vtanh.f32 %v861_v32  ;;  %v1019_v1 = vrot.slane %v861_v32, 6  ;;  %v3688_v32 = vld [vmem:[%s4062_s10] sm:$0xff]  }
 0xef9   :  { %v3122_v34 = vpop.eup %3121 }
 0xefa   :  { %v863_v35 = vmul.f32 %v3122_v34, %v3120_v33  ;;  %v3694_v33 = vld [vmem:[%s4062_s10 + $0x8] sm:$0xff]  }
 0xefc   :  { %v945_v36 = vpack.c.bf16 %v863_v35, %v863_v35  ;;  %v1045_v45 = vrot.slane %v863_v35, 6 }
 0xefe   :  { %v951_v37 = vrot.slane %v945_v36, 3 }
 0xf00   :  { %952 = vrot.lane.b32.xlu1 %v951_v37, %s3291_s4 }
 0xf04   :  { %1020 = vrot.lane.b32.xlu1 %v1019_v1, %s3294_s1 }
 0xf35   :  { %v923_v41 = vpop.f32.mrb[16].mxu1 }
 0xf36   :  { %v2783_v46 = vpop.f32.mrb[17].mxu1  ;;  %v3622_v51 = vadd.f32 %v2651_v38, %v923_v41 }
 0xf37   :  { %v926_v42 = vpop.f32.mrb[18].mxu1 }
 0xf38   :  { %v3617_v49 = vadd.f32 %v2651_v38, %v926_v42  ;;  %v2784_v50 = vpop.f32.mrb[19].mxu1 }
 0xf72   :  { %v953_v48 = vpop.permute.xlu1 %952 }
 0xf73   :  { %2790 = vmatmul.mubr.msk.bf16.vlgmr.msra.gmra.mrb[20].mxu0 %vm966_vm5, %v953_v48 }
 0xf74   :  { %2809 = vmatprep.mubr.msk.bf16.mxu0 %vm3293_vm4, %v3292_v44  ;;  %2806 = vmatpush3.bf16.msra.mxu0 %v3688_v32 }
 0xf75   :  { %2807 = vmatprep.subr.bf16.mxu0 %v3292_v44 }
 0xf76   :  { %v1021_v0 = vpop.permute.xlu1 %1020 }
 0xf78   :  { %2808 = vmatpush3.bf16.msra.mxu0 %v3694_v33 }
 0xf79   :  { %2813 = vmatprep.subr.bf16.mxu0 %v3292_v44 }
0x1046   :  { %v1004_v52 = vpop.f32.mrb[20].mxu0 }
0x1047   :  { %v1010_v53 = vadd.f32 %v1004_v52, %v3622_v51  ;;  %v2791_v54 = vpop.f32.mrb[21].mxu0 }
0x1048   :  { %v1007_v55 = vpop.f32.mrb[22].mxu0 }
0x1049   :  { %3123 = vtanh.f32 %v1010_v53  ;;  %v2792_v56 = vpop.f32.mrb[23].mxu0  ;;  %v2660_v58 = vmul.f32 -1.442695, %v1010_v53 }
0x104b   :  { %3125 = vpow2.f32 %v2660_v58 }
0x1053   :  { %v3124_v57 = vpop.eup %3123 }
0x1054   :  { %1025 = vrot.lane.b32.xlu0 %v3124_v57, %s3291_s4 }
0x1055   :  { %v3126_v59 = vpop.eup %3125 }
0x1056   :  { %v1014_v60 = vadd.f32 1.0, %v3126_v59 }
0x1058   :  { %3127 = vrcp.f32 %v1014_v60 }
0x1062   :  { %v3128_v61 = vpop.eup %3127 }
0x1063   :  { %v1023_v39 = vmul.f32 %v3128_v61, %v1021_v0 }
0x10c6   :  { %v1026_v62 = vpop.permute.xlu0 %1025 }
0x10c7   :  { %v1028_v63 = vmul.f32 %v3128_v61, %v1026_v62 }
0x10c9   :  { %1030 = vrot.lane.b32.xlu0 %v1028_v63, %s3295_s7 }
0x113b   :  { %v1031_v3 = vpop.permute.xlu0 %1030 }
0x113c   :  { %v3627_v5 = vadd.f32 %v1031_v3, %v1023_v39 }
0x113e   :  { %3129 = vtanh.f32 %v3627_v5  ;;  %v1297_v39 = vrot.slane %v3627_v5, 6 }
0x1148   :  { %v3130_v13 = vpop.eup %3129 }
0x1149   :  { %1036 = vrot.lane.b32.xlu1 %v3130_v13, %s3291_s4 }
0x114d   :  { %1046 = vrot.lane.b32.xlu1 %v1045_v45, %s3291_s4 }
0x1151   :  { %1133 = vrot.lane.b32.xlu1 %v1019_v1, %s3291_s4 }
0x11bb   :  { %v1037_v17 = vpop.permute.xlu1 %1036 }
0x11bc   :  { %v1039_v18 = vmul.f32 %v3128_v61, %v1037_v17 }
0x11be   :  { %1041 = vrot.lane.b32.xlu0 %v1039_v18, %s3295_s7  ;;  %v1238_v35 = vpack.c.bf16 %v1039_v18, %v1039_v18 }
0x11bf   :  { %v1047_v47 = vpop.permute.xlu1 %1046 }
0x11c3   :  { %v1134_v10 = vpop.permute.xlu1 %1133 }
0x1230   :  { %v1042_v19 = vpop.permute.xlu0 %1041 }
0x1231   :  { %v1049_v20 = vsel %vm966_vm5, %v1042_v19, %v1047_v47 }
0x1232   :  { %v1050_v21 = vpack.c.bf16 %v1049_v20, %v1049_v20 }
0x1234   :  { %2802 = vmatmul.mubr.msk.bf16.vlgmr.msra.gmra.mrb[20].mxu1 %vm209_vm3, %v1050_v21 }
0x1235   :  { %2822 = vmatpush3.bf16.msra.mxu1 %v3633_v12  ;;  %2829 = vmatprep.mubr.msk.bf16.mxu1 %vm3293_vm4, %v3292_v44 }
0x1236   :  { %2823 = vmatprep.subr.bf16.mxu1 %v3292_v44 }
0x1239   :  { %2824 = vmatpush3.bf16.msra.mxu1 %v3639_v43 }
0x123a   :  { %2825 = vmatprep.subr.bf16.mxu1 %v3292_v44 }
0x123d   :  { %2826 = vmatpush3.bf16.msra.mxu1 %v3647_v15 }
0x123e   :  { %2827 = vmatprep.subr.bf16.mxu1 %v3292_v44 }
0x1241   :  { %2828 = vmatpush3.bf16.msra.mxu1 %v3657_v16 }
0x1242   :  { %2849 = vmatprep.subr.bf16.mxu1 %v3292_v44 }
0x1307   :  { %v1120_v23 = vpop.f32.mrb[20].mxu1 }
0x1308   :  { %v1121_v24 = vadd.f32 %v3677_v22, %v1120_v23  ;;  %v2803_v25 = vpop.f32.mrb[21].mxu1 }
0x1309   :  { %v1123_v26 = vpop.f32.mrb[22].mxu1 }
0x130a   :  { %3131 = vtanh.f32 %v1121_v24  ;;  %v2804_v27 = vpop.f32.mrb[23].mxu1  ;;  %v2666_v28 = vmul.f32 -1.442695, %v1121_v24 }
0x130c   :  { %3133 = vpow2.f32 %v2666_v28 }
0x1314   :  { %v3132_v4 = vpop.eup %3131 }
0x1315   :  { %1138 = vrot.lane.b32.xlu0 %v3132_v4, %s3291_s4 }
0x1316   :  { %v3134_v2 = vpop.eup %3133 }
0x1317   :  { %v1129_v6 = vadd.f32 1.0, %v3134_v2 }
0x1319   :  { %3135 = vrcp.f32 %v1129_v6 }
0x1323   :  { %v3136_v7 = vpop.eup %3135 }
0x1324   :  { %v1136_v30 = vmul.f32 %v3136_v7, %v1134_v10 }
0x1387   :  { %v1139_v40 = vpop.permute.xlu0 %1138 }
0x1388   :  { %v1141_v8 = vmul.f32 %v3136_v7, %v1139_v40 }
0x138a   :  { %1143 = vrot.lane.b32.xlu0 %v1141_v8, %s3295_s7 }
0x13fc   :  { %v1144_v11 = vpop.permute.xlu0 %1143 }
0x13fd   :  { %v3682_v31 = vadd.f32 %v1144_v11, %v1136_v30 }
0x13ff   :  { %3137 = vtanh.f32 %v3682_v31 }
0x1409   :  { %v3138_v34 = vpop.eup %3137 }
0x140a   :  { %1149 = vrot.lane.b32.xlu1 %v3138_v34, %s3291_s4 }
0x140e   :  { %1240 = vrot.lane.b32.xlu1 %v1238_v35, %s3295_s7 }
0x147c   :  { %v1150_v36 = vpop.permute.xlu1 %1149 }
0x147d   :  { %v1152_v37 = vmul.f32 %v3136_v7, %v1150_v36 }
0x147f   :  { %v1153_v1 = vpack.c.bf16 %v1152_v37, %v1152_v37  ;;  %v1321_v18 = vrot.slane %v1152_v37, 6 }
0x1480   :  { %v1241_v41 = vpop.permute.xlu1 %1240 }
0x1481   :  { %1159 = vrot.lane.b32.xlu0 %v1153_v1, %s3295_s7 }
0x14f3   :  { %v1160_v38 = vpop.permute.xlu0 %1159 }
0x14f4   :  { %2810 = vmatmul.mubr.msk.bf16.vlgmr.msra.gmra.mrb[24].mxu0 %vm966_vm5, %v1160_v38 }
0x14f5   :  { %2814 = vmatpush3.bf16.msra.mxu0 %v3589_v29  ;;  %2817 = vmatprep.mubr.msk.bf16.mxu0 %vm3293_vm4, %v3292_v44 }
0x14f6   :  { %2815 = vmatprep.subr.bf16.mxu0 %v3292_v44 }
0x14f9   :  { %2816 = vmatpush3.bf16.msra.mxu0 %v3600_v9 }
0x14fa   :  { %2833 = vmatprep.subr.bf16.mxu0 %v3292_v44 }
0x14fc   :  { %2818 = vmatmul.mubr.msk.bf16.vlgmr.msra.gmra.mrb[28].mxu0 %vm966_vm5, %v1241_v41 }
0x14fd   :  { %2834 = vmatpush3.bf16.msra.mxu0 %v3688_v32  ;;  %2837 = vmatprep.mubr.msk.bf16.mxu0 %vm3293_vm4, %v3292_v44 }
0x14fe   :  { %2835 = vmatprep.subr.bf16.mxu0 %v3292_v44 }
0x1501   :  { %2836 = vmatpush3.bf16.msra.mxu0 %v3694_v33 }
0x1502   :  { %2841 = vmatprep.subr.bf16.mxu0 %v3292_v44 }
0x15c7   :  { %v3716_v46 = vpop.f32.mrb[24].mxu0 }
0x15c8   :  { %v2811_v42 = vpop.f32.mrb[25].mxu0 }
0x15c9   :  { %v1213_v50 = vpop.f32.mrb[26].mxu0 }
0x15ca   :  { %v2812_v48 = vpop.f32.mrb[27].mxu0 }
0x15cf   :  { %v1279_v52 = vpop.f32.mrb[28].mxu0 }
0x15d0   :  { %v1286_v53 = vrot.slane %v1279_v52, 6  ;;  %v2819_v54 = vpop.f32.mrb[29].mxu0 }
0x15d1   :  { %v1282_v55 = vpop.f32.mrb[30].mxu0 }
0x15d2   :  { %v1288_v56 = vadd.f32 %v1286_v53, %v3622_v51  ;;  %v2820_v57 = vpop.f32.mrb[31].mxu0 }
0x15d4   :  { %3139 = vtanh.f32 %v1288_v56  ;;  %v2671_v59 = vmul.f32 -1.442695, %v1288_v56 }
0x15d6   :  { %3141 = vpow2.f32 %v2671_v59 }
0x15de   :  { %v3140_v58 = vpop.eup %3139 }
0x15df   :  { %1301 = vrot.lane.b32.xlu0 %v3140_v58, %s3291_s4 }
0x15e0   :  { %v3142_v60 = vpop.eup %3141 }
0x15e1   :  { %v1292_v61 = vadd.f32 1.0, %v3142_v60 }
0x15e3   :  { %3143 = vrcp.f32 %v1292_v61 }
0x15ed   :  { %v3144_v62 = vpop.eup %3143 }
0x15ee   :  { %v1299_v3 = vmul.f32 %v3144_v62, %v1297_v39 }
0x1651   :  { %v1302_v63 = vpop.permute.xlu0 %1301 }
0x1652   :  { %v1304_v0 = vmul.f32 %v3144_v62, %v1302_v63 }
0x1654   :  { %1306 = vrot.lane.b32.xlu1 %v1304_v0, %s3295_s7 }
0x16c6   :  { %v1307_v13 = vpop.permute.xlu1 %1306 }
0x16c7   :  { %v3722_v45 = vadd.f32 %v1307_v13, %v1299_v3 }
0x16c9   :  { %3145 = vtanh.f32 %v3722_v45 }
0x16d3   :  { %v3146_v17 = vpop.eup %3145 }
0x16d4   :  { %1312 = vrot.lane.b32.xlu0 %v3146_v17, %s3291_s4  ;;  %v1524_v17 = vrot.slane %v3722_v45, 6 }
0x16d8   :  { %1322 = vrot.lane.b32.xlu0 %v1321_v18, %s3291_s4 }
0x1746   :  { %v1313_v47 = vpop.permute.xlu0 %1312 }
0x1747   :  { %v1315_v19 = vmul.f32 %v3144_v62, %v1313_v47 }
0x1749   :  { %1317 = vrot.lane.b32.xlu1 %v1315_v19, %s3295_s7  ;;  %v1464_v36 = vpack.c.bf16 %v1315_v19, %v1315_v19 }
0x174a   :  { %v1323_v20 = vpop.permute.xlu0 %1322 }
0x174b   :  { %v1466_v1 = vrot.slane %v1464_v36, 1 }
0x17bb   :  { %v1318_v21 = vpop.permute.xlu1 %1317 }
0x17bc   :  { %v1325_v5 = vsel %vm966_vm5, %v1318_v21, %v1323_v20 }
0x17bd   :  { %v1326_v23 = vpack.c.bf16 %v1325_v5, %v1325_v5 }
0x17bf   :  { %v1328_v24 = vrot.slane %v1326_v23, 1 }
0x17c1   :  { %2830 = vmatmul.mubr.msk.bf16.vlgmr.msra.gmra.mrb[24].mxu1 %vm209_vm3, %v1328_v24 }
0x17c2   :  { %2850 = vmatpush3.bf16.msra.mxu1 %v3633_v12  ;;  %2857 = vmatprep.mubr.msk.bf16.mxu1 %vm3293_vm4, %v3292_v44 }
0x17c3   :  { %2851 = vmatprep.subr.bf16.mxu1 %v3292_v44 }
0x17c6   :  { %2852 = vmatpush3.bf16.msra.mxu1 %v3639_v43 }
0x17c7   :  { %2853 = vmatprep.subr.bf16.mxu1 %v3292_v44 }
0x17ca   :  { %2854 = vmatpush3.bf16.msra.mxu1 %v3647_v15 }
0x17cb   :  { %2855 = vmatprep.subr.bf16.mxu1 %v3292_v44 }
0x17ce   :  { %2856 = vmatpush3.bf16.msra.mxu1 %v3657_v16 }
0x17cf   :  { %2877 = vmatprep.subr.bf16.mxu1 %v3292_v44 }
0x1894   :  { %v1366_v25 = vpop.f32.mrb[24].mxu1 }
0x1895   :  { %v1367_v26 = vadd.f32 %v3677_v22, %v1366_v25  ;;  %v2831_v27 = vpop.f32.mrb[25].mxu1 }
0x1896   :  { %v1369_v4 = vpop.f32.mrb[26].mxu1 }
0x1897   :  { %3147 = vtanh.f32 %v1367_v26  ;;  %v2832_v28 = vpop.f32.mrb[27].mxu1  ;;  %v2673_v6 = vmul.f32 -1.442695, %v1367_v26 }
0x1899   :  { %3149 = vpow2.f32 %v2673_v6 }
0x18a1   :  { %v3148_v2 = vpop.eup %3147 }
0x18a2   :  { %1381 = vrot.lane.b32.xlu1 %v3148_v2, %s3291_s4 }
0x18a3   :  { %v3150_v7 = vpop.eup %3149 }
0x18a4   :  { %v1375_v40 = vadd.f32 1.0, %v3150_v7 }
0x18a6   :  { %3151 = vrcp.f32 %v1375_v40 }
0x18b0   :  { %v3152_v8 = vpop.eup %3151 }
0x18b1   :  { %v1379_v11 = vmul.f32 %v3152_v8, %v3682_v31 }
0x1914   :  { %v1382_v10 = vpop.permute.xlu1 %1381 }
0x1915   :  { %v1384_v30 = vmul.f32 %v3152_v8, %v1382_v10 }
0x1917   :  { %1386 = vrot.lane.b32.xlu0 %v1384_v30, %s3295_s7 }
0x1989   :  { %v1387_v34 = vpop.permute.xlu0 %1386 }
0x198a   :  { %v3744_v35 = vadd.f32 %v1387_v34, %v1379_v11 }
0x198c   :  { %3153 = vtanh.f32 %v3744_v35 }
0x1996   :  { %v3154_v37 = vpop.eup %3153 }
0x1997   :  { %1392 = vrot.lane.b32.xlu1 %v3154_v37, %s3291_s4 }
0x199b   :  { %1467 = vrot.lane.b32.xlu1 %v1466_v1, %s3295_s7 }
0x1a09   :  { %v1393_v38 = vpop.permute.xlu1 %1392 }
0x1a0a   :  { %v1395_v41 = vmul.f32 %v3152_v8, %v1393_v38 }
0x1a0c   :  { %v1396_v42 = vpack.c.bf16 %v1395_v41, %v1395_v41  ;;  %v1548_v21 = vrot.slane %v1395_v41, 4 }
0x1a0d   :  { %v1468_v31 = vpop.permute.xlu1 %1467 }
0x1a0e   :  { %1398 = vrot.lane.b32.xlu0 %v1396_v42, %s3295_s7 }
0x1a80   :  { %v1399_v50 = vpop.permute.xlu0 %1398 }
0x1a81   :  { %2838 = vmatmul.mubr.msk.bf16.vlgmr.msra.gmra.mrb[32].mxu0 %vm966_vm5, %v1399_v50 }
0x1a82   :  { %2842 = vmatpush3.bf16.msra.mxu0 %v3589_v29  ;;  %2845 = vmatprep.mubr.msk.bf16.mxu0 %vm3293_vm4, %v3292_v44 }
0x1a83   :  { %2843 = vmatprep.subr.bf16.mxu0 %v3292_v44 }
0x1a86   :  { %2844 = vmatpush3.bf16.msra.mxu0 %v3600_v9 }
0x1a87   :  { %2861 = vmatprep.subr.bf16.mxu0 %v3292_v44 }
0x1a89   :  { %2846 = vmatmul.mubr.msk.bf16.vlgmr.msra.gmra.mrb[36].mxu0 %vm966_vm5, %v1468_v31 }
0x1a8a   :  { %2862 = vmatpush3.bf16.msra.mxu0 %v3688_v32  ;;  %2865 = vmatprep.mubr.msk.bf16.mxu0 %vm3293_vm4, %v3292_v44 }
0x1a8b   :  { %2863 = vmatprep.subr.bf16.mxu0 %v3292_v44 }
0x1a8e   :  { %2864 = vmatpush3.bf16.msra.mxu0 %v3694_v33 }
0x1a8f   :  { %2869 = vmatprep.subr.bf16.mxu0 %v3292_v44 }
0x1b54   :  { %v3764_v48 = vpop.f32.mrb[32].mxu0 }
0x1b55   :  { %v2839_v52 = vpop.f32.mrb[33].mxu0 }
0x1b56   :  { %v1440_v53 = vpop.f32.mrb[34].mxu0 }
0x1b57   :  { %v2840_v54 = vpop.f32.mrb[35].mxu0 }
0x1b5c   :  { %v1506_v55 = vpop.f32.mrb[36].mxu0 }
0x1b5d   :  { %v1513_v56 = vrot.slane %v1506_v55, 4  ;;  %v2847_v57 = vpop.f32.mrb[37].mxu0 }
0x1b5e   :  { %v1509_v58 = vpop.f32.mrb[38].mxu0 }
0x1b5f   :  { %v1515_v59 = vadd.f32 %v1513_v56, %v3622_v51  ;;  %v2848_v60 = vpop.f32.mrb[39].mxu0 }
0x1b61   :  { %3155 = vtanh.f32 %v1515_v59  ;;  %v2676_v62 = vmul.f32 -1.442695, %v1515_v59 }
0x1b63   :  { %3157 = vpow2.f32 %v2676_v62 }
0x1b6b   :  { %v3156_v61 = vpop.eup %3155 }
0x1b6c   :  { %1528 = vrot.lane.b32.xlu0 %v3156_v61, %s3291_s4 }
0x1b6d   :  { %v3158_v63 = vpop.eup %3157 }
0x1b6e   :  { %v1519_v0 = vadd.f32 1.0, %v3158_v63 }
0x1b70   :  { %3159 = vrcp.f32 %v1519_v0 }
0x1b7a   :  { %v3160_v39 = vpop.eup %3159 }
0x1b7b   :  { %v1526_v18 = vmul.f32 %v3160_v39, %v1524_v17 }
0x1bde   :  { %v1529_v3 = vpop.permute.xlu0 %1528 }
0x1bdf   :  { %v1531_v13 = vmul.f32 %v3160_v39, %v1529_v3 }
0x1be1   :  { %1533 = vrot.lane.b32.xlu1 %v1531_v13, %s3295_s7 }
0x1c53   :  { %v1534_v47 = vpop.permute.xlu1 %1533 }
0x1c54   :  { %v3770_v19 = vadd.f32 %v1534_v47, %v1526_v18 }
0x1c56   :  { %3161 = vtanh.f32 %v3770_v19 }
0x1c60   :  { %v3162_v20 = vpop.eup %3161 }
0x1c61   :  { %1539 = vrot.lane.b32.xlu0 %v3162_v20, %s3291_s4 }
0x1c65   :  { %1549 = vrot.lane.b32.xlu0 %v1548_v21, %s3291_s4  ;;  %v1751_v21 = vrot.slane %v3770_v19, 6 }
0x1cd3   :  { %v1540_v5 = vpop.permute.xlu0 %1539 }
0x1cd4   :  { %v1542_v23 = vmul.f32 %v3160_v39, %v1540_v5 }
0x1cd6   :  { %1544 = vrot.lane.b32.xlu1 %v1542_v23, %s3295_s7  ;;  %v1691_v41 = vpack.c.bf16 %v1542_v23, %v1542_v23 }
0x1cd7   :  { %v1550_v24 = vpop.permute.xlu0 %1549 }
0x1cd8   :  { %v1693_v50 = vrot.slane %v1691_v41, 2 }
0x1d48   :  { %v1545_v25 = vpop.permute.xlu1 %1544 }
0x1d49   :  { %v1552_v45 = vsel %vm966_vm5, %v1545_v25, %v1550_v24 }
0x1d4a   :  { %v1553_v26 = vpack.c.bf16 %v1552_v45, %v1552_v45 }
0x1d4c   :  { %v1555_v27 = vrot.slane %v1553_v26, 2 }
0x1d4e   :  { %2858 = vmatmul.mubr.msk.bf16.vlgmr.msra.gmra.mrb[28].mxu1 %vm209_vm3, %v1555_v27 }
0x1d4f   :  { %2878 = vmatpush3.bf16.msra.mxu1 %v3633_v12  ;;  %2885 = vmatprep.mubr.msk.bf16.mxu1 %vm3293_vm4, %v3292_v44 }
0x1d50   :  { %2879 = vmatprep.subr.bf16.mxu1 %v3292_v44 }
0x1d53   :  { %2880 = vmatpush3.bf16.msra.mxu1 %v3639_v43 }
0x1d54   :  { %2881 = vmatprep.subr.bf16.mxu1 %v3292_v44 }
0x1d57   :  { %2882 = vmatpush3.bf16.msra.mxu1 %v3647_v15 }
0x1d58   :  { %2883 = vmatprep.subr.bf16.mxu1 %v3292_v44 }
0x1d5b   :  { %2884 = vmatpush3.bf16.msra.mxu1 %v3657_v16 }
0x1d5c   :  { %2905 = vmatprep.subr.bf16.mxu1 %v3292_v44 }
0x1e21   :  { %v1593_v4 = vpop.f32.mrb[28].mxu1 }
0x1e22   :  { %v1594_v28 = vadd.f32 %v3677_v22, %v1593_v4  ;;  %v2859_v2 = vpop.f32.mrb[29].mxu1 }
0x1e23   :  { %v1596_v6 = vpop.f32.mrb[30].mxu1 }
0x1e24   :  { %3163 = vtanh.f32 %v1594_v28  ;;  %v2860_v7 = vpop.f32.mrb[31].mxu1  ;;  %v2678_v8 = vmul.f32 -1.442695, %v1594_v28 }
0x1e26   :  { %3165 = vpow2.f32 %v2678_v8 }
0x1e2e   :  { %v3164_v40 = vpop.eup %3163 }
0x1e2f   :  { %1608 = vrot.lane.b32.xlu1 %v3164_v40, %s3291_s4 }
0x1e30   :  { %v3166_v10 = vpop.eup %3165 }
0x1e31   :  { %v1602_v30 = vadd.f32 1.0, %v3166_v10 }
0x1e33   :  { %3167 = vrcp.f32 %v1602_v30 }
0x1e3d   :  { %v3168_v11 = vpop.eup %3167 }
0x1e3e   :  { %v1606_v37 = vmul.f32 %v3168_v11, %v3744_v35 }
0x1ea1   :  { %v1609_v34 = vpop.permute.xlu1 %1608 }
0x1ea2   :  { %v1611_v36 = vmul.f32 %v3168_v11, %v1609_v34 }
0x1ea4   :  { %1613 = vrot.lane.b32.xlu0 %v1611_v36, %s3295_s7 }
0x1f16   :  { %v1614_v1 = vpop.permute.xlu0 %1613 }
0x1f17   :  { %v3792_v38 = vadd.f32 %v1614_v1, %v1606_v37 }
0x1f19   :  { %3169 = vtanh.f32 %v3792_v38 }
0x1f23   :  { %v3170_v42 = vpop.eup %3169 }
0x1f24   :  { %1619 = vrot.lane.b32.xlu1 %v3170_v42, %s3291_s4 }
0x1f28   :  { %1694 = vrot.lane.b32.xlu1 %v1693_v50, %s3295_s7 }
0x1f96   :  { %v1620_v31 = vpop.permute.xlu1 %1619 }
0x1f97   :  { %v1622_v52 = vmul.f32 %v3168_v11, %v1620_v31 }
0x1f99   :  { %v1623_v53 = vpack.c.bf16 %v1622_v52, %v1622_v52  ;;  %v1775_v25 = vrot.slane %v1622_v52, 2 }
0x1f9a   :  { %v1695_v35 = vpop.permute.xlu1 %1694 }
0x1f9b   :  { %1625 = vrot.lane.b32.xlu0 %v1623_v53, %s3295_s7 }
0x200d   :  { %v1626_v54 = vpop.permute.xlu0 %1625 }
0x200e   :  { %2866 = vmatmul.mubr.msk.bf16.vlgmr.msra.gmra.mrb[40].mxu0 %vm966_vm5, %v1626_v54 }
0x200f   :  { %2870 = vmatpush3.bf16.msra.mxu0 %v3589_v29  ;;  %2873 = vmatprep.mubr.msk.bf16.mxu0 %vm3293_vm4, %v3292_v44 }
0x2010   :  { %2871 = vmatprep.subr.bf16.mxu0 %v3292_v44 }
0x2013   :  { %2872 = vmatpush3.bf16.msra.mxu0 %v3600_v9 }
0x2014   :  { %2889 = vmatprep.subr.bf16.mxu0 %v3292_v44 }
0x2016   :  { %2874 = vmatmul.mubr.msk.bf16.vlgmr.msra.gmra.mrb[44].mxu0 %vm966_vm5, %v1695_v35 }
0x2017   :  { %2890 = vmatpush3.bf16.msra.mxu0 %v3688_v32  ;;  %2893 = vmatprep.mubr.msk.bf16.mxu0 %vm3293_vm4, %v3292_v44 }
0x2018   :  { %2891 = vmatprep.subr.bf16.mxu0 %v3292_v44 }
0x201b   :  { %2892 = vmatpush3.bf16.msra.mxu0 %v3694_v33 }
0x201c   :  { %2897 = vmatprep.subr.bf16.mxu0 %v3292_v44 }
0x20e1   :  { %v3812_v55 = vpop.f32.mrb[40].mxu0 }
0x20e2   :  { %v2867_v56 = vpop.f32.mrb[41].mxu0 }
0x20e3   :  { %v1667_v57 = vpop.f32.mrb[42].mxu0 }
0x20e4   :  { %v2868_v58 = vpop.f32.mrb[43].mxu0 }
0x20e9   :  { %v1733_v59 = vpop.f32.mrb[44].mxu0 }
0x20ea   :  { %v1740_v60 = vrot.slane %v1733_v59, 2  ;;  %v2875_v61 = vpop.f32.mrb[45].mxu0 }
0x20eb   :  { %v1736_v62 = vpop.f32.mrb[46].mxu0 }
0x20ec   :  { %v1742_v63 = vadd.f32 %v1740_v60, %v3622_v51  ;;  %v2876_v0 = vpop.f32.mrb[47].mxu0 }
0x20ee   :  { %3171 = vtanh.f32 %v1742_v63  ;;  %v2681_v3 = vmul.f32 -1.442695, %v1742_v63 }
0x20f0   :  { %3173 = vpow2.f32 %v2681_v3 }
0x20f8   :  { %v3172_v39 = vpop.eup %3171 }
0x20f9   :  { %1755 = vrot.lane.b32.xlu0 %v3172_v39, %s3291_s4 }
0x20fa   :  { %v3174_v13 = vpop.eup %3173 }
0x20fb   :  { %v1746_v17 = vadd.f32 1.0, %v3174_v13 }
0x20fd   :  { %3175 = vrcp.f32 %v1746_v17 }
0x2107   :  { %v3176_v18 = vpop.eup %3175 }
0x2108   :  { %v1753_v5 = vmul.f32 %v3176_v18, %v1751_v21 }
0x216b   :  { %v1756_v47 = vpop.permute.xlu0 %1755 }
0x216c   :  { %v1758_v20 = vmul.f32 %v3176_v18, %v1756_v47 }
0x216e   :  { %1760 = vrot.lane.b32.xlu1 %v1758_v20, %s3295_s7 }
0x21e0   :  { %v1761_v23 = vpop.permute.xlu1 %1760 }
0x21e1   :  { %v3818_v51 = vadd.f32 %v1761_v23, %v1753_v5 }
0x21e3   :  { %3177 = vtanh.f32 %v3818_v51 }
0x21ed   :  { %v3178_v24 = vpop.eup %3177 }
0x21ee   :  { %1766 = vrot.lane.b32.xlu0 %v3178_v24, %s3291_s4  ;;  %v1975_v24 = vrot.slane %v3818_v51, 6 }
0x21f2   :  { %1776 = vrot.lane.b32.xlu0 %v1775_v25, %s3291_s4 }
0x2260   :  { %v1767_v45 = vpop.permute.xlu0 %1766 }
0x2261   :  { %v1769_v26 = vmul.f32 %v3176_v18, %v1767_v45 }
0x2263   :  { %1771 = vrot.lane.b32.xlu1 %v1769_v26, %s3295_s7  ;;  %v1918_v52 = vpack.c.bf16 %v1769_v26, %v1769_v26 }
0x2264   :  { %v1777_v27 = vpop.permute.xlu0 %1776 }
0x2265   :  { %v1920_v54 = vrot.slane %v1918_v52, 3 }
0x22d5   :  { %v1772_v4 = vpop.permute.xlu1 %1771 }
0x22d6   :  { %v1779_v19 = vsel %vm966_vm5, %v1772_v4, %v1777_v27 }
0x22d7   :  { %v1780_v28 = vpack.c.bf16 %v1779_v19, %v1779_v19 }
0x22d9   :  { %v1782_v2 = vrot.slane %v1780_v28, 3 }
0x22db   :  { %2886 = vmatmul.mubr.msk.bf16.vlgmr.msra.gmra.mrb[32].mxu1 %vm209_vm3, %v1782_v2 }
0x22dc   :  { %2906 = vmatpush3.bf16.msra.mxu1 %v3633_v12  ;;  %2913 = vmatprep.mubr.msk.bf16.mxu1 %vm3293_vm4, %v3292_v44 }
0x22dd   :  { %2907 = vmatprep.subr.bf16.mxu1 %v3292_v44 }
0x22e0   :  { %2908 = vmatpush3.bf16.msra.mxu1 %v3639_v43 }
0x22e1   :  { %2909 = vmatprep.subr.bf16.mxu1 %v3292_v44 }
0x22e4   :  { %2910 = vmatpush3.bf16.msra.mxu1 %v3647_v15 }
0x22e5   :  { %2911 = vmatprep.subr.bf16.mxu1 %v3292_v44 }
0x22e8   :  { %2912 = vmatpush3.bf16.msra.mxu1 %v3657_v16 }
0x22e9   :  { %2933 = vmatprep.subr.bf16.mxu1 %v3292_v44 }
0x23ae   :  { %v1820_v6 = vpop.f32.mrb[32].mxu1 }
0x23af   :  { %v1821_v7 = vadd.f32 %v3677_v22, %v1820_v6  ;;  %v2887_v40 = vpop.f32.mrb[33].mxu1 }
0x23b0   :  { %v1823_v8 = vpop.f32.mrb[34].mxu1 }
0x23b1   :  { %3179 = vtanh.f32 %v1821_v7  ;;  %v2888_v10 = vpop.f32.mrb[35].mxu1  ;;  %v2683_v11 = vmul.f32 -1.442695, %v1821_v7 }
0x23b3   :  { %3181 = vpow2.f32 %v2683_v11 }
0x23bb   :  { %v3180_v30 = vpop.eup %3179 }
0x23bc   :  { %1835 = vrot.lane.b32.xlu1 %v3180_v30, %s3291_s4 }
0x23bd   :  { %v3182_v34 = vpop.eup %3181 }
0x23be   :  { %v1829_v36 = vadd.f32 1.0, %v3182_v34 }
0x23c0   :  { %3183 = vrcp.f32 %v1829_v36 }
0x23ca   :  { %v3184_v37 = vpop.eup %3183 }
0x23cb   :  { %v1833_v42 = vmul.f32 %v3184_v37, %v3792_v38 }
0x242e   :  { %v1836_v1 = vpop.permute.xlu1 %1835 }
0x242f   :  { %v1838_v41 = vmul.f32 %v3184_v37, %v1836_v1 }
0x2431   :  { %1840 = vrot.lane.b32.xlu0 %v1838_v41, %s3295_s7 }
0x24a3   :  { %v1841_v50 = vpop.permute.xlu0 %1840 }
0x24a4   :  { %v3840_v31 = vadd.f32 %v1841_v50, %v1833_v42 }
0x24a6   :  { %3185 = vtanh.f32 %v3840_v31 }
0x24b0   :  { %v3186_v53 = vpop.eup %3185 }
0x24b1   :  { %1846 = vrot.lane.b32.xlu1 %v3186_v53, %s3291_s4 }
0x24b5   :  { %1921 = vrot.lane.b32.xlu1 %v1920_v54, %s3295_s7 }
0x2523   :  { %v1847_v35 = vpop.permute.xlu1 %1846 }
0x2524   :  { %v1849_v56 = vmul.f32 %v3184_v37, %v1847_v35 }
0x2526   :  { %v1850_v57 = vpack.c.bf16 %v1849_v56, %v1849_v56 }
0x2527   :  { %v1922_v38 = vpop.permute.xlu1 %1921 }
0x2528   :  { %1852 = vrot.lane.b32.xlu0 %v1850_v57, %s3295_s7 }
0x259a   :  { %v1853_v58 = vpop.permute.xlu0 %1852 }
0x259b   :  { %2894 = vmatmul.mubr.msk.bf16.vlgmr.msra.gmra.mrb[48].mxu0 %vm966_vm5, %v1853_v58 }
0x259c   :  { %2898 = vmatpush3.bf16.msra.mxu0 %v3589_v29  ;;  %2901 = vmatprep.mubr.msk.bf16.mxu0 %vm3293_vm4, %v3292_v44 }
0x259d   :  { %2899 = vmatprep.subr.bf16.mxu0 %v3292_v44 }
0x25a0   :  { %2900 = vmatpush3.bf16.msra.mxu0 %v3600_v9 }
0x25a1   :  { %2917 = vmatprep.subr.bf16.mxu0 %v3292_v44 }
0x25a3   :  { %2902 = vmatmul.mubr.msk.bf16.vlgmr.msra.gmra.mrb[52].mxu0 %vm966_vm5, %v1922_v38 }
0x25a4   :  { %2918 = vmatpush3.bf16.msra.mxu0 %v3688_v32  ;;  %2921 = vmatprep.mubr.msk.bf16.mxu0 %vm3293_vm4, %v3292_v44 }
0x25a5   :  { %2919 = vmatprep.subr.bf16.mxu0 %v3292_v44 }
0x25a8   :  { %2920 = vmatpush3.bf16.msra.mxu0 %v3694_v33 }
0x25a9   :  { %2925 = vmatprep.subr.bf16.mxu0 %v3292_v44 }
0x266e   :  { %v3860_v59 = vpop.f32.mrb[48].mxu0 }
0x266f   :  { %v2895_v60 = vpop.f32.mrb[49].mxu0 }
0x2670   :  { %v1894_v61 = vpop.f32.mrb[50].mxu0 }
0x2671   :  { %v2896_v62 = vpop.f32.mrb[51].mxu0 }
0x2676   :  { %v1960_v63 = vpop.f32.mrb[52].mxu0 }
0x2677   :  { %v1966_v0 = vadd.f32 %v1960_v63, %v3617_v49  ;;  %v2903_v39 = vpop.f32.mrb[53].mxu0 }
0x2678   :  { %v1963_v3 = vpop.f32.mrb[54].mxu0 }
0x2679   :  { %3187 = vtanh.f32 %v1966_v0  ;;  %v2904_v13 = vpop.f32.mrb[55].mxu0  ;;  %v2686_v18 = vmul.f32 -1.442695, %v1966_v0 }
0x267b   :  { %3189 = vpow2.f32 %v2686_v18 }
0x2683   :  { %v3188_v17 = vpop.eup %3187 }
0x2684   :  { %1979 = vrot.lane.b32.xlu0 %v3188_v17, %s3291_s4 }
0x2685   :  { %v3190_v47 = vpop.eup %3189 }
0x2686   :  { %v1970_v20 = vadd.f32 1.0, %v3190_v47 }
0x2688   :  { %3191 = vrcp.f32 %v1970_v20 }
0x2692   :  { %v3192_v21 = vpop.eup %3191 }
0x2693   :  { %v1977_v25 = vmul.f32 %v3192_v21, %v1975_v24 }
0x26f6   :  { %v1980_v5 = vpop.permute.xlu0 %1979 }
0x26f7   :  { %v1982_v23 = vmul.f32 %v3192_v21, %v1980_v5 }
0x26f9   :  { %1984 = vrot.lane.b32.xlu1 %v1982_v23, %s3295_s7 }
0x276b   :  { %v1985_v45 = vpop.permute.xlu1 %1984 }
0x276c   :  { %v3866_v26 = vadd.f32 %v1985_v45, %v1977_v25 }
0x276e   :  { %3193 = vtanh.f32 %v3866_v26  ;;  %v2198_v24 = vrot.slane %v3866_v26, 6 }
0x2778   :  { %v3194_v27 = vpop.eup %3193 }
0x2779   :  { %1990 = vrot.lane.b32.xlu0 %v3194_v27, %s3291_s4 }
0x277d   :  { %1999 = vrot.lane.b32.xlu0 %v1849_v56, %s3291_s4 }
0x27eb   :  { %v1991_v4 = vpop.permute.xlu0 %1990 }
0x27ec   :  { %v1993_v19 = vmul.f32 %v3192_v21, %v1991_v4 }
0x27ee   :  { %1995 = vrot.lane.b32.xlu1 %v1993_v19, %s3295_s7  ;;  %v2139_v35 = vpack.c.bf16 %v1993_v19, %v1993_v19 }
0x27ef   :  { %v2000_v28 = vpop.permute.xlu0 %1999 }
0x2860   :  { %v1996_v2 = vpop.permute.xlu1 %1995 }
0x2861   :  { %v2002_v6 = vsel %vm966_vm5, %v1996_v2, %v2000_v28 }
0x2862   :  { %v2003_v51 = vpack.c.bf16 %v2002_v6, %v2002_v6 }
0x2864   :  { %2914 = vmatmul.mubr.msk.bf16.vlgmr.msra.gmra.mrb[36].mxu1 %vm209_vm3, %v2003_v51 }
0x2865   :  { %2934 = vmatpush3.bf16.msra.mxu1 %v3633_v12  ;;  %2941 = vmatprep.mubr.msk.bf16.mxu1 %vm3293_vm4, %v3292_v44 }
0x2866   :  { %2935 = vmatprep.subr.bf16.mxu1 %v3292_v44 }
0x2869   :  { %2936 = vmatpush3.bf16.msra.mxu1 %v3639_v43 }
0x286a   :  { %2937 = vmatprep.subr.bf16.mxu1 %v3292_v44 }
0x286d   :  { %2938 = vmatpush3.bf16.msra.mxu1 %v3647_v15 }
0x286e   :  { %2939 = vmatprep.subr.bf16.mxu1 %v3292_v44 }
0x2871   :  { %2940 = vmatpush3.bf16.msra.mxu1 %v3657_v16 }
0x2872   :  { %2961 = vmatprep.subr.bf16.mxu1 %v3292_v44 }
0x2937   :  { %v2041_v7 = vpop.f32.mrb[36].mxu1 }
0x2938   :  { %v2042_v40 = vadd.f32 %v3677_v22, %v2041_v7  ;;  %v2915_v8 = vpop.f32.mrb[37].mxu1 }
0x2939   :  { %v2044_v10 = vpop.f32.mrb[38].mxu1 }
0x293a   :  { %3195 = vtanh.f32 %v2042_v40  ;;  %v2916_v30 = vpop.f32.mrb[39].mxu1  ;;  %v2688_v34 = vmul.f32 -1.442695, %v2042_v40 }
0x293c   :  { %3197 = vpow2.f32 %v2688_v34 }
0x2944   :  { %v3196_v11 = vpop.eup %3195 }
0x2945   :  { %2056 = vrot.lane.b32.xlu1 %v3196_v11, %s3291_s4 }
0x2946   :  { %v3198_v36 = vpop.eup %3197 }
0x2947   :  { %v2050_v37 = vadd.f32 1.0, %v3198_v36 }
0x2949   :  { %3199 = vrcp.f32 %v2050_v37 }
0x2953   :  { %v3200_v1 = vpop.eup %3199 }
0x2954   :  { %v2054_v50 = vmul.f32 %v3200_v1, %v3840_v31 }
0x29b7   :  { %v2057_v41 = vpop.permute.xlu1 %2056 }
0x29b8   :  { %v2059_v42 = vmul.f32 %v3200_v1, %v2057_v41 }
0x29ba   :  { %2061 = vrot.lane.b32.xlu0 %v2059_v42, %s3295_s7 }
0x2a2c   :  { %v2062_v52 = vpop.permute.xlu0 %2061 }
0x2a2d   :  { %v3888_v53 = vadd.f32 %v2062_v52, %v2054_v50 }
0x2a2f   :  { %3201 = vtanh.f32 %v3888_v53 }
0x2a39   :  { %v3202_v54 = vpop.eup %3201 }
0x2a3a   :  { %2067 = vrot.lane.b32.xlu1 %v3202_v54, %s3291_s4 }
0x2a3e   :  { %2141 = vrot.lane.b32.xlu1 %v2139_v35, %s3295_s7 }
0x2aac   :  { %v2068_v56 = vpop.permute.xlu1 %2067 }
0x2aad   :  { %v2070_v57 = vmul.f32 %v3200_v1, %v2068_v56 }
0x2aaf   :  { %v2071_v58 = vpack.c.bf16 %v2070_v57, %v2070_v57  ;;  %v2222_v19 = vrot.slane %v2070_v57, 6 }
0x2ab0   :  { %v2142_v31 = vpop.permute.xlu1 %2141 }
0x2ab1   :  { %2073 = vrot.lane.b32.xlu0 %v2071_v58, %s3295_s7 }
0x2b23   :  { %v2074_v38 = vpop.permute.xlu0 %2073 }
0x2b24   :  { %2922 = vmatmul.mubr.msk.bf16.vlgmr.msra.gmra.mrb[56].mxu0 %vm966_vm5, %v2074_v38  ;;  %v3264_v38 = vld [vmem:[%s4058_s6 + $0x8] sm:$0xff]  }
0x2b25   :  { %2926 = vmatpush3.bf16.msra.mxu0 %v3589_v29  ;;  %2929 = vmatprep.mubr.msk.bf16.mxu0 %vm3293_vm4, %v3292_v44 }
0x2b26   :  { %2927 = vmatprep.subr.bf16.mxu0 %v3292_v44 }
0x2b29   :  { %2928 = vmatpush3.bf16.msra.mxu0 %v3600_v9 }
0x2b2a   :  { %2945 = vmatprep.subr.bf16.mxu0 %v3292_v44 }
0x2b2c   :  { %2930 = vmatmul.mubr.msk.bf16.vlgmr.msra.gmra.mrb[60].mxu0 %vm966_vm5, %v2142_v31 }
0x2b2d   :  { %2946 = vmatpush3.bf16.msra.mxu0 %v3688_v32  ;;  %2949 = vmatprep.mubr.msk.bf16.mxu0 %vm3293_vm4, %v3292_v44 }
0x2b2e   :  { %2947 = vmatprep.subr.bf16.mxu0 %v3292_v44 }
0x2b31   :  { %2948 = vmatpush3.bf16.msra.mxu0 %v3694_v33 }
0x2b32   :  { %2953 = vmatprep.subr.bf16.mxu0 %v3292_v44 }
0x2bf7   :  { %v3908_v29 = vpop.f32.mrb[56].mxu0 }
0x2bf8   :  { %v2923_v60 = vpop.f32.mrb[57].mxu0 }
0x2bf9   :  { %v2115_v9 = vpop.f32.mrb[58].mxu0 }
0x2bfa   :  { %v2924_v61 = vpop.f32.mrb[59].mxu0 }
0x2bff   :  { %v2180_v62 = vpop.f32.mrb[60].mxu0 }
0x2c00   :  { %v2187_v63 = vrot.slane %v2180_v62, 6  ;;  %v2931_v0 = vpop.f32.mrb[61].mxu0 }
0x2c01   :  { %v2183_v39 = vpop.f32.mrb[62].mxu0 }
0x2c02   :  { %v2189_v3 = vadd.f32 %v2187_v63, %v3617_v49  ;;  %v2932_v13 = vpop.f32.mrb[63].mxu0 }
0x2c04   :  { %3203 = vtanh.f32 %v2189_v3  ;;  %v2691_v18 = vmul.f32 -1.442695, %v2189_v3 }
0x2c06   :  { %3205 = vpow2.f32 %v2691_v18 }
0x2c0e   :  { %v3204_v17 = vpop.eup %3203 }
0x2c0f   :  { %2202 = vrot.lane.b32.xlu0 %v3204_v17, %s3291_s4 }
0x2c10   :  { %v3206_v47 = vpop.eup %3205 }
0x2c11   :  { %v2193_v20 = vadd.f32 1.0, %v3206_v47 }
0x2c13   :  { %3207 = vrcp.f32 %v2193_v20 }
0x2c1d   :  { %v3208_v21 = vpop.eup %3207 }
0x2c1e   :  { %v2200_v25 = vmul.f32 %v3208_v21, %v2198_v24 }
0x2c81   :  { %v2203_v5 = vpop.permute.xlu0 %2202 }
0x2c82   :  { %v2205_v23 = vmul.f32 %v3208_v21, %v2203_v5 }
0x2c84   :  { %2207 = vrot.lane.b32.xlu1 %v2205_v23, %s3295_s7 }
0x2cf6   :  { %v2208_v45 = vpop.permute.xlu1 %2207 }
0x2cf7   :  { %v3914_v27 = vadd.f32 %v2208_v45, %v2200_v25 }
0x2cf9   :  { %3209 = vtanh.f32 %v3914_v27  ;;  %v2425_v5 = vrot.slane %v3914_v27, 6 }
0x2d03   :  { %v3210_v4 = vpop.eup %3209 }
0x2d04   :  { %2213 = vrot.lane.b32.xlu0 %v3210_v4, %s3291_s4 }
0x2d08   :  { %2223 = vrot.lane.b32.xlu0 %v2222_v19, %s3291_s4 }
0x2d76   :  { %v2214_v28 = vpop.permute.xlu0 %2213 }
0x2d77   :  { %v2216_v2 = vmul.f32 %v3208_v21, %v2214_v28 }
0x2d79   :  { %2218 = vrot.lane.b32.xlu1 %v2216_v2, %s3295_s7  ;;  %v2365_v50 = vpack.c.bf16 %v2216_v2, %v2216_v2 }
0x2d7a   :  { %v2224_v6 = vpop.permute.xlu0 %2223 }
0x2d7b   :  { %v2367_v54 = vrot.slane %v2365_v50, 1  ;;  %v3979_v50 = vld [vmem:[%s4063_s11] ss:$0 sm:$0xff] }
0x2deb   :  { %v2219_v51 = vpop.permute.xlu1 %2218 }
0x2dec   :  { %v2226_v26 = vsel %vm966_vm5, %v2219_v51, %v2224_v6 }
0x2ded   :  { %v2227_v7 = vpack.c.bf16 %v2226_v26, %v2226_v26 }
0x2def   :  { %v2229_v40 = vrot.slane %v2227_v7, 1  ;;  %v3265_v7 = vld [vmem:[%s4061_s9] ss:$0 sm:$0xff] }
0x2df1   :  { %2942 = vmatmul.mubr.msk.bf16.vlgmr.msra.gmra.mrb[40].mxu1 %vm209_vm3, %v2229_v40 }
0x2df2   :  { %2962 = vmatpush3.bf16.msra.mxu1 %v3633_v12  ;;  %2969 = vmatprep.mubr.msk.bf16.mxu1 %vm3293_vm4, %v3292_v44 }
0x2df3   :  { %2963 = vmatprep.subr.bf16.mxu1 %v3292_v44 }
0x2df6   :  { %2964 = vmatpush3.bf16.msra.mxu1 %v3639_v43 }
0x2df7   :  { %2965 = vmatprep.subr.bf16.mxu1 %v3292_v44 }
0x2dfa   :  { %2966 = vmatpush3.bf16.msra.mxu1 %v3647_v15 }
0x2dfb   :  { %2967 = vmatprep.subr.bf16.mxu1 %v3292_v44 }
0x2dfe   :  { %2968 = vmatpush3.bf16.msra.mxu1 %v3657_v16 }
0x2ec4   :  { %v2267_v8 = vpop.f32.mrb[40].mxu1 }
0x2ec5   :  { %v2268_v10 = vadd.f32 %v3677_v22, %v2267_v8  ;;  %v2943_v30 = vpop.f32.mrb[41].mxu1 }
0x2ec6   :  { %v2270_v12 = vpop.f32.mrb[42].mxu1 }
0x2ec7   :  { %3211 = vtanh.f32 %v2268_v10  ;;  %v2944_v11 = vpop.f32.mrb[43].mxu1  ;;  %v2693_v36 = vmul.f32 -1.442695, %v2268_v10 }
0x2ec9   :  { %3213 = vpow2.f32 %v2693_v36 }
0x2ed1   :  { %v3212_v34 = vpop.eup %3211 }
0x2ed2   :  { %2282 = vrot.lane.b32.xlu1 %v3212_v34, %s3291_s4 }
0x2ed3   :  { %v3214_v43 = vpop.eup %3213 }
0x2ed4   :  { %v2276_v37 = vadd.f32 1.0, %v3214_v43 }
0x2ed6   :  { %3215 = vrcp.f32 %v2276_v37 }
0x2ee0   :  { %v3216_v15 = vpop.eup %3215 }
0x2ee1   :  { %v2280_v16 = vmul.f32 %v3216_v15, %v3888_v53  ;;  %v3263_v53 = vld [vmem:[%s4058_s6] sm:$0xff]  }
0x2f44   :  { %v2283_v1 = vpop.permute.xlu1 %2282 }
0x2f45   :  { %v2285_v41 = vmul.f32 %v3216_v15, %v2283_v1 }
0x2f47   :  { %2287 = vrot.lane.b32.xlu0 %v2285_v41, %s3295_s7 }
0x2fb9   :  { %v2288_v22 = vpop.permute.xlu0 %2287 }
0x2fba   :  { %v3935_v42 = vadd.f32 %v2288_v22, %v2280_v16 }
0x2fbc   :  { %3217 = vtanh.f32 %v3935_v42 }
0x2fc6   :  { %v3218_v52 = vpop.eup %3217 }
0x2fc7   :  { %2293 = vrot.lane.b32.xlu1 %v3218_v52, %s3291_s4  ;;  %v1211_v52 = vadd.f32 %v3979_v50, %v3716_v46  ;;  %v3989_v46 = vld [vmem:[%s4064_s12] sm:$0x3]  ;;  %s3302_s12 = smov [#allocation2]  }
0x2fc8   :  { %s2608_s19 = sshll.u32 %s3302_s12, 4  ;;  %s2609_s19 = int_to_ptr.vmem [resolvable:$true] %s2608_s19 }
0x2fc9   :  { %s3266_s1 = scalar_lea.vmem %s2609_s19, 16  ;;  %s3270_s5 = scalar_lea.vmem %s2609_s19, 32 }
0x2fca   :  { %p3267_p0 = scmp.ne.s32.totalorder %s2609_s19, %s3266_s1  ;;  %p3271_p1 = scmp.lt.s32.totalorder %s2609_s19, %s2609_s19 }
0x2fcb   :  { %2368 = vrot.lane.b32.xlu1 %v2367_v54, %s3295_s7  ;;  %v1217_v54 = vsel %vm1216_vm6, %v1211_v52, -inf  ;;  %p3272_p2 = scmp.lt.s32.totalorder %s3270_s5, %s3266_s1 }
0x2fcd   :  { %p3273_p3 = por %p3272_p2, %p3271_p1 }
0x2fcf   :  { %p3274_p4 = pnand %p3273_p3, %p3267_p0 }
0x3039   :  { %v2294_v35 = vpop.permute.xlu1 %2293 }
0x303a   :  { %v2296_v56 = vmul.f32 %v3216_v15, %v2294_v35 }
0x303c   :  { %v2297_v57 = vpack.c.bf16 %v2296_v56, %v2296_v56  ;;  %v2449_v45 = vrot.slane %v2296_v56, 4 }
0x303d   :  { %v2369_v31 = vpop.permute.xlu1 %2368 }
0x303e   :  { %2299 = vrot.lane.b32.xlu0 %v2297_v57, %s3295_s7 }
0x30b0   :  { %v2300_v58 = vpop.permute.xlu0 %2299 }
0x30b1   :  { %2950 = vmatmul.mubr.msk.bf16.vlgmr.msra.gmra.mrb[64].mxu0 %vm966_vm5, %v2300_v58 }
0x30b2   :  { %2954 = vmatpush3.bf16.msra.mxu0 %v3263_v53  ;;  %2957 = vmatprep.mubr.msk.bf16.mxu0 %vm3293_vm4, %v3292_v44 }
0x30b3   :  { %2955 = vmatprep.subr.bf16.mxu0 %v3292_v44 }
0x30b6   :  { %2956 = vmatpush3.bf16.msra.mxu0 %v3264_v38 }
0x30b7   :  { %2973 = vmatprep.subr.bf16.mxu0 %v3292_v44 }
0x30b9   :  { %2958 = vmatmul.mubr.msk.bf16.vlgmr.msra.gmra.mrb[68].mxu0 %vm966_vm5, %v2369_v31 }
0x30ba   :  { %2974 = vmatpush3.bf16.msra.mxu0 %v3688_v32  ;;  %2977 = vmatprep.mubr.msk.bf16.mxu0 %vm3293_vm4, %v3292_v44 }
0x30bb   :  { %2975 = vmatprep.subr.bf16.mxu0 %v3292_v44 }
0x30be   :  { %2976 = vmatpush3.bf16.msra.mxu0 %v3694_v33 }
0x3184   :  { %v3958_v60 = vpop.f32.mrb[64].mxu0 }
0x3185   :  { %v2951_v9 = vpop.f32.mrb[65].mxu0 }
0x3186   :  { %v2341_v61 = vpop.f32.mrb[66].mxu0 }
0x3187   :  { %v2952_v62 = vpop.f32.mrb[67].mxu0  ;;  %v1665_v61 = vadd.f32 %v3979_v50, %v3812_v55 }
0x3189   :  { %v1670_v62 = vsel %vm1216_vm6, %v1665_v61, -inf }
0x318c   :  { %v2407_v63 = vpop.f32.mrb[68].mxu0 }
0x318d   :  { %v2414_v0 = vrot.slane %v2407_v63, 4  ;;  %v2959_v39 = vpop.f32.mrb[69].mxu0 }
0x318e   :  { %v2410_v3 = vpop.f32.mrb[70].mxu0 }
0x318f   :  { %v2416_v13 = vadd.f32 %v2414_v0, %v3617_v49  ;;  %v2960_v17 = vpop.f32.mrb[71].mxu0  ;;  %v1438_v3 = vadd.f32 %v3979_v50, %v3764_v48 }
0x3191   :  { %3219 = vtanh.f32 %v2416_v13  ;;  %v2696_v18 = vmul.f32 -1.442695, %v2416_v13  ;;  %v1443_v17 = vsel %vm1216_vm6, %v1438_v3, -inf }
0x3193   :  { %3221 = vpow2.f32 %v2696_v18 }
0x319b   :  { %v3220_v32 = vpop.eup %3219 }
0x319c   :  { %2429 = vrot.lane.b32.xlu0 %v3220_v32, %s3291_s4  ;;  %v3296_v32 = vmov 1  }
0x319d   :  { %v3222_v44 = vpop.eup %3221  ;;  %2995 = vset.pattern.permute.xlu1 %v3296_v32 }
0x319e   :  { %v2420_v33 = vadd.f32 1.0, %v3222_v44 }
0x31a0   :  { %3223 = vrcp.f32 %v2420_v33 }
0x31aa   :  { %v3224_v47 = vpop.eup %3223 }
0x31ab   :  { %v2427_v23 = vmul.f32 %v3224_v47, %v2425_v5 }
0x320e   :  { %v2430_v20 = vpop.permute.xlu0 %2429 }
0x320f   :  { %v2432_v21 = vmul.f32 %v3224_v47, %v2430_v20 }
0x3211   :  { %2434 = vrot.lane.b32.xlu1 %v2432_v21, %s3295_s7 }
0x3283   :  { %v2435_v24 = vpop.permute.xlu1 %2434 }
0x3284   :  { %v2437_v49 = vadd.f32 %v2435_v24, %v2427_v23 }
0x3286   :  { %3225 = vtanh.f32 %v2437_v49 }
0x3290   :  { %v3226_v25 = vpop.eup %3225 }
0x3291   :  { %2440 = vrot.lane.b32.xlu0 %v3226_v25, %s3291_s4 }
0x3295   :  { %2450 = vrot.lane.b32.xlu0 %v2449_v45, %s3291_s4  ;;  %v3297_v45 = vmov 2  }
0x3303   :  { %v2441_v4 = vpop.permute.xlu0 %2440 }
0x3304   :  { %v2443_v19 = vmul.f32 %v3224_v47, %v2441_v4 }
0x3306   :  { %2445 = vrot.lane.b32.xlu1 %v2443_v19, %s3295_s7 }
0x3307   :  { %v2451_v28 = vpop.permute.xlu0 %2450 }
0x3378   :  { %v2446_v2 = vpop.permute.xlu1 %2445 }
0x3379   :  { %v2453_v6 = vsel %vm966_vm5, %v2446_v2, %v2451_v28 }
0x337a   :  { %v2454_v51 = vpack.c.bf16 %v2453_v6, %v2453_v6 }
0x337c   :  { %v2456_v27 = vrot.slane %v2454_v51, 2 }
0x337e   :  { %2970 = vmatmul.mubr.msk.bf16.vlgmr.msra.gmra.mrb[44].mxu1 %vm209_vm3, %v2456_v27 }
0x3451   :  { %v2494_v26 = vpop.f32.mrb[44].mxu1 }
0x3452   :  { %v2495_v40 = vadd.f32 %v3265_v7, %v2494_v26  ;;  %v2971_v8 = vpop.f32.mrb[45].mxu1 }
0x3453   :  { %v2497_v10 = vpop.f32.mrb[46].mxu1 }
0x3454   :  { %3227 = vtanh.f32 %v2495_v40  ;;  %v2972_v30 = vpop.f32.mrb[47].mxu1  ;;  %v2698_v11 = vmul.f32 -1.442695, %v2495_v40 }
0x3456   :  { %3229 = vpow2.f32 %v2698_v11 }
0x345e   :  { %v3228_v12 = vpop.eup %3227 }
0x345f   :  { %2509 = vrot.lane.b32.xlu1 %v3228_v12, %s3291_s4 }
0x3460   :  { %v3230_v34 = vpop.eup %3229 }
0x3461   :  { %v2503_v36 = vadd.f32 1.0, %v3230_v34 }
0x3463   :  { %3231 = vrcp.f32 %v2503_v36 }
0x346d   :  { %v3232_v43 = vpop.eup %3231 }
0x346e   :  { %v2507_v1 = vmul.f32 %v3232_v43, %v3935_v42 }
0x34d1   :  { %v2510_v37 = vpop.permute.xlu1 %2509 }
0x34d2   :  { %v2512_v15 = vmul.f32 %v3232_v43, %v2510_v37 }
0x34d4   :  { %2514 = vrot.lane.b32.xlu0 %v2512_v15, %s3295_s7 }
0x3546   :  { %v2515_v41 = vpop.permute.xlu0 %2514 }
0x3547   :  { %v2517_v16 = vadd.f32 %v2515_v41, %v2507_v1  ;;  %v3298_v1 = vmov 3  }
0x3549   :  { %3233 = vtanh.f32 %v2517_v16 }
0x3553   :  { %v3234_v22 = vpop.eup %3233 }
0x3554   :  { %2520 = vrot.lane.b32.xlu1 %v3234_v22, %s3291_s4 }
0x3578   :  { %1218 = vmax.xlane.f32.xlu1 %v1217_v54 }
0x35c6   :  { %v2521_v35 = vpop.permute.xlu1 %2520 }
0x35c7   :  { %v2523_v42 = vmul.f32 %v3232_v43, %v2521_v35  ;;  %v1892_v43 = vadd.f32 %v3979_v50, %v3860_v59 }
0x35c9   :  { %v2524_v56 = vpack.c.bf16 %v2523_v42, %v2523_v42  ;;  %v1897_v15 = vsel %vm1216_vm6, %v1892_v43, -inf }
0x35cb   :  { %2526 = vrot.lane.b32.xlu0 %v2524_v56, %s3295_s7 }
0x3605   :  { %v1219_v57 = vpop.xlane.xlu1 %1218 }
0x3606   :  { %v1220_v58 = vsub.f32 %v1211_v52, %v1219_v57 }
0x3608   :  { %v1221_v53 = vmul.f32 1.442695, %v1220_v58 }
0x360a   :  { %3235 = vpow2.f32 %v1221_v53 }
0x3614   :  { %v3236_v38 = vpop.eup %3235 }
0x3615   :  { %v1223_v31 = vsel %vm1216_vm6, %v3236_v38, 0.0 }
0x3616   :  { %1224 = vadd.xlane.f32.xlu0 %v1223_v31 }
0x362c   :  { %1229 = vperm.xlu0 %2994, %v3989_v46  }
0x3630   :  { %2997 = vset.pattern.permute.xlu0 %v3298_v1 }
0x363d   :  { %v2527_v9 = vpop.permute.xlu0 %2526 }
0x363e   :  { %2978 = vmatmul.mubr.msk.bf16.vlgmr.msra.gmra.mrb[72].mxu0 %vm966_vm5, %v2527_v9  ;;  %v2113_v9 = vadd.f32 %v3979_v50, %v3908_v29 }
0x364b   :  { %1671 = vmax.xlane.f32.xlu0 %v1670_v62  ;;  %v2118_v62 = vsel %vm1216_vm6, %v2113_v9, -inf }
0x36a3   :  { %v1225_v63 = vpop.xlane.xlu0 %1224 }
0x36a4   :  { %3237 = vlog2.f32 %v1225_v63  ;;  %v3300_v63 = vmov 5  }
0x36ab   :  { %v1230_v0 = vpop.permute.xlu0 %1229 }
0x36ac   :  { %vm1231_vm7 = vcmp.eq.s32.totalorder %v3455_v14, %v1230_v0 }
0x36ad   :  { %v1232_v39 = vsel %vm1231_vm7, %v1220_v58, 0.0  ;;  %v3299_v58 = vmov 4  }
0x36ae   :  { %v1233_v13 = vsel %vm1216_vm6, %v1232_v39, 0.0  ;;  %v3238_v47 = vpop.eup %3237 }
0x36af   :  { %1234 = vadd.xlane.f32.xlu1 %v1233_v13  ;;  %v1227_v20 = vmul.f32 0.6931472, %v3238_v47 }
0x36b3   :  { %1444 = vmax.xlane.f32.xlu1 %v1443_v17 }
0x36d8   :  { %v1672_v4 = vpop.xlane.xlu0 %1671 }
0x36d9   :  { %v1673_v19 = vsub.f32 %v1665_v61, %v1672_v4 }
0x36db   :  { %v1674_v28 = vmul.f32 1.442695, %v1673_v19 }
0x3711   :  { %v4001_v55 = vpop.f32.mrb[72].mxu0 }
0x3712   :  { %v2979_v18 = vpop.f32.mrb[73].mxu0 }
0x3713   :  { %v2568_v44 = vpop.f32.mrb[74].mxu0 }
0x3714   :  { %v2980_v33 = vpop.f32.mrb[75].mxu0 }
0x373c   :  { %v1235_v21 = vpop.xlane.xlu1 %1234 }
0x373d   :  { %v1236_v5 = vsub.f32 %v1227_v20, %v1235_v21  ;;  %v2339_v21 = vadd.f32 %v3979_v50, %v3958_v60 }
0x3740   :  { %v1445_v23 = vpop.xlane.xlu1 %1444 }
0x3741   :  { %v1446_v48 = vsub.f32 %v1438_v3, %v1445_v23  ;;  %v2344_v23 = vsel %vm1216_vm6, %v2339_v21, -inf }
0x3743   :  { %v1447_v24 = vmul.f32 1.442695, %v1446_v48 }
0x3745   :  { %3239 = vpow2.f32 %v1447_v24 }
0x3746   :  { %3241 = vpow2.f32 %v1674_v28 }
0x374f   :  { %v3240_v49 = vpop.eup %3239 }
0x3750   :  { %v1449_v25 = vsel %vm1216_vm6, %v3240_v49, 0.0  ;;  %v3242_v26 = vpop.eup %3241 }
0x3751   :  { %1450 = vadd.xlane.f32.xlu1 %v1449_v25  ;;  %v1676_v7 = vsel %vm1216_vm6, %v3242_v26, 0.0  ;;  %v2566_v26 = vadd.f32 %v3979_v50, %v4001_v55 }
0x3762   :  { %1455 = vperm.xlu1 %2995, %v3989_v46  }
0x3766   :  { %2996 = vset.pattern.permute.xlu1 %v3297_v45 }
0x37de   :  { %v1451_v2 = vpop.xlane.xlu1 %1450 }
0x37df   :  { %3243 = vlog2.f32 %v1451_v2 }
0x37e2   :  { %v1456_v6 = vpop.permute.xlu1 %1455 }
0x37e3   :  { %vm1457_vm8 = vcmp.eq.s32.totalorder %v3455_v14, %v1456_v6 }
0x37e4   :  { %v1458_v51 = vsel %vm1457_vm8, %v1446_v48, 0.0 }
0x37e5   :  { %v1459_v27 = vsel %vm1216_vm6, %v1458_v51, 0.0 }
0x37e6   :  { %1460 = vadd.xlane.f32.xlu1 %v1459_v27 }
0x37e9   :  { %v3244_v40 = vpop.eup %3243 }
0x37ea   :  { %1677 = vadd.xlane.f32.xlu1 %v1676_v7  ;;  %v1453_v8 = vmul.f32 0.6931472, %v3244_v40  ;;  %v2571_v40 = vsel %vm1216_vm6, %v2566_v26, -inf }
0x37fb   :  { %1682 = vperm.xlu1 %2996, %v3989_v46  }
0x37ff   :  { %2999 = vset.pattern.permute.xlu1 %v3300_v63 }
0x3873   :  { %v1461_v10 = vpop.xlane.xlu1 %1460 }
0x3874   :  { %v1462_v30 = vsub.f32 %v1453_v8, %v1461_v10  ;;  %v3301_v8 = vmov 6  }
0x3876   :  { %v1463_v12 = vadd.f32 %v1462_v30, %v1236_v5 }
0x3877   :  { %v1678_v11 = vpop.xlane.xlu1 %1677 }
0x3878   :  { %3245 = vlog2.f32 %v1678_v11 }
0x387b   :  { %v1683_v34 = vpop.permute.xlu1 %1682 }
0x387c   :  { %vm1684_vm9 = vcmp.eq.s32.totalorder %v3455_v14, %v1683_v34 }
0x387d   :  { %v1685_v36 = vsel %vm1684_vm9, %v1673_v19, 0.0 }
0x387e   :  { %v1686_v37 = vsel %vm1216_vm6, %v1685_v36, 0.0 }
0x387f   :  { %1687 = vadd.xlane.f32.xlu0 %v1686_v37 }
0x3882   :  { %v3246_v41 = vpop.eup %3245 }
0x3883   :  { %1898 = vmax.xlane.f32.xlu0 %v1897_v15  ;;  %v1680_v16 = vmul.f32 0.6931472, %v3246_v41 }
0x390c   :  { %v1688_v22 = vpop.xlane.xlu0 %1687 }
0x390d   :  { %v1689_v52 = vsub.f32 %v1680_v16, %v1688_v22 }
0x390f   :  { %v1690_v54 = vadd.f32 %v1689_v52, %v1463_v12 }
0x3910   :  { %v1899_v35 = vpop.xlane.xlu0 %1898 }
0x3911   :  { %v1900_v42 = vsub.f32 %v1892_v43, %v1899_v35 }
0x3913   :  { %v1901_v56 = vmul.f32 1.442695, %v1900_v42 }
0x3915   :  { %3247 = vpow2.f32 %v1901_v56 }
0x391f   :  { %v3248_v57 = vpop.eup %3247 }
0x3920   :  { %v1903_v59 = vsel %vm1216_vm6, %v3248_v57, 0.0 }
0x3921   :  { %1904 = vadd.xlane.f32.xlu0 %v1903_v59 }
0x3937   :  { %1909 = vperm.xlu0 %2997, %v3989_v46  }
0x393b   :  { %2998 = vset.pattern.permute.xlu0 %v3299_v58 }
0x393c   :  { %2130 = vperm.xlu0 %2998, %v3989_v46  }
0x3940   :  { %3000 = vset.pattern.permute.xlu0 %v3301_v8 }
0x39ae   :  { %v1905_v53 = vpop.xlane.xlu0 %1904 }
0x39af   :  { %3249 = vlog2.f32 %v1905_v53 }
0x39b6   :  { %v1910_v38 = vpop.permute.xlu0 %1909 }
0x39b7   :  { %vm1911_vm10 = vcmp.eq.s32.totalorder %v3455_v14, %v1910_v38 }
0x39b8   :  { %v1912_v31 = vsel %vm1911_vm10, %v1900_v42, 0.0 }
0x39b9   :  { %v1913_v61 = vsel %vm1216_vm6, %v1912_v31, 0.0  ;;  %v3250_v0 = vpop.eup %3249 }
0x39ba   :  { %1914 = vadd.xlane.f32.xlu1 %v1913_v61  ;;  %v1907_v39 = vmul.f32 0.6931472, %v3250_v0 }
0x39bb   :  { %v2131_v33 = vpop.permute.xlu0 %2130 }
0x39bc   :  { %vm2132_vm11 = vcmp.eq.s32.totalorder %v3455_v14, %v2131_v33 }
0x39be   :  { %2119 = vmax.xlane.f32.xlu1 %v2118_v62 }
0x3a47   :  { %v1915_v3 = vpop.xlane.xlu1 %1914 }
0x3a48   :  { %v1916_v13 = vsub.f32 %v1907_v39, %v1915_v3 }
0x3a4a   :  { %v1917_v17 = vadd.f32 %v1916_v13, %v1690_v54 }
0x3a4b   :  { %v2120_v32 = vpop.xlane.xlu1 %2119 }
0x3a4c   :  { %v2121_v18 = vsub.f32 %v2113_v9, %v2120_v32 }
0x3a4e   :  { %v2122_v44 = vmul.f32 1.442695, %v2121_v18  ;;  %v2133_v20 = vsel %vm2132_vm11, %v2121_v18, 0.0 }
0x3a4f   :  { %v2134_v5 = vsel %vm1216_vm6, %v2133_v20, 0.0 }
0x3a50   :  { %3251 = vpow2.f32 %v2122_v44 }
0x3a5a   :  { %v3252_v29 = vpop.eup %3251 }
0x3a5b   :  { %v2124_v47 = vsel %vm1216_vm6, %v3252_v29, 0.0 }
0x3a5c   :  { %2125 = vadd.xlane.f32.xlu1 %v2124_v47 }
0x3a60   :  { %2135 = vadd.xlane.f32.xlu1 %v2134_v5 }
0x3a64   :  { %2345 = vmax.xlane.f32.xlu1 %v2344_v23 }
0x3a75   :  { %2356 = vperm.xlu1 %2999, %v3989_v46  }
0x3ae9   :  { %v2126_v48 = vpop.xlane.xlu1 %2125 }
0x3aea   :  { %3253 = vlog2.f32 %v2126_v48 }
0x3aed   :  { %v2136_v24 = vpop.xlane.xlu1 %2135 }
0x3af1   :  { %v2346_v49 = vpop.xlane.xlu1 %2345 }
0x3af2   :  { %v2347_v25 = vsub.f32 %v2339_v21, %v2346_v49 }
0x3af4   :  { %v3254_v45 = vpop.eup %3253  ;;  %v2348_v4 = vmul.f32 1.442695, %v2347_v25 }
0x3af5   :  { %v2128_v19 = vmul.f32 0.6931472, %v3254_v45  ;;  %v2357_v28 = vpop.permute.xlu1 %2356 }
0x3af6   :  { %3255 = vpow2.f32 %v2348_v4  ;;  %vm2358_vm12 = vcmp.eq.s32.totalorder %v3455_v14, %v2357_v28 }
0x3af7   :  { %v2137_v60 = vsub.f32 %v2128_v19, %v2136_v24  ;;  %v2359_v2 = vsel %vm2358_vm12, %v2347_v25, 0.0 }
0x3af8   :  { %v2360_v6 = vsel %vm1216_vm6, %v2359_v2, 0.0 }
0x3af9   :  { %v2138_v51 = vadd.f32 %v2137_v60, %v1917_v17  ;;  %2361 = vadd.xlane.f32.xlu1 %v2360_v6 }
0x3b00   :  { %v3256_v27 = vpop.eup %3255 }
0x3b01   :  { %v2350_v7 = vsel %vm1216_vm6, %v3256_v27, 0.0 }
0x3b02   :  { %2351 = vadd.xlane.f32.xlu0 %v2350_v7 }
0x3b06   :  { %2572 = vmax.xlane.f32.xlu0 %v2571_v40 }
0x3b86   :  { %v2362_v43 = vpop.xlane.xlu1 %2361 }
0x3b8f   :  { %v2352_v10 = vpop.xlane.xlu0 %2351 }
0x3b90   :  { %3257 = vlog2.f32 %v2352_v10 }
0x3b93   :  { %v2573_v30 = vpop.xlane.xlu0 %2572 }
0x3b94   :  { %v2574_v12 = vsub.f32 %v2566_v26, %v2573_v30 }
0x3b96   :  { %v2575_v11 = vmul.f32 1.442695, %v2574_v12 }
0x3b98   :  { %3259 = vpow2.f32 %v2575_v11 }
0x3b9a   :  { %v3258_v34 = vpop.eup %3257 }
0x3b9b   :  { %v2354_v36 = vmul.f32 0.6931472, %v3258_v34 }
0x3b9d   :  { %v2363_v37 = vsub.f32 %v2354_v36, %v2362_v43 }
0x3b9f   :  { %v2364_v15 = vadd.f32 %v2363_v37, %v2138_v51 }
0x3ba2   :  { %v3260_v50 = vpop.eup %3259 }
0x3ba3   :  { %v2577_v55 = vsel %vm1216_vm6, %v3260_v50, 0.0 }
0x3ba4   :  { %2578 = vadd.xlane.f32.xlu0 %v2577_v55 }
0x3bba   :  { %2583 = vperm.xlu0 %3000, %v3989_v46  }
0x3c31   :  { %v2579_v1 = vpop.xlane.xlu0 %2578 }
0x3c32   :  { %3261 = vlog2.f32 %v2579_v1 }
0x3c39   :  { %v2584_v41 = vpop.permute.xlu0 %2583 }
0x3c3a   :  { %vm2585_vm13 = vcmp.eq.s32.totalorder %v3455_v14, %v2584_v41 }
0x3c3b   :  { %v2586_v16 = vsel %vm2585_vm13, %v2574_v12, 0.0 }
0x3c3c   :  { %v2587_v22 = vsel %vm1216_vm6, %v2586_v16, 0.0  ;;  %v3262_v52 = vpop.eup %3261 }
0x3c3d   :  { %2588 = vadd.xlane.f32.xlu1 %v2587_v22  ;;  %v2581_v54 = vmul.f32 0.6931472, %v3262_v52 }
0x3cca   :  { %v2589_v35 = vpop.xlane.xlu1 %2588 }
0x3ccb   :  { %v2590_v42 = vsub.f32 %v2581_v54, %v2589_v35 }
0x3ccd   :  { %v2591_v56 = vadd.f32 %v2590_v42, %v2364_v15 }
0x3ccf   :  { %v2592_v57 = vsel %vm1216_vm6, %v2591_v56, 0.0 }
0x3cd0   :  { %v2593_v59 = vrot.slane %v2592_v57, 4 }
0x3cd2   :  { %v2594_v58 = vadd.f32 %v2593_v59, %v2592_v57 }
0x3cd4   :  { %v2595_v53 = vrot.slane %v2594_v58, 2 }
0x3cd6   :  { %v2596_v46 = vadd.f32 %v2595_v53, %v2594_v58 }
0x3cd8   :  { %v2597_v38 = vrot.slane %v2596_v46, 1 }
0x3cda   :  { %v2598_v14 = vadd.f32 %v2597_v38, %v2596_v46 }
0x3cdc   :  { %v2599_v31 = vmul.f32 0.071428575, %v2598_v14 }
0x3cde   :  { %2601 = vst.msk [vmem:[#allocation2] sm:$0x1] %vm2600_vm14, %v2599_v31 }
0x3cdf   :  { %3277 = shalt.err (!%p3274_p4)
}
0x3ce0   :  { %s3278_s20 = scalar_lea.hbm %s4065_s13, 16 }
0x3ce1   :  { %p3279_p5 = scmp.ne.s32.totalorder %s4065_s13, %s3278_s20  ;;  %p3282_p6 = scmp.lt.u32.totalorder %s3278_s20, %s4065_s13 }
0x3ce3   :  { %p3284_p7 = pnand %p3282_p6, %p3279_p5 }
0x3ce5   :  { %3287 = shalt.err (!%p3284_p7)
}
0x3ce6   :  { %2611 = dma.vmem_to_hbm [thread:$0]  %s2609_s19, 16, %s4065_s13, [#allocation3]  }
0x3ce7   :  { %3288 = dma.done.wait [#allocation3], 16  }
0x3ce8   :  { %3289 = vsyncadd [#allocation3], 4294967280 }
0x3ce9   :  { %2615 = vsyncpa [#allocation3], 1 }

</bundles_post_ra>
